<compile_context>
chip_gen: v7x
topology: tpu7x:2x2x1
jax: 0.10.0
libtpu: 0.0.40
codegen_flags: <defaults>
</compile_context>

<pallas_src>
import math
import functools

import jax
import jax.numpy as jnp
from jax.experimental import pallas as pl
from jax.experimental.pallas import tpu as pltpu


# ----------------------------------------------------------------------------
# in-kernel helpers
# ----------------------------------------------------------------------------
def _layernorm(x, gamma, beta, eps=1e-5):
    mu = jnp.mean(x, axis=-1, keepdims=True)
    var = jnp.mean((x - mu) ** 2, axis=-1, keepdims=True)
    return (x - mu) * jax.lax.rsqrt(var + eps) * gamma + beta


def _mha_heads(q, k, v, mask, n_heads, inv_scale):
    """Multi-head attention on already-projected (S, D) tensors.

    Static per-head loop over lane slices (no (H,S,Dh) transposes).  Returns
    (ctx, attn_all) where ctx is (Sq, D) and attn_all is (Sq, H*Sk) with heads
    concatenated along lanes (single wide store by the caller).
    """
    Sq, D = q.shape
    Dh = D // n_heads
    q = q * inv_scale                      # fold 1/sqrt(Dh) into q ((S,D), not (H,S,S))
    attn_heads, ctx_heads = [], []
    for h in range(n_heads):               # static, unrolled; H is small
        lo, hi = h * Dh, (h + 1) * Dh
        qh, kh, vh = q[:, lo:hi], k[:, lo:hi], v[:, lo:hi]
        # q @ k^T as a contraction -> no materialized transpose of k
        energy = jax.lax.dot_general(
            qh, kh, (((1,), (1,)), ((), ())),
            preferred_element_type=jnp.float32)             # (Sq, Sk)
        energy = jnp.where(mask == 0, jnp.float32(-10000.0), energy)
        m = jnp.max(energy, axis=-1, keepdims=True)
        p = jnp.exp(energy - m)                             # EUP
        attn = p / jnp.sum(p, axis=-1, keepdims=True)       # exact softmax (review fix)
        attn_heads.append(attn)
        ctx_heads.append(jnp.dot(attn, vh, preferred_element_type=jnp.float32))
    # single lane-concat each; one store of attn_all per attention block by the caller
    return jnp.concatenate(ctx_heads, axis=-1), jnp.concatenate(attn_heads, axis=-1)


# ----------------------------------------------------------------------------
# fused decoder kernel: embed (l==0) -> decoder layer l -> fc_out (l==L-1)
# grid = (B, L); x stays resident in VMEM scratch across the layer axis
# ----------------------------------------------------------------------------
def _decoder_fused_kernel(n_heads, n_layers,
                          ids_ref, enc_ref, tmask_ref, smask_ref, emb_ref, pe_ref,
                          wqkv_s_ref, bqkv_s_ref, wo_s_ref, bo_s_ref, g1_ref, b1_ref,
                          wq_c_ref, bq_c_ref, wkv_c_ref, bkv_c_ref, wo_c_ref, bo_c_ref,
                          g2_ref, b2_ref,
                          w1_ref, bf1_ref, w2_ref, bf2_ref, g3_ref, b3_ref,
                          wout_ref, bout_ref,
                          sattn_ref, cattn_ref, logits_ref,
                          x_ref):
    l = pl.program_id(1)
    St, D = x_ref.shape
    H = n_heads
    Dh = D // H
    inv_scale = 1.0 / math.sqrt(Dh)

    # --- token embedding + positional encoding (first layer step only) ------
    @pl.when(l == 0)
    def _():
        ids = ids_ref[0]                                     # (St, 1) int32
        V = emb_ref.shape[0]
        iota_v = jax.lax.broadcasted_iota(jnp.int32, (St, V), 1)   # lane-major one-hot
        one_hot = (iota_v == ids).astype(jnp.float32)        # (St, V)
        emb = jnp.dot(one_hot, emb_ref[...], preferred_element_type=jnp.float32)
        x_ref[...] = emb + pe_ref[...]                       # dropout == identity

    x = x_ref[...]                                           # (St, D)
    enc = enc_ref[0]                                         # (Ss, D)
    tmask = tmask_ref[0, 0]                                  # (St, St)
    smask = smask_ref[0, 0]                                  # (1, Ss)

    # --- masked self attention (fused QKV: one (D,3D) matmul) ---------------
    qkv = jnp.dot(x, wqkv_s_ref[0], preferred_element_type=jnp.float32) + bqkv_s_ref[0]
    q, k, v = qkv[:, :D], qkv[:, D:2 * D], qkv[:, 2 * D:]
    ctx, attn_s = _mha_heads(q, k, v, tmask, H, inv_scale)
    sattn_ref[0, 0] = attn_s.astype(sattn_ref.dtype)         # one wide store
    sa = jnp.dot(ctx, wo_s_ref[0], preferred_element_type=jnp.float32) + bo_s_ref[0]
    h1 = _layernorm(x + sa, g1_ref[0], b1_ref[0])            # dropout == identity

    # --- encoder cross attention (fused KV: one (D,2D) matmul over enc) -----
    qc = jnp.dot(h1, wq_c_ref[0], preferred_element_type=jnp.float32) + bq_c_ref[0]
    kvc = jnp.dot(enc, wkv_c_ref[0], preferred_element_type=jnp.float32) + bkv_c_ref[0]
    kc, vc = kvc[:, :D], kvc[:, D:]
    ctx_c, attn_c = _mha_heads(qc, kc, vc, smask, H, inv_scale)
    cattn_ref[0, 0] = attn_c.astype(cattn_ref.dtype)         # one wide store
    ca = jnp.dot(ctx_c, wo_c_ref[0], preferred_element_type=jnp.float32) + bo_c_ref[0]
    h2 = _layernorm(h1 + ca, g2_ref[0], b2_ref[0])

    # --- position-wise feedforward -------------------------------------------
    ff = jnp.dot(h2, w1_ref[0], preferred_element_type=jnp.float32) + bf1_ref[0]
    ff = jnp.maximum(ff, 0.0)
    ff = jnp.dot(ff, w2_ref[0], preferred_element_type=jnp.float32) + bf2_ref[0]
    out = _layernorm(h2 + ff, g3_ref[0], b3_ref[0])

    x_ref[...] = out                                         # carry to next layer step

    # --- final vocabulary projection (last layer step only) ------------------
    @pl.when(l == n_layers - 1)
    def _():
        logits = jnp.dot(out, wout_ref[...], preferred_element_type=jnp.float32) + bout_ref[...]
        logits_ref[0] = logits.astype(logits_ref.dtype)


# ----------------------------------------------------------------------------
# wrapper: one pallas_call for the whole Decoder forward
# ----------------------------------------------------------------------------
def decoder_forward(trg_ids, enc_src, trg_mask, src_mask, params, n_heads):
    B, St = trg_ids.shape
    Ss = enc_src.shape[1]
    V, D = params['emb'].shape
    layers = params['layers']                 # dict of (L, ...) stacked arrays
    L = layers['wqkv_s'].shape[0]
    d_ff = layers['w1'].shape[2]
    H = n_heads

    ids3 = trg_ids.reshape(B, St, 1).astype(jnp.int32)   # (St,1): ids on sublanes
    pe_slice = params['pe'][:St]

    def per_layer(shape):
        nd = len(shape)
        return pl.BlockSpec((1,) + tuple(shape[1:]),
                            lambda b, l, _nd=nd: (l,) + (0,) * (_nd - 1))

    def shared(shape):
        nd = len(shape)
        return pl.BlockSpec(tuple(shape), lambda b, l, _nd=nd: (0,) * _nd)

    in_specs = [
        pl.BlockSpec((1, St, 1), lambda b, l: (b, 0, 0)),           # ids
        pl.BlockSpec((1, Ss, D), lambda b, l: (b, 0, 0)),           # enc_src (resident per b)
        pl.BlockSpec((1, 1, St, St), lambda b, l: (b, 0, 0, 0)),    # trg_mask
        pl.BlockSpec((1, 1, 1, Ss), lambda b, l: (b, 0, 0, 0)),     # src_mask
        shared((V, D)), shared((St, D)),                            # emb table, pos encoding
        per_layer((L, D, 3 * D)), per_layer((L, 1, 3 * D)),         # fused self QKV
        per_layer((L, D, D)), per_layer((L, 1, D)),                 # self out proj
        per_layer((L, 1, D)), per_layer((L, 1, D)),                 # ln1
        per_layer((L, D, D)), per_layer((L, 1, D)),                 # cross Q
        per_layer((L, D, 2 * D)), per_layer((L, 1, 2 * D)),         # fused cross KV
        per_layer((L, D, D)), per_layer((L, 1, D)),                 # cross out proj
        per_layer((L, 1, D)), per_layer((L, 1, D)),                 # ln2
        per_layer((L, D, d_ff)), per_layer((L, 1, d_ff)),           # ffn w1
        per_layer((L, d_ff, D)), per_layer((L, 1, D)),              # ffn w2
        per_layer((L, 1, D)), per_layer((L, 1, D)),                 # ln3
        shared((D, V)), shared((1, V)),                             # fc_out
    ]
    out_specs = [
        pl.BlockSpec((1, 1, St, H * St), lambda b, l: (b, l, 0, 0)),  # self-attn maps
        pl.BlockSpec((1, 1, St, H * Ss), lambda b, l: (b, l, 0, 0)),  # cross-attn maps
        pl.BlockSpec((1, St, V), lambda b, l: (b, 0, 0)),             # logits (resident over l)
    ]
    out_shape = [
        jax.ShapeDtypeStruct((B, L, St, H * St), jnp.float32),
        jax.ShapeDtypeStruct((B, L, St, H * Ss), jnp.float32),
        jax.ShapeDtypeStruct((B, St, V), jnp.float32),
    ]
    kernel = functools.partial(_decoder_fused_kernel, H, L)

    sattn_cat, cattn_cat, logits = pl.pallas_call(
        kernel,
        out_shape=out_shape,
        grid_spec=pltpu.PrefetchScalarGridSpec(
            num_scalar_prefetch=0, grid=(B, L),
            in_specs=in_specs, out_specs=out_specs,
            scratch_shapes=[pltpu.VMEM((St, D), jnp.float32)]),     # x, resident across layers
        compiler_params=pltpu.CompilerParams(
            dimension_semantics=("parallel", "arbitrary")),         # batch across TCs on v7x
    )(ids3, enc_src, trg_mask, src_mask, params['emb'], pe_slice,
      layers['wqkv_s'], layers['bqkv_s'], layers['wo_s'], layers['bo_s'],
      layers['g1'], layers['b1'],
      layers['wq_c'], layers['bq_c'], layers['wkv_c'], layers['bkv_c'],
      layers['wo_c'], layers['bo_c'], layers['g2'], layers['b2'],
      layers['w1'], layers['bf1'], layers['w2'], layers['bf2'],
      layers['g3'], layers['b3'],
      params['w_out'], params['b_out'])

    # unpack head-concatenated attention maps back to the PyTorch (B, H, Sq, Sk) layout
    sattn = sattn_cat.reshape(B, L, St, H, St).transpose(0, 1, 3, 2, 4)
    cattn = cattn_cat.reshape(B, L, St, H, Ss).transpose(0, 1, 3, 2, 4)
    self_attns = [sattn[:, l] for l in range(L)]
    cross_attns = [cattn[:, l] for l in range(L)]
    return logits, self_attns, cross_attns


# ----------------------------------------------------------------------------
# pure-JAX reference of the PyTorch forward (dropout = identity)
# ----------------------------------------------------------------------------
def _reference(trg_ids, enc_src, trg_mask, src_mask, params, n_heads):
    emb_tbl, pe = params['emb'], params['pe']
    B, St = trg_ids.shape
    D = emb_tbl.shape[1]
    H = n_heads
    Dh = D // H
    scale = math.sqrt(Dh)
    layers = params['layers']
    L = layers['wqkv_s'].shape[0]

    def ln(x, g, b, eps=1e-5):
        mu = jnp.mean(x, -1, keepdims=True)
        var = jnp.mean((x - mu) ** 2, -1, keepdims=True)
        return (x - mu) / jnp.sqrt(var + eps) * g + b

    def mha(q_in, kv_in, wq, bq, wk, bk, wv, bv, wo, bo, mask):
        Bq, Sq, _ = q_in.shape
        Sk = kv_in.shape[1]
        q = q_in @ wq + bq
        k = kv_in @ wk + bk
        v = kv_in @ wv + bv
        qh = q.reshape(Bq, Sq, H, Dh).transpose(0, 2, 1, 3)
        kh = k.reshape(Bq, Sk, H, Dh).transpose(0, 2, 1, 3)
        vh = v.reshape(Bq, Sk, H, Dh).transpose(0, 2, 1, 3)
        energy = jnp.einsum('bhqd,bhkd->bhqk', qh, kh) / scale
        energy = jnp.where(mask == 0, -10000.0, energy)
        attn = jax.nn.softmax(energy, axis=-1)
        ctx = jnp.einsum('bhqk,bhkd->bhqd', attn, vh)
        ctx = ctx.transpose(0, 2, 1, 3).reshape(Bq, Sq, D)
        return ctx @ wo + bo, attn

    x = emb_tbl[trg_ids] + pe[None, :St]
    self_attns, cross_attns = [], []
    for l in range(L):
        wqkv, bqkv = layers['wqkv_s'][l], layers['bqkv_s'][l]
        sa, a_s = mha(x, x,
                      wqkv[:, :D], bqkv[:, :D],
                      wqkv[:, D:2 * D], bqkv[:, D:2 * D],
                      wqkv[:, 2 * D:], bqkv[:, 2 * D:],
                      layers['wo_s'][l], layers['bo_s'][l], trg_mask)
        x = ln(x + sa, layers['g1'][l], layers['b1'][l])
        wkv, bkv = layers['wkv_c'][l], layers['bkv_c'][l]
        ca, a_c = mha(x, enc_src,
                      layers['wq_c'][l], layers['bq_c'][l],
                      wkv[:, :D], bkv[:, :D],
                      wkv[:, D:], bkv[:, D:],
                      layers['wo_c'][l], layers['bo_c'][l], src_mask)
        x = ln(x + ca, layers['g2'][l], layers['b2'][l])
        ff = jnp.maximum(x @ layers['w1'][l] + layers['bf1'][l], 0.0) \
            @ layers['w2'][l] + layers['bf2'][l]
        x = ln(x + ff, layers['g3'][l], layers['b3'][l])
        self_attns.append(a_s)
        cross_attns.append(a_c)
    out = x @ params['w_out'] + params['b_out']
    return out, self_attns, cross_attns


def _make_pe(max_len, d_model):
    position = jnp.arange(max_len, dtype=jnp.float32)[:, None]
    div_term = jnp.exp(jnp.arange(0, d_model, 2, dtype=jnp.float32)
                       * (-math.log(10000.0) / d_model))
    pe = jnp.zeros((max_len, d_model), jnp.float32)
    pe = pe.at[:, 0::2].set(jnp.sin(position * div_term))
    pe = pe.at[:, 1::2].set(jnp.cos(position * div_term))
    return pe


if __name__ == "__main__":
    # small, module-consistent shapes
    B, ST, SS, D, H, D_FF, V, N_LAYERS, MAX_LEN = 2, 8, 12, 32, 4, 64, 50, 2, 100
    L = N_LAYERS

    keys = iter(jax.random.split(jax.random.PRNGKey(0), 64))

    def w(shape, scale=0.1):
        return (scale * jax.random.normal(next(keys), shape)).astype(jnp.float32)

    def gamma(shape):
        return (1.0 + 0.1 * jax.random.normal(next(keys), shape)).astype(jnp.float32)

    # per-layer parameters stacked along a leading L axis (fused layer grid axis)
    layer_params = {
        'wqkv_s': w((L, D, 3 * D)), 'bqkv_s': w((L, 1, 3 * D)),
        'wo_s': w((L, D, D)), 'bo_s': w((L, 1, D)),
        'g1': gamma((L, 1, D)), 'b1': w((L, 1, D)),
        'wq_c': w((L, D, D)), 'bq_c': w((L, 1, D)),
        'wkv_c': w((L, D, 2 * D)), 'bkv_c': w((L, 1, 2 * D)),
        'wo_c': w((L, D, D)), 'bo_c': w((L, 1, D)),
        'g2': gamma((L, 1, D)), 'b2': w((L, 1, D)),
        'w1': w((L, D, D_FF)), 'bf1': w((L, 1, D_FF)),
        'w2': w((L, D_FF, D)), 'bf2': w((L, 1, D)),
        'g3': gamma((L, 1, D)), 'b3': w((L, 1, D)),
    }
    params = {
        'emb': w((V, D), scale=1.0),
        'pe': _make_pe(MAX_LEN, D),
        'layers': layer_params,
        'w_out': w((D, V)), 'b_out': w((1, V)),
    }

    trg_ids = jax.random.randint(next(keys), (B, ST), 0, V, dtype=jnp.int32)
    enc_src = jax.random.normal(next(keys), (B, SS, D), dtype=jnp.float32)

    # causal target mask combined with a pad mask (last target position of batch 1 padded)
    causal = jnp.tril(jnp.ones((ST, ST), jnp.int32))
    trg_pad = jnp.ones((B, ST), jnp.int32).at[1, ST - 1:].set(0)
    trg_mask = (trg_pad[:, None, None, :] * causal[None, None]).astype(jnp.int32)  # (B,1,ST,ST)
    # source mask: last 3 source positions of batch 1 padded
    src_mask = jnp.ones((B, 1, 1, SS), jnp.int32).at[1, 0, 0, SS - 3:].set(0)

    out, sattns, cattns = decoder_forward(trg_ids, enc_src, trg_mask, src_mask, params, H)
    jax.block_until_ready((out, sattns, cattns))

    # reference at full f32 matmul precision (kernel softmax is now exact; remaining
    # tolerance only covers MXU f32-emulation / op-ordering differences)
    with jax.default_matmul_precision("float32"):
        ref_out, ref_sattns, ref_cattns = _reference(
            trg_ids, enc_src, trg_mask, src_mask, params, H)

    TOL = dict(atol=5e-3, rtol=5e-3)
    assert jnp.allclose(out, ref_out, **TOL), "output mismatch"
    for li in range(N_LAYERS):
        assert jnp.allclose(sattns[li], ref_sattns[li], **TOL), f"self-attn mismatch layer {li}"
        assert jnp.allclose(cattns[li], ref_cattns[li], **TOL), f"cross-attn mismatch layer {li}"

    print("KERNEL_OK")
</pallas_src>

<mosaic_0001>
module attributes {stable_mosaic.version = 11 : i64} {
  func.func @_decoder_fused_kernel(%arg0: i32, %arg1: i32, %arg2: memref<1x8x1xi32, #tpu.memory_space<vmem>>, %arg3: memref<1x12x32xf32, #tpu.memory_space<vmem>>, %arg4: memref<1x1x8x8xi32, #tpu.memory_space<vmem>>, %arg5: memref<1x1x1x12xi32, #tpu.memory_space<vmem>>, %arg6: memref<50x32xf32, #tpu.memory_space<vmem>>, %arg7: memref<8x32xf32, #tpu.memory_space<vmem>>, %arg8: memref<1x32x96xf32, #tpu.memory_space<vmem>>, %arg9: memref<1x1x96xf32, #tpu.memory_space<vmem>>, %arg10: memref<1x32x32xf32, #tpu.memory_space<vmem>>, %arg11: memref<1x1x32xf32, #tpu.memory_space<vmem>>, %arg12: memref<1x1x32xf32, #tpu.memory_space<vmem>>, %arg13: memref<1x1x32xf32, #tpu.memory_space<vmem>>, %arg14: memref<1x32x32xf32, #tpu.memory_space<vmem>>, %arg15: memref<1x1x32xf32, #tpu.memory_space<vmem>>, %arg16: memref<1x32x64xf32, #tpu.memory_space<vmem>>, %arg17: memref<1x1x64xf32, #tpu.memory_space<vmem>>, %arg18: memref<1x32x32xf32, #tpu.memory_space<vmem>>, %arg19: memref<1x1x32xf32, #tpu.memory_space<vmem>>, %arg20: memref<1x1x32xf32, #tpu.memory_space<vmem>>, %arg21: memref<1x1x32xf32, #tpu.memory_space<vmem>>, %arg22: memref<1x32x64xf32, #tpu.memory_space<vmem>>, %arg23: memref<1x1x64xf32, #tpu.memory_space<vmem>>, %arg24: memref<1x64x32xf32, #tpu.memory_space<vmem>>, %arg25: memref<1x1x32xf32, #tpu.memory_space<vmem>>, %arg26: memref<1x1x32xf32, #tpu.memory_space<vmem>>, %arg27: memref<1x1x32xf32, #tpu.memory_space<vmem>>, %arg28: memref<32x50xf32, #tpu.memory_space<vmem>>, %arg29: memref<1x50xf32, #tpu.memory_space<vmem>>, %arg30: memref<1x1x8x32xf32, #tpu.memory_space<vmem>>, %arg31: memref<1x1x8x48xf32, #tpu.memory_space<vmem>>, %arg32: memref<1x8x50xf32, #tpu.memory_space<vmem>>, %arg33: memref<8x32xf32, #tpu.memory_space<vmem>>) attributes {dimension_semantics = [#tpu.dimension_semantics<parallel>, #tpu.dimension_semantics<arbitrary>], iteration_bounds = array<i64: 2, 2>, scalar_prefetch = 0 : i64, scratch_operands = 1 : i64, tpu.core_type = #tpu.core_type<tc>, window_params = [{transform_indices = @transform_0, window_bounds = array<i64: 1, 8, 1>}, {transform_indices = @transform_1, window_bounds = array<i64: 1, 12, 32>}, {transform_indices = @transform_2, window_bounds = array<i64: 1, 1, 8, 8>}, {transform_indices = @transform_3, window_bounds = array<i64: 1, 1, 1, 12>}, {pipeline_mode = #tpu.pipeline_mode<synchronous>, transform_indices = @transform_4, window_bounds = array<i64: 50, 32>}, {pipeline_mode = #tpu.pipeline_mode<synchronous>, transform_indices = @transform_5, window_bounds = array<i64: 8, 32>}, {transform_indices = @transform_6, window_bounds = array<i64: 1, 32, 96>}, {transform_indices = @transform_7, window_bounds = array<i64: 1, 1, 96>}, {transform_indices = @transform_8, window_bounds = array<i64: 1, 32, 32>}, {transform_indices = @transform_9, window_bounds = array<i64: 1, 1, 32>}, {transform_indices = @transform_10, window_bounds = array<i64: 1, 1, 32>}, {transform_indices = @transform_11, window_bounds = array<i64: 1, 1, 32>}, {transform_indices = @transform_12, window_bounds = array<i64: 1, 32, 32>}, {transform_indices = @transform_13, window_bounds = array<i64: 1, 1, 32>}, {transform_indices = @transform_14, window_bounds = array<i64: 1, 32, 64>}, {transform_indices = @transform_15, window_bounds = array<i64: 1, 1, 64>}, {transform_indices = @transform_16, window_bounds = array<i64: 1, 32, 32>}, {transform_indices = @transform_17, window_bounds = array<i64: 1, 1, 32>}, {transform_indices = @transform_18, window_bounds = array<i64: 1, 1, 32>}, {transform_indices = @transform_19, window_bounds = array<i64: 1, 1, 32>}, {transform_indices = @transform_20, window_bounds = array<i64: 1, 32, 64>}, {transform_indices = @transform_21, window_bounds = array<i64: 1, 1, 64>}, {transform_indices = @transform_22, window_bounds = array<i64: 1, 64, 32>}, {transform_indices = @transform_23, window_bounds = array<i64: 1, 1, 32>}, {transform_indices = @transform_24, window_bounds = array<i64: 1, 1, 32>}, {transform_indices = @transform_25, window_bounds = array<i64: 1, 1, 32>}, {pipeline_mode = #tpu.pipeline_mode<synchronous>, transform_indices = @transform_26, window_bounds = array<i64: 32, 50>}, {pipeline_mode = #tpu.pipeline_mode<synchronous>, transform_indices = @transform_27, window_bounds = array<i64: 1, 50>}, {transform_indices = @transform_28, window_bounds = array<i64: 1, 1, 8, 32>}, {transform_indices = @transform_29, window_bounds = array<i64: 1, 1, 8, 48>}, {transform_indices = @transform_30, window_bounds = array<i64: 1, 8, 50>}]} {
    %c0_i32 = arith.constant 0 : i32
    %0 = arith.cmpi eq, %arg1, %c0_i32 : i32
    %1 = arith.extui %0 : i1 to i32
    %c0_i32_0 = arith.constant 0 : i32
    %2 = arith.cmpi ne, %1, %c0_i32_0 : i32
    scf.if %2 {
      %c0_156 = arith.constant 0 : index
      %c0_157 = arith.constant 0 : index
      %c0_158 = arith.constant 0 : index
      %317 = vector.load %arg2[%c0_156, %c0_157, %c0_158] : memref<1x8x1xi32, #tpu.memory_space<vmem>>, vector<1x8x1xi32>
      %318 = vector.shape_cast %317 : vector<1x8x1xi32> to vector<8x1xi32>
      %319 = tpu.iota {dimensions = array<i32: 1>} : vector<8x50xi32>
      %320 = vector.broadcast %318 : vector<8x1xi32> to vector<8x50xi32>
      %321 = arith.cmpi eq, %319, %320 : vector<8x50xi32>
      %322 = arith.extui %321 : vector<8x50xi1> to vector<8x50xi32>
      %323 = arith.sitofp %322 : vector<8x50xi32> to vector<8x50xf32>
      %c0_159 = arith.constant 0 : index
      %c0_160 = arith.constant 0 : index
      %324 = vector.load %arg6[%c0_159, %c0_160] : memref<50x32xf32, #tpu.memory_space<vmem>>, vector<50x32xf32>
      %cst_161 = arith.constant dense<0.000000e+00> : vector<8x32xf32>
      %325 = tpu.matmul %323, %324, %cst_161 {dimension_numbers = #tpu.dot_dimension_numbers<[1], [0], [0], [1], [0, 0, 1, 1], [], []>} : vector<8x50xf32>, vector<50x32xf32>, vector<8x32xf32> -> vector<8x32xf32>
      %c0_162 = arith.constant 0 : index
      %c0_163 = arith.constant 0 : index
      %326 = vector.load %arg7[%c0_162, %c0_163] : memref<8x32xf32, #tpu.memory_space<vmem>>, vector<8x32xf32>
      %327 = arith.addf %325, %326 : vector<8x32xf32>
      %c0_164 = arith.constant 0 : index
      %c0_165 = arith.constant 0 : index
      %328 = vector.load %arg33[%c0_164, %c0_165] : memref<8x32xf32, #tpu.memory_space<vmem>>, vector<8x32xf32>
      tpu.vector_store %arg33[%c0_164, %c0_165], %327 {strides = array<i32>} : memref<8x32xf32, #tpu.memory_space<vmem>>, vector<8x32xf32>,
    } else {
    }
    %c0 = arith.constant 0 : index
    %c0_1 = arith.constant 0 : index
    %3 = vector.load %arg33[%c0, %c0_1] : memref<8x32xf32, #tpu.memory_space<vmem>>, vector<8x32xf32>
    %c0_2 = arith.constant 0 : index
    %c0_3 = arith.constant 0 : index
    %c0_4 = arith.constant 0 : index
    %4 = vector.load %arg3[%c0_2, %c0_3, %c0_4] : memref<1x12x32xf32, #tpu.memory_space<vmem>>, vector<1x12x32xf32>
    %5 = vector.shape_cast %4 : vector<1x12x32xf32> to vector<12x32xf32>
    %c0_5 = arith.constant 0 : index
    %c0_6 = arith.constant 0 : index
    %c0_7 = arith.constant 0 : index
    %c0_8 = arith.constant 0 : index
    %6 = vector.load %arg4[%c0_5, %c0_6, %c0_7, %c0_8] : memref<1x1x8x8xi32, #tpu.memory_space<vmem>>, vector<1x1x8x8xi32>
    %7 = vector.shape_cast %6 : vector<1x1x8x8xi32> to vector<8x8xi32>
    %c0_9 = arith.constant 0 : index
    %c0_10 = arith.constant 0 : index
    %c0_11 = arith.constant 0 : index
    %c0_12 = arith.constant 0 : index
    %8 = vector.load %arg5[%c0_9, %c0_10, %c0_11, %c0_12] : memref<1x1x1x12xi32, #tpu.memory_space<vmem>>, vector<1x1x1x12xi32>
    %9 = vector.shape_cast %8 : vector<1x1x1x12xi32> to vector<1x12xi32>
    %c0_13 = arith.constant 0 : index
    %c0_14 = arith.constant 0 : index
    %c0_15 = arith.constant 0 : index
    %10 = vector.load %arg8[%c0_13, %c0_14, %c0_15] : memref<1x32x96xf32, #tpu.memory_space<vmem>>, vector<1x32x96xf32>
    %11 = vector.shape_cast %10 : vector<1x32x96xf32> to vector<32x96xf32>
    %cst = arith.constant dense<0.000000e+00> : vector<8x96xf32>
    %12 = tpu.matmul %3, %11, %cst {dimension_numbers = #tpu.dot_dimension_numbers<[1], [0], [0], [1], [0, 0, 1, 1], [], []>} : vector<8x32xf32>, vector<32x96xf32>, vector<8x96xf32> -> vector<8x96xf32>
    %c0_16 = arith.constant 0 : index
    %c0_17 = arith.constant 0 : index
    %c0_18 = arith.constant 0 : index
    %13 = vector.load %arg9[%c0_16, %c0_17, %c0_18] : memref<1x1x96xf32, #tpu.memory_space<vmem>>, vector<1x1x96xf32>
    %14 = vector.shape_cast %13 : vector<1x1x96xf32> to vector<1x96xf32>
    %15 = vector.broadcast %14 : vector<1x96xf32> to vector<8x96xf32>
    %16 = arith.addf %12, %15 : vector<8x96xf32>
    %17 = vector.extract_strided_slice %16 {offsets = [0, 0], sizes = [8, 32], strides = [1, 1]} : vector<8x96xf32> to vector<8x32xf32>
    %18 = vector.extract_strided_slice %16 {offsets = [0, 32], sizes = [8, 32], strides = [1, 1]} : vector<8x96xf32> to vector<8x32xf32>
    %19 = vector.extract_strided_slice %16 {offsets = [0, 64], sizes = [8, 32], strides = [1, 1]} : vector<8x96xf32> to vector<8x32xf32>
    %cst_19 = arith.constant 0.353553385 : f32
    %20 = vector.broadcast %cst_19 : f32 to vector<8x32xf32>
    %21 = arith.mulf %17, %20 : vector<8x32xf32>
    %22 = vector.extract_strided_slice %21 {offsets = [0, 0], sizes = [8, 8], strides = [1, 1]} : vector<8x32xf32> to vector<8x8xf32>
    %23 = vector.extract_strided_slice %18 {offsets = [0, 0], sizes = [8, 8], strides = [1, 1]} : vector<8x32xf32> to vector<8x8xf32>
    %24 = vector.extract_strided_slice %19 {offsets = [0, 0], sizes = [8, 8], strides = [1, 1]} : vector<8x32xf32> to vector<8x8xf32>
    %cst_20 = arith.constant dense<0.000000e+00> : vector<8x8xf32>
    %25 = tpu.matmul %22, %23, %cst_20 {dimension_numbers = #tpu.dot_dimension_numbers<[1], [1], [0], [0], [0, 0, 1, 0], [], []>} : vector<8x8xf32>, vector<8x8xf32>, vector<8x8xf32> -> vector<8x8xf32>
    %c0_i32_21 = arith.constant 0 : i32
    %26 = vector.broadcast %c0_i32_21 : i32 to vector<8x8xi32>
    %27 = arith.cmpi eq, %7, %26 : vector<8x8xi32>
    %cst_22 = arith.constant -1.000000e+04 : f32
    %28 = vector.broadcast %cst_22 : f32 to vector<8x8xf32>
    %29 = arith.select %27, %28, %25 : vector<8x8xi1>, vector<8x8xf32>
    %cst_23 = arith.constant dense<0xFF800000> : vector<8xf32>
    %30 = vector.multi_reduction <maximumf>, %29, %cst_23 [1] : vector<8x8xf32> to vector<8xf32>
    %31 = vector.shape_cast %30 : vector<8xf32> to vector<8x1xf32>
    %32 = vector.broadcast %31 : vector<8x1xf32> to vector<8x8xf32>
    %33 = arith.subf %29, %32 : vector<8x8xf32>
    %34 = math.exp %33 : vector<8x8xf32>
    %cst_24 = arith.constant dense<0.000000e+00> : vector<8xf32>
    %35 = vector.multi_reduction <add>, %34, %cst_24 [1] : vector<8x8xf32> to vector<8xf32>
    %36 = vector.shape_cast %35 : vector<8xf32> to vector<8x1xf32>
    %37 = vector.broadcast %36 : vector<8x1xf32> to vector<8x8xf32>
    %38 = arith.divf %34, %37 : vector<8x8xf32>
    %cst_25 = arith.constant dense<0.000000e+00> : vector<8x8xf32>
    %39 = tpu.matmul %38, %24, %cst_25 {dimension_numbers = #tpu.dot_dimension_numbers<[1], [0], [0], [1], [0, 0, 1, 1], [], []>} : vector<8x8xf32>, vector<8x8xf32>, vector<8x8xf32> -> vector<8x8xf32>
    %40 = vector.extract_strided_slice %21 {offsets = [0, 8], sizes = [8, 8], strides = [1, 1]} : vector<8x32xf32> to vector<8x8xf32>
    %41 = vector.extract_strided_slice %18 {offsets = [0, 8], sizes = [8, 8], strides = [1, 1]} : vector<8x32xf32> to vector<8x8xf32>
    %42 = vector.extract_strided_slice %19 {offsets = [0, 8], sizes = [8, 8], strides = [1, 1]} : vector<8x32xf32> to vector<8x8xf32>
    %cst_26 = arith.constant dense<0.000000e+00> : vector<8x8xf32>
    %43 = tpu.matmul %40, %41, %cst_26 {dimension_numbers = #tpu.dot_dimension_numbers<[1], [1], [0], [0], [0, 0, 1, 0], [], []>} : vector<8x8xf32>, vector<8x8xf32>, vector<8x8xf32> -> vector<8x8xf32>
    %c0_i32_27 = arith.constant 0 : i32
    %44 = vector.broadcast %c0_i32_27 : i32 to vector<8x8xi32>
    %45 = arith.cmpi eq, %7, %44 : vector<8x8xi32>
    %cst_28 = arith.constant -1.000000e+04 : f32
    %46 = vector.broadcast %cst_28 : f32 to vector<8x8xf32>
    %47 = arith.select %45, %46, %43 : vector<8x8xi1>, vector<8x8xf32>
    %cst_29 = arith.constant dense<0xFF800000> : vector<8xf32>
    %48 = vector.multi_reduction <maximumf>, %47, %cst_29 [1] : vector<8x8xf32> to vector<8xf32>
    %49 = vector.shape_cast %48 : vector<8xf32> to vector<8x1xf32>
    %50 = vector.broadcast %49 : vector<8x1xf32> to vector<8x8xf32>
    %51 = arith.subf %47, %50 : vector<8x8xf32>
    %52 = math.exp %51 : vector<8x8xf32>
    %cst_30 = arith.constant dense<0.000000e+00> : vector<8xf32>
    %53 = vector.multi_reduction <add>, %52, %cst_30 [1] : vector<8x8xf32> to vector<8xf32>
    %54 = vector.shape_cast %53 : vector<8xf32> to vector<8x1xf32>
    %55 = vector.broadcast %54 : vector<8x1xf32> to vector<8x8xf32>
    %56 = arith.divf %52, %55 : vector<8x8xf32>
    %cst_31 = arith.constant dense<0.000000e+00> : vector<8x8xf32>
    %57 = tpu.matmul %56, %42, %cst_31 {dimension_numbers = #tpu.dot_dimension_numbers<[1], [0], [0], [1], [0, 0, 1, 1], [], []>} : vector<8x8xf32>, vector<8x8xf32>, vector<8x8xf32> -> vector<8x8xf32>
    %58 = vector.extract_strided_slice %21 {offsets = [0, 16], sizes = [8, 8], strides = [1, 1]} : vector<8x32xf32> to vector<8x8xf32>
    %59 = vector.extract_strided_slice %18 {offsets = [0, 16], sizes = [8, 8], strides = [1, 1]} : vector<8x32xf32> to vector<8x8xf32>
    %60 = vector.extract_strided_slice %19 {offsets = [0, 16], sizes = [8, 8], strides = [1, 1]} : vector<8x32xf32> to vector<8x8xf32>
    %cst_32 = arith.constant dense<0.000000e+00> : vector<8x8xf32>
    %61 = tpu.matmul %58, %59, %cst_32 {dimension_numbers = #tpu.dot_dimension_numbers<[1], [1], [0], [0], [0, 0, 1, 0], [], []>} : vector<8x8xf32>, vector<8x8xf32>, vector<8x8xf32> -> vector<8x8xf32>
    %c0_i32_33 = arith.constant 0 : i32
    %62 = vector.broadcast %c0_i32_33 : i32 to vector<8x8xi32>
    %63 = arith.cmpi eq, %7, %62 : vector<8x8xi32>
    %cst_34 = arith.constant -1.000000e+04 : f32
    %64 = vector.broadcast %cst_34 : f32 to vector<8x8xf32>
    %65 = arith.select %63, %64, %61 : vector<8x8xi1>, vector<8x8xf32>
    %cst_35 = arith.constant dense<0xFF800000> : vector<8xf32>
    %66 = vector.multi_reduction <maximumf>, %65, %cst_35 [1] : vector<8x8xf32> to vector<8xf32>
    %67 = vector.shape_cast %66 : vector<8xf32> to vector<8x1xf32>
    %68 = vector.broadcast %67 : vector<8x1xf32> to vector<8x8xf32>
    %69 = arith.subf %65, %68 : vector<8x8xf32>
    %70 = math.exp %69 : vector<8x8xf32>
    %cst_36 = arith.constant dense<0.000000e+00> : vector<8xf32>
    %71 = vector.multi_reduction <add>, %70, %cst_36 [1] : vector<8x8xf32> to vector<8xf32>
    %72 = vector.shape_cast %71 : vector<8xf32> to vector<8x1xf32>
    %73 = vector.broadcast %72 : vector<8x1xf32> to vector<8x8xf32>
    %74 = arith.divf %70, %73 : vector<8x8xf32>
    %cst_37 = arith.constant dense<0.000000e+00> : vector<8x8xf32>
    %75 = tpu.matmul %74, %60, %cst_37 {dimension_numbers = #tpu.dot_dimension_numbers<[1], [0], [0], [1], [0, 0, 1, 1], [], []>} : vector<8x8xf32>, vector<8x8xf32>, vector<8x8xf32> -> vector<8x8xf32>
    %76 = vector.extract_strided_slice %21 {offsets = [0, 24], sizes = [8, 8], strides = [1, 1]} : vector<8x32xf32> to vector<8x8xf32>
    %77 = vector.extract_strided_slice %18 {offsets = [0, 24], sizes = [8, 8], strides = [1, 1]} : vector<8x32xf32> to vector<8x8xf32>
    %78 = vector.extract_strided_slice %19 {offsets = [0, 24], sizes = [8, 8], strides = [1, 1]} : vector<8x32xf32> to vector<8x8xf32>
    %cst_38 = arith.constant dense<0.000000e+00> : vector<8x8xf32>
    %79 = tpu.matmul %76, %77, %cst_38 {dimension_numbers = #tpu.dot_dimension_numbers<[1], [1], [0], [0], [0, 0, 1, 0], [], []>} : vector<8x8xf32>, vector<8x8xf32>, vector<8x8xf32> -> vector<8x8xf32>
    %c0_i32_39 = arith.constant 0 : i32
    %80 = vector.broadcast %c0_i32_39 : i32 to vector<8x8xi32>
    %81 = arith.cmpi eq, %7, %80 : vector<8x8xi32>
    %cst_40 = arith.constant -1.000000e+04 : f32
    %82 = vector.broadcast %cst_40 : f32 to vector<8x8xf32>
    %83 = arith.select %81, %82, %79 : vector<8x8xi1>, vector<8x8xf32>
    %cst_41 = arith.constant dense<0xFF800000> : vector<8xf32>
    %84 = vector.multi_reduction <maximumf>, %83, %cst_41 [1] : vector<8x8xf32> to vector<8xf32>
    %85 = vector.shape_cast %84 : vector<8xf32> to vector<8x1xf32>
    %86 = vector.broadcast %85 : vector<8x1xf32> to vector<8x8xf32>
    %87 = arith.subf %83, %86 : vector<8x8xf32>
    %88 = math.exp %87 : vector<8x8xf32>
    %cst_42 = arith.constant dense<0.000000e+00> : vector<8xf32>
    %89 = vector.multi_reduction <add>, %88, %cst_42 [1] : vector<8x8xf32> to vector<8xf32>
    %90 = vector.shape_cast %89 : vector<8xf32> to vector<8x1xf32>
    %91 = vector.broadcast %90 : vector<8x1xf32> to vector<8x8xf32>
    %92 = arith.divf %88, %91 : vector<8x8xf32>
    %cst_43 = arith.constant dense<0.000000e+00> : vector<8x8xf32>
    %93 = tpu.matmul %92, %78, %cst_43 {dimension_numbers = #tpu.dot_dimension_numbers<[1], [0], [0], [1], [0, 0, 1, 1], [], []>} : vector<8x8xf32>, vector<8x8xf32>, vector<8x8xf32> -> vector<8x8xf32>
    %94 = tpu.concatenate %39, %57, %75, %93 in 1 : vector<8x8xf32>, vector<8x8xf32>, vector<8x8xf32>, vector<8x8xf32> -> vector<8x32xf32>
    %95 = tpu.concatenate %38, %56, %74, %92 in 1 : vector<8x8xf32>, vector<8x8xf32>, vector<8x8xf32>, vector<8x8xf32> -> vector<8x32xf32>
    %c0_44 = arith.constant 0 : index
    %c0_45 = arith.constant 0 : index
    %c0_46 = arith.constant 0 : index
    %c0_47 = arith.constant 0 : index
    %96 = vector.load %arg30[%c0_44, %c0_45, %c0_46, %c0_47] : memref<1x1x8x32xf32, #tpu.memory_space<vmem>>, vector<1x1x8x32xf32>
    %97 = vector.shape_cast %96 : vector<1x1x8x32xf32> to vector<8x32xf32>
    %98 = vector.shape_cast %95 : vector<8x32xf32> to vector<1x1x8x32xf32>
    tpu.vector_store %arg30[%c0_44, %c0_45, %c0_46, %c0_47], %98 {strides = array<i32>} : memref<1x1x8x32xf32, #tpu.memory_space<vmem>>, vector<1x1x8x32xf32>,
    %c0_48 = arith.constant 0 : index
    %c0_49 = arith.constant 0 : index
    %c0_50 = arith.constant 0 : index
    %99 = vector.load %arg10[%c0_48, %c0_49, %c0_50] : memref<1x32x32xf32, #tpu.memory_space<vmem>>, vector<1x32x32xf32>
    %100 = vector.shape_cast %99 : vector<1x32x32xf32> to vector<32x32xf32>
    %cst_51 = arith.constant dense<0.000000e+00> : vector<8x32xf32>
    %101 = tpu.matmul %94, %100, %cst_51 {dimension_numbers = #tpu.dot_dimension_numbers<[1], [0], [0], [1], [0, 0, 1, 1], [], []>} : vector<8x32xf32>, vector<32x32xf32>, vector<8x32xf32> -> vector<8x32xf32>
    %c0_52 = arith.constant 0 : index
    %c0_53 = arith.constant 0 : index
    %c0_54 = arith.constant 0 : index
    %102 = vector.load %arg11[%c0_52, %c0_53, %c0_54] : memref<1x1x32xf32, #tpu.memory_space<vmem>>, vector<1x1x32xf32>
    %103 = vector.shape_cast %102 : vector<1x1x32xf32> to vector<1x32xf32>
    %104 = vector.broadcast %103 : vector<1x32xf32> to vector<8x32xf32>
    %105 = arith.addf %101, %104 : vector<8x32xf32>
    %106 = arith.addf %3, %105 : vector<8x32xf32>
    %c0_55 = arith.constant 0 : index
    %c0_56 = arith.constant 0 : index
    %c0_57 = arith.constant 0 : index
    %107 = vector.load %arg12[%c0_55, %c0_56, %c0_57] : memref<1x1x32xf32, #tpu.memory_space<vmem>>, vector<1x1x32xf32>
    %108 = vector.shape_cast %107 : vector<1x1x32xf32> to vector<1x32xf32>
    %c0_58 = arith.constant 0 : index
    %c0_59 = arith.constant 0 : index
    %c0_60 = arith.constant 0 : index
    %109 = vector.load %arg13[%c0_58, %c0_59, %c0_60] : memref<1x1x32xf32, #tpu.memory_space<vmem>>, vector<1x1x32xf32>
    %110 = vector.shape_cast %109 : vector<1x1x32xf32> to vector<1x32xf32>
    %cst_61 = arith.constant dense<0.000000e+00> : vector<8xf32>
    %111 = vector.multi_reduction <add>, %106, %cst_61 [1] : vector<8x32xf32> to vector<8xf32>
    %112 = vector.shape_cast %111 : vector<8xf32> to vector<8x1xf32>
    %cst_62 = arith.constant 3.200000e+01 : f32
    %113 = vector.broadcast %cst_62 : f32 to vector<8x1xf32>
    %114 = arith.divf %112, %113 : vector<8x1xf32>
    %115 = vector.broadcast %114 : vector<8x1xf32> to vector<8x32xf32>
    %116 = arith.subf %106, %115 : vector<8x32xf32>
    %117 = arith.mulf %116, %116 : vector<8x32xf32>
    %cst_63 = arith.constant dense<0.000000e+00> : vector<8xf32>
    %118 = vector.multi_reduction <add>, %117, %cst_63 [1] : vector<8x32xf32> to vector<8xf32>
    %119 = vector.shape_cast %118 : vector<8xf32> to vector<8x1xf32>
    %cst_64 = arith.constant 3.200000e+01 : f32
    %120 = vector.broadcast %cst_64 : f32 to vector<8x1xf32>
    %121 = arith.divf %119, %120 : vector<8x1xf32>
    %122 = vector.broadcast %114 : vector<8x1xf32> to vector<8x32xf32>
    %123 = arith.subf %106, %122 : vector<8x32xf32>
    %cst_65 = arith.constant 9.99999974E-6 : f32
    %124 = vector.broadcast %cst_65 : f32 to vector<8x1xf32>
    %125 = arith.addf %121, %124 : vector<8x1xf32>
    %126 = math.rsqrt %125 : vector<8x1xf32>
    %127 = vector.broadcast %126 : vector<8x1xf32> to vector<8x32xf32>
    %128 = arith.mulf %123, %127 : vector<8x32xf32>
    %129 = vector.broadcast %108 : vector<1x32xf32> to vector<8x32xf32>
    %130 = arith.mulf %128, %129 : vector<8x32xf32>
    %131 = vector.broadcast %110 : vector<1x32xf32> to vector<8x32xf32>
    %132 = arith.addf %130, %131 : vector<8x32xf32>
    %c0_66 = arith.constant 0 : index
    %c0_67 = arith.constant 0 : index
    %c0_68 = arith.constant 0 : index
    %133 = vector.load %arg14[%c0_66, %c0_67, %c0_68] : memref<1x32x32xf32, #tpu.memory_space<vmem>>, vector<1x32x32xf32>
    %134 = vector.shape_cast %133 : vector<1x32x32xf32> to vector<32x32xf32>
    %cst_69 = arith.constant dense<0.000000e+00> : vector<8x32xf32>
    %135 = tpu.matmul %132, %134, %cst_69 {dimension_numbers = #tpu.dot_dimension_numbers<[1], [0], [0], [1], [0, 0, 1, 1], [], []>} : vector<8x32xf32>, vector<32x32xf32>, vector<8x32xf32> -> vector<8x32xf32>
    %c0_70 = arith.constant 0 : index
    %c0_71 = arith.constant 0 : index
    %c0_72 = arith.constant 0 : index
    %136 = vector.load %arg15[%c0_70, %c0_71, %c0_72] : memref<1x1x32xf32, #tpu.memory_space<vmem>>, vector<1x1x32xf32>
    %137 = vector.shape_cast %136 : vector<1x1x32xf32> to vector<1x32xf32>
    %138 = vector.broadcast %137 : vector<1x32xf32> to vector<8x32xf32>
    %139 = arith.addf %135, %138 : vector<8x32xf32>
    %c0_73 = arith.constant 0 : index
    %c0_74 = arith.constant 0 : index
    %c0_75 = arith.constant 0 : index
    %140 = vector.load %arg16[%c0_73, %c0_74, %c0_75] : memref<1x32x64xf32, #tpu.memory_space<vmem>>, vector<1x32x64xf32>
    %141 = vector.shape_cast %140 : vector<1x32x64xf32> to vector<32x64xf32>
    %cst_76 = arith.constant dense<0.000000e+00> : vector<12x64xf32>
    %142 = tpu.matmul %5, %141, %cst_76 {dimension_numbers = #tpu.dot_dimension_numbers<[1], [0], [0], [1], [0, 0, 1, 1], [], []>} : vector<12x32xf32>, vector<32x64xf32>, vector<12x64xf32> -> vector<12x64xf32>
    %c0_77 = arith.constant 0 : index
    %c0_78 = arith.constant 0 : index
    %c0_79 = arith.constant 0 : index
    %143 = vector.load %arg17[%c0_77, %c0_78, %c0_79] : memref<1x1x64xf32, #tpu.memory_space<vmem>>, vector<1x1x64xf32>
    %144 = vector.shape_cast %143 : vector<1x1x64xf32> to vector<1x64xf32>
    %145 = vector.broadcast %144 : vector<1x64xf32> to vector<12x64xf32>
    %146 = arith.addf %142, %145 : vector<12x64xf32>
    %147 = vector.extract_strided_slice %146 {offsets = [0, 0], sizes = [12, 32], strides = [1, 1]} : vector<12x64xf32> to vector<12x32xf32>
    %148 = vector.extract_strided_slice %146 {offsets = [0, 32], sizes = [12, 32], strides = [1, 1]} : vector<12x64xf32> to vector<12x32xf32>
    %cst_80 = arith.constant 0.353553385 : f32
    %149 = vector.broadcast %cst_80 : f32 to vector<8x32xf32>
    %150 = arith.mulf %139, %149 : vector<8x32xf32>
    %151 = vector.extract_strided_slice %150 {offsets = [0, 0], sizes = [8, 8], strides = [1, 1]} : vector<8x32xf32> to vector<8x8xf32>
    %152 = vector.extract_strided_slice %147 {offsets = [0, 0], sizes = [12, 8], strides = [1, 1]} : vector<12x32xf32> to vector<12x8xf32>
    %153 = vector.extract_strided_slice %148 {offsets = [0, 0], sizes = [12, 8], strides = [1, 1]} : vector<12x32xf32> to vector<12x8xf32>
    %cst_81 = arith.constant dense<0.000000e+00> : vector<8x12xf32>
    %154 = tpu.matmul %151, %152, %cst_81 {dimension_numbers = #tpu.dot_dimension_numbers<[1], [1], [0], [0], [0, 0, 1, 0], [], []>} : vector<8x8xf32>, vector<12x8xf32>, vector<8x12xf32> -> vector<8x12xf32>
    %c0_i32_82 = arith.constant 0 : i32
    %155 = vector.broadcast %c0_i32_82 : i32 to vector<1x12xi32>
    %156 = arith.cmpi eq, %9, %155 : vector<1x12xi32>
    %cst_83 = arith.constant -1.000000e+04 : f32
    %157 = vector.shape_cast %156 : vector<1x12xi1> to vector<1x12xi1>
    %158 = vector.broadcast %157 : vector<1x12xi1> to vector<8x12xi1>
    %159 = vector.broadcast %cst_83 : f32 to vector<8x12xf32>
    %160 = arith.select %158, %159, %154 : vector<8x12xi1>, vector<8x12xf32>
    %cst_84 = arith.constant dense<0xFF800000> : vector<8xf32>
    %161 = vector.multi_reduction <maximumf>, %160, %cst_84 [1] : vector<8x12xf32> to vector<8xf32>
    %162 = vector.shape_cast %161 : vector<8xf32> to vector<8x1xf32>
    %163 = vector.broadcast %162 : vector<8x1xf32> to vector<8x12xf32>
    %164 = arith.subf %160, %163 : vector<8x12xf32>
    %165 = math.exp %164 : vector<8x12xf32>
    %cst_85 = arith.constant dense<0.000000e+00> : vector<8xf32>
    %166 = vector.multi_reduction <add>, %165, %cst_85 [1] : vector<8x12xf32> to vector<8xf32>
    %167 = vector.shape_cast %166 : vector<8xf32> to vector<8x1xf32>
    %168 = vector.broadcast %167 : vector<8x1xf32> to vector<8x12xf32>
    %169 = arith.divf %165, %168 : vector<8x12xf32>
    %cst_86 = arith.constant dense<0.000000e+00> : vector<8x8xf32>
    %170 = tpu.matmul %169, %153, %cst_86 {dimension_numbers = #tpu.dot_dimension_numbers<[1], [0], [0], [1], [0, 0, 1, 1], [], []>} : vector<8x12xf32>, vector<12x8xf32>, vector<8x8xf32> -> vector<8x8xf32>
    %171 = vector.extract_strided_slice %150 {offsets = [0, 8], sizes = [8, 8], strides = [1, 1]} : vector<8x32xf32> to vector<8x8xf32>
    %172 = vector.extract_strided_slice %147 {offsets = [0, 8], sizes = [12, 8], strides = [1, 1]} : vector<12x32xf32> to vector<12x8xf32>
    %173 = vector.extract_strided_slice %148 {offsets = [0, 8], sizes = [12, 8], strides = [1, 1]} : vector<12x32xf32> to vector<12x8xf32>
    %cst_87 = arith.constant dense<0.000000e+00> : vector<8x12xf32>
    %174 = tpu.matmul %171, %172, %cst_87 {dimension_numbers = #tpu.dot_dimension_numbers<[1], [1], [0], [0], [0, 0, 1, 0], [], []>} : vector<8x8xf32>, vector<12x8xf32>, vector<8x12xf32> -> vector<8x12xf32>
    %c0_i32_88 = arith.constant 0 : i32
    %175 = vector.broadcast %c0_i32_88 : i32 to vector<1x12xi32>
    %176 = arith.cmpi eq, %9, %175 : vector<1x12xi32>
    %cst_89 = arith.constant -1.000000e+04 : f32
    %177 = vector.shape_cast %176 : vector<1x12xi1> to vector<1x12xi1>
    %178 = vector.broadcast %177 : vector<1x12xi1> to vector<8x12xi1>
    %179 = vector.broadcast %cst_89 : f32 to vector<8x12xf32>
    %180 = arith.select %178, %179, %174 : vector<8x12xi1>, vector<8x12xf32>
    %cst_90 = arith.constant dense<0xFF800000> : vector<8xf32>
    %181 = vector.multi_reduction <maximumf>, %180, %cst_90 [1] : vector<8x12xf32> to vector<8xf32>
    %182 = vector.shape_cast %181 : vector<8xf32> to vector<8x1xf32>
    %183 = vector.broadcast %182 : vector<8x1xf32> to vector<8x12xf32>
    %184 = arith.subf %180, %183 : vector<8x12xf32>
    %185 = math.exp %184 : vector<8x12xf32>
    %cst_91 = arith.constant dense<0.000000e+00> : vector<8xf32>
    %186 = vector.multi_reduction <add>, %185, %cst_91 [1] : vector<8x12xf32> to vector<8xf32>
    %187 = vector.shape_cast %186 : vector<8xf32> to vector<8x1xf32>
    %188 = vector.broadcast %187 : vector<8x1xf32> to vector<8x12xf32>
    %189 = arith.divf %185, %188 : vector<8x12xf32>
    %cst_92 = arith.constant dense<0.000000e+00> : vector<8x8xf32>
    %190 = tpu.matmul %189, %173, %cst_92 {dimension_numbers = #tpu.dot_dimension_numbers<[1], [0], [0], [1], [0, 0, 1, 1], [], []>} : vector<8x12xf32>, vector<12x8xf32>, vector<8x8xf32> -> vector<8x8xf32>
    %191 = vector.extract_strided_slice %150 {offsets = [0, 16], sizes = [8, 8], strides = [1, 1]} : vector<8x32xf32> to vector<8x8xf32>
    %192 = vector.extract_strided_slice %147 {offsets = [0, 16], sizes = [12, 8], strides = [1, 1]} : vector<12x32xf32> to vector<12x8xf32>
    %193 = vector.extract_strided_slice %148 {offsets = [0, 16], sizes = [12, 8], strides = [1, 1]} : vector<12x32xf32> to vector<12x8xf32>
    %cst_93 = arith.constant dense<0.000000e+00> : vector<8x12xf32>
    %194 = tpu.matmul %191, %192, %cst_93 {dimension_numbers = #tpu.dot_dimension_numbers<[1], [1], [0], [0], [0, 0, 1, 0], [], []>} : vector<8x8xf32>, vector<12x8xf32>, vector<8x12xf32> -> vector<8x12xf32>
    %c0_i32_94 = arith.constant 0 : i32
    %195 = vector.broadcast %c0_i32_94 : i32 to vector<1x12xi32>
    %196 = arith.cmpi eq, %9, %195 : vector<1x12xi32>
    %cst_95 = arith.constant -1.000000e+04 : f32
    %197 = vector.shape_cast %196 : vector<1x12xi1> to vector<1x12xi1>
    %198 = vector.broadcast %197 : vector<1x12xi1> to vector<8x12xi1>
    %199 = vector.broadcast %cst_95 : f32 to vector<8x12xf32>
    %200 = arith.select %198, %199, %194 : vector<8x12xi1>, vector<8x12xf32>
    %cst_96 = arith.constant dense<0xFF800000> : vector<8xf32>
    %201 = vector.multi_reduction <maximumf>, %200, %cst_96 [1] : vector<8x12xf32> to vector<8xf32>
    %202 = vector.shape_cast %201 : vector<8xf32> to vector<8x1xf32>
    %203 = vector.broadcast %202 : vector<8x1xf32> to vector<8x12xf32>
    %204 = arith.subf %200, %203 : vector<8x12xf32>
    %205 = math.exp %204 : vector<8x12xf32>
    %cst_97 = arith.constant dense<0.000000e+00> : vector<8xf32>
    %206 = vector.multi_reduction <add>, %205, %cst_97 [1] : vector<8x12xf32> to vector<8xf32>
    %207 = vector.shape_cast %206 : vector<8xf32> to vector<8x1xf32>
    %208 = vector.broadcast %207 : vector<8x1xf32> to vector<8x12xf32>
    %209 = arith.divf %205, %208 : vector<8x12xf32>
    %cst_98 = arith.constant dense<0.000000e+00> : vector<8x8xf32>
    %210 = tpu.matmul %209, %193, %cst_98 {dimension_numbers = #tpu.dot_dimension_numbers<[1], [0], [0], [1], [0, 0, 1, 1], [], []>} : vector<8x12xf32>, vector<12x8xf32>, vector<8x8xf32> -> vector<8x8xf32>
    %211 = vector.extract_strided_slice %150 {offsets = [0, 24], sizes = [8, 8], strides = [1, 1]} : vector<8x32xf32> to vector<8x8xf32>
    %212 = vector.extract_strided_slice %147 {offsets = [0, 24], sizes = [12, 8], strides = [1, 1]} : vector<12x32xf32> to vector<12x8xf32>
    %213 = vector.extract_strided_slice %148 {offsets = [0, 24], sizes = [12, 8], strides = [1, 1]} : vector<12x32xf32> to vector<12x8xf32>
    %cst_99 = arith.constant dense<0.000000e+00> : vector<8x12xf32>
    %214 = tpu.matmul %211, %212, %cst_99 {dimension_numbers = #tpu.dot_dimension_numbers<[1], [1], [0], [0], [0, 0, 1, 0], [], []>} : vector<8x8xf32>, vector<12x8xf32>, vector<8x12xf32> -> vector<8x12xf32>
    %c0_i32_100 = arith.constant 0 : i32
    %215 = vector.broadcast %c0_i32_100 : i32 to vector<1x12xi32>
    %216 = arith.cmpi eq, %9, %215 : vector<1x12xi32>
    %cst_101 = arith.constant -1.000000e+04 : f32
    %217 = vector.shape_cast %216 : vector<1x12xi1> to vector<1x12xi1>
    %218 = vector.broadcast %217 : vector<1x12xi1> to vector<8x12xi1>
    %219 = vector.broadcast %cst_101 : f32 to vector<8x12xf32>
    %220 = arith.select %218, %219, %214 : vector<8x12xi1>, vector<8x12xf32>
    %cst_102 = arith.constant dense<0xFF800000> : vector<8xf32>
    %221 = vector.multi_reduction <maximumf>, %220, %cst_102 [1] : vector<8x12xf32> to vector<8xf32>
    %222 = vector.shape_cast %221 : vector<8xf32> to vector<8x1xf32>
    %223 = vector.broadcast %222 : vector<8x1xf32> to vector<8x12xf32>
    %224 = arith.subf %220, %223 : vector<8x12xf32>
    %225 = math.exp %224 : vector<8x12xf32>
    %cst_103 = arith.constant dense<0.000000e+00> : vector<8xf32>
    %226 = vector.multi_reduction <add>, %225, %cst_103 [1] : vector<8x12xf32> to vector<8xf32>
    %227 = vector.shape_cast %226 : vector<8xf32> to vector<8x1xf32>
    %228 = vector.broadcast %227 : vector<8x1xf32> to vector<8x12xf32>
    %229 = arith.divf %225, %228 : vector<8x12xf32>
    %cst_104 = arith.constant dense<0.000000e+00> : vector<8x8xf32>
    %230 = tpu.matmul %229, %213, %cst_104 {dimension_numbers = #tpu.dot_dimension_numbers<[1], [0], [0], [1], [0, 0, 1, 1], [], []>} : vector<8x12xf32>, vector<12x8xf32>, vector<8x8xf32> -> vector<8x8xf32>
    %231 = tpu.concatenate %170, %190, %210, %230 in 1 : vector<8x8xf32>, vector<8x8xf32>, vector<8x8xf32>, vector<8x8xf32> -> vector<8x32xf32>
    %232 = tpu.concatenate %169, %189, %209, %229 in 1 : vector<8x12xf32>, vector<8x12xf32>, vector<8x12xf32>, vector<8x12xf32> -> vector<8x48xf32>
    %c0_105 = arith.constant 0 : index
    %c0_106 = arith.constant 0 : index
    %c0_107 = arith.constant 0 : index
    %c0_108 = arith.constant 0 : index
    %233 = vector.load %arg31[%c0_105, %c0_106, %c0_107, %c0_108] : memref<1x1x8x48xf32, #tpu.memory_space<vmem>>, vector<1x1x8x48xf32>
    %234 = vector.shape_cast %233 : vector<1x1x8x48xf32> to vector<8x48xf32>
    %235 = vector.shape_cast %232 : vector<8x48xf32> to vector<1x1x8x48xf32>
    tpu.vector_store %arg31[%c0_105, %c0_106, %c0_107, %c0_108], %235 {strides = array<i32>} : memref<1x1x8x48xf32, #tpu.memory_space<vmem>>, vector<1x1x8x48xf32>,
    %c0_109 = arith.constant 0 : index
    %c0_110 = arith.constant 0 : index
    %c0_111 = arith.constant 0 : index
    %236 = vector.load %arg18[%c0_109, %c0_110, %c0_111] : memref<1x32x32xf32, #tpu.memory_space<vmem>>, vector<1x32x32xf32>
    %237 = vector.shape_cast %236 : vector<1x32x32xf32> to vector<32x32xf32>
    %cst_112 = arith.constant dense<0.000000e+00> : vector<8x32xf32>
    %238 = tpu.matmul %231, %237, %cst_112 {dimension_numbers = #tpu.dot_dimension_numbers<[1], [0], [0], [1], [0, 0, 1, 1], [], []>} : vector<8x32xf32>, vector<32x32xf32>, vector<8x32xf32> -> vector<8x32xf32>
    %c0_113 = arith.constant 0 : index
    %c0_114 = arith.constant 0 : index
    %c0_115 = arith.constant 0 : index
    %239 = vector.load %arg19[%c0_113, %c0_114, %c0_115] : memref<1x1x32xf32, #tpu.memory_space<vmem>>, vector<1x1x32xf32>
    %240 = vector.shape_cast %239 : vector<1x1x32xf32> to vector<1x32xf32>
    %241 = vector.broadcast %240 : vector<1x32xf32> to vector<8x32xf32>
    %242 = arith.addf %238, %241 : vector<8x32xf32>
    %243 = arith.addf %132, %242 : vector<8x32xf32>
    %c0_116 = arith.constant 0 : index
    %c0_117 = arith.constant 0 : index
    %c0_118 = arith.constant 0 : index
    %244 = vector.load %arg20[%c0_116, %c0_117, %c0_118] : memref<1x1x32xf32, #tpu.memory_space<vmem>>, vector<1x1x32xf32>
    %245 = vector.shape_cast %244 : vector<1x1x32xf32> to vector<1x32xf32>
    %c0_119 = arith.constant 0 : index
    %c0_120 = arith.constant 0 : index
    %c0_121 = arith.constant 0 : index
    %246 = vector.load %arg21[%c0_119, %c0_120, %c0_121] : memref<1x1x32xf32, #tpu.memory_space<vmem>>, vector<1x1x32xf32>
    %247 = vector.shape_cast %246 : vector<1x1x32xf32> to vector<1x32xf32>
    %cst_122 = arith.constant dense<0.000000e+00> : vector<8xf32>
    %248 = vector.multi_reduction <add>, %243, %cst_122 [1] : vector<8x32xf32> to vector<8xf32>
    %249 = vector.shape_cast %248 : vector<8xf32> to vector<8x1xf32>
    %cst_123 = arith.constant 3.200000e+01 : f32
    %250 = vector.broadcast %cst_123 : f32 to vector<8x1xf32>
    %251 = arith.divf %249, %250 : vector<8x1xf32>
    %252 = vector.broadcast %251 : vector<8x1xf32> to vector<8x32xf32>
    %253 = arith.subf %243, %252 : vector<8x32xf32>
    %254 = arith.mulf %253, %253 : vector<8x32xf32>
    %cst_124 = arith.constant dense<0.000000e+00> : vector<8xf32>
    %255 = vector.multi_reduction <add>, %254, %cst_124 [1] : vector<8x32xf32> to vector<8xf32>
    %256 = vector.shape_cast %255 : vector<8xf32> to vector<8x1xf32>
    %cst_125 = arith.constant 3.200000e+01 : f32
    %257 = vector.broadcast %cst_125 : f32 to vector<8x1xf32>
    %258 = arith.divf %256, %257 : vector<8x1xf32>
    %259 = vector.broadcast %251 : vector<8x1xf32> to vector<8x32xf32>
    %260 = arith.subf %243, %259 : vector<8x32xf32>
    %cst_126 = arith.constant 9.99999974E-6 : f32
    %261 = vector.broadcast %cst_126 : f32 to vector<8x1xf32>
    %262 = arith.addf %258, %261 : vector<8x1xf32>
    %263 = math.rsqrt %262 : vector<8x1xf32>
    %264 = vector.broadcast %263 : vector<8x1xf32> to vector<8x32xf32>
    %265 = arith.mulf %260, %264 : vector<8x32xf32>
    %266 = vector.broadcast %245 : vector<1x32xf32> to vector<8x32xf32>
    %267 = arith.mulf %265, %266 : vector<8x32xf32>
    %268 = vector.broadcast %247 : vector<1x32xf32> to vector<8x32xf32>
    %269 = arith.addf %267, %268 : vector<8x32xf32>
    %c0_127 = arith.constant 0 : index
    %c0_128 = arith.constant 0 : index
    %c0_129 = arith.constant 0 : index
    %270 = vector.load %arg22[%c0_127, %c0_128, %c0_129] : memref<1x32x64xf32, #tpu.memory_space<vmem>>, vector<1x32x64xf32>
    %271 = vector.shape_cast %270 : vector<1x32x64xf32> to vector<32x64xf32>
    %cst_130 = arith.constant dense<0.000000e+00> : vector<8x64xf32>
    %272 = tpu.matmul %269, %271, %cst_130 {dimension_numbers = #tpu.dot_dimension_numbers<[1], [0], [0], [1], [0, 0, 1, 1], [], []>} : vector<8x32xf32>, vector<32x64xf32>, vector<8x64xf32> -> vector<8x64xf32>
    %c0_131 = arith.constant 0 : index
    %c0_132 = arith.constant 0 : index
    %c0_133 = arith.constant 0 : index
    %273 = vector.load %arg23[%c0_131, %c0_132, %c0_133] : memref<1x1x64xf32, #tpu.memory_space<vmem>>, vector<1x1x64xf32>
    %274 = vector.shape_cast %273 : vector<1x1x64xf32> to vector<1x64xf32>
    %275 = vector.broadcast %274 : vector<1x64xf32> to vector<8x64xf32>
    %276 = arith.addf %272, %275 : vector<8x64xf32>
    %cst_134 = arith.constant 0.000000e+00 : f32
    %277 = vector.broadcast %cst_134 : f32 to vector<8x64xf32>
    %278 = arith.maximumf %276, %277 : vector<8x64xf32>
    %c0_135 = arith.constant 0 : index
    %c0_136 = arith.constant 0 : index
    %c0_137 = arith.constant 0 : index
    %279 = vector.load %arg24[%c0_135, %c0_136, %c0_137] : memref<1x64x32xf32, #tpu.memory_space<vmem>>, vector<1x64x32xf32>
    %280 = vector.shape_cast %279 : vector<1x64x32xf32> to vector<64x32xf32>
    %cst_138 = arith.constant dense<0.000000e+00> : vector<8x32xf32>
    %281 = tpu.matmul %278, %280, %cst_138 {dimension_numbers = #tpu.dot_dimension_numbers<[1], [0], [0], [1], [0, 0, 1, 1], [], []>} : vector<8x64xf32>, vector<64x32xf32>, vector<8x32xf32> -> vector<8x32xf32>
    %c0_139 = arith.constant 0 : index
    %c0_140 = arith.constant 0 : index
    %c0_141 = arith.constant 0 : index
    %282 = vector.load %arg25[%c0_139, %c0_140, %c0_141] : memref<1x1x32xf32, #tpu.memory_space<vmem>>, vector<1x1x32xf32>
    %283 = vector.shape_cast %282 : vector<1x1x32xf32> to vector<1x32xf32>
    %284 = vector.broadcast %283 : vector<1x32xf32> to vector<8x32xf32>
    %285 = arith.addf %281, %284 : vector<8x32xf32>
    %286 = arith.addf %269, %285 : vector<8x32xf32>
    %c0_142 = arith.constant 0 : index
    %c0_143 = arith.constant 0 : index
    %c0_144 = arith.constant 0 : index
    %287 = vector.load %arg26[%c0_142, %c0_143, %c0_144] : memref<1x1x32xf32, #tpu.memory_space<vmem>>, vector<1x1x32xf32>
    %288 = vector.shape_cast %287 : vector<1x1x32xf32> to vector<1x32xf32>
    %c0_145 = arith.constant 0 : index
    %c0_146 = arith.constant 0 : index
    %c0_147 = arith.constant 0 : index
    %289 = vector.load %arg27[%c0_145, %c0_146, %c0_147] : memref<1x1x32xf32, #tpu.memory_space<vmem>>, vector<1x1x32xf32>
    %290 = vector.shape_cast %289 : vector<1x1x32xf32> to vector<1x32xf32>
    %cst_148 = arith.constant dense<0.000000e+00> : vector<8xf32>
    %291 = vector.multi_reduction <add>, %286, %cst_148 [1] : vector<8x32xf32> to vector<8xf32>
    %292 = vector.shape_cast %291 : vector<8xf32> to vector<8x1xf32>
    %cst_149 = arith.constant 3.200000e+01 : f32
    %293 = vector.broadcast %cst_149 : f32 to vector<8x1xf32>
    %294 = arith.divf %292, %293 : vector<8x1xf32>
    %295 = vector.broadcast %294 : vector<8x1xf32> to vector<8x32xf32>
    %296 = arith.subf %286, %295 : vector<8x32xf32>
    %297 = arith.mulf %296, %296 : vector<8x32xf32>
    %cst_150 = arith.constant dense<0.000000e+00> : vector<8xf32>
    %298 = vector.multi_reduction <add>, %297, %cst_150 [1] : vector<8x32xf32> to vector<8xf32>
    %299 = vector.shape_cast %298 : vector<8xf32> to vector<8x1xf32>
    %cst_151 = arith.constant 3.200000e+01 : f32
    %300 = vector.broadcast %cst_151 : f32 to vector<8x1xf32>
    %301 = arith.divf %299, %300 : vector<8x1xf32>
    %302 = vector.broadcast %294 : vector<8x1xf32> to vector<8x32xf32>
    %303 = arith.subf %286, %302 : vector<8x32xf32>
    %cst_152 = arith.constant 9.99999974E-6 : f32
    %304 = vector.broadcast %cst_152 : f32 to vector<8x1xf32>
    %305 = arith.addf %301, %304 : vector<8x1xf32>
    %306 = math.rsqrt %305 : vector<8x1xf32>
    %307 = vector.broadcast %306 : vector<8x1xf32> to vector<8x32xf32>
    %308 = arith.mulf %303, %307 : vector<8x32xf32>
    %309 = vector.broadcast %288 : vector<1x32xf32> to vector<8x32xf32>
    %310 = arith.mulf %308, %309 : vector<8x32xf32>
    %311 = vector.broadcast %290 : vector<1x32xf32> to vector<8x32xf32>
    %312 = arith.addf %310, %311 : vector<8x32xf32>
    %c0_153 = arith.constant 0 : index
    %c0_154 = arith.constant 0 : index
    %313 = vector.load %arg33[%c0_153, %c0_154] : memref<8x32xf32, #tpu.memory_space<vmem>>, vector<8x32xf32>
    tpu.vector_store %arg33[%c0_153, %c0_154], %312 {strides = array<i32>} : memref<8x32xf32, #tpu.memory_space<vmem>>, vector<8x32xf32>,
    %c1_i32 = arith.constant 1 : i32
    %314 = arith.cmpi eq, %arg1, %c1_i32 : i32
    %315 = arith.extui %314 : i1 to i32
    %c0_i32_155 = arith.constant 0 : i32
    %316 = arith.cmpi ne, %315, %c0_i32_155 : i32
    scf.if %316 {
      %c0_156 = arith.constant 0 : index
      %c0_157 = arith.constant 0 : index
      %317 = vector.load %arg28[%c0_156, %c0_157] : memref<32x50xf32, #tpu.memory_space<vmem>>, vector<32x50xf32>
      %cst_158 = arith.constant dense<0.000000e+00> : vector<8x50xf32>
      %318 = tpu.matmul %312, %317, %cst_158 {dimension_numbers = #tpu.dot_dimension_numbers<[1], [0], [0], [1], [0, 0, 1, 1], [], []>} : vector<8x32xf32>, vector<32x50xf32>, vector<8x50xf32> -> vector<8x50xf32>
      %c0_159 = arith.constant 0 : index
      %c0_160 = arith.constant 0 : index
      %319 = vector.load %arg29[%c0_159, %c0_160] : memref<1x50xf32, #tpu.memory_space<vmem>>, vector<1x50xf32>
      %320 = vector.broadcast %319 : vector<1x50xf32> to vector<8x50xf32>
      %321 = arith.addf %318, %320 : vector<8x50xf32>
      %c0_161 = arith.constant 0 : index
      %c0_162 = arith.constant 0 : index
      %c0_163 = arith.constant 0 : index
      %322 = vector.load %arg32[%c0_161, %c0_162, %c0_163] : memref<1x8x50xf32, #tpu.memory_space<vmem>>, vector<1x8x50xf32>
      %323 = vector.shape_cast %322 : vector<1x8x50xf32> to vector<8x50xf32>
      %324 = vector.shape_cast %321 : vector<8x50xf32> to vector<1x8x50xf32>
      tpu.vector_store %arg32[%c0_161, %c0_162, %c0_163], %324 {strides = array<i32>} : memref<1x8x50xf32, #tpu.memory_space<vmem>>, vector<1x8x50xf32>,
    } else {
    }
    return
  }
  func.func @transform_0(%arg0: i32, %arg1: i32) -> (i32, i32, i32) {
    %c0_i32 = arith.constant 0 : i32
    %c0_i32_0 = arith.constant 0 : i32
    %c0_i32_1 = arith.constant 0 : i32
    return %arg0, %c0_i32, %c0_i32_0 : i32, i32, i32
  }
  func.func @transform_1(%arg0: i32, %arg1: i32) -> (i32, i32, i32) {
    %c0_i32 = arith.constant 0 : i32
    %c0_i32_0 = arith.constant 0 : i32
    %c0_i32_1 = arith.constant 0 : i32
    return %arg0, %c0_i32, %c0_i32_0 : i32, i32, i32
  }
  func.func @transform_2(%arg0: i32, %arg1: i32) -> (i32, i32, i32, i32) {
    %c0_i32 = arith.constant 0 : i32
    %c0_i32_0 = arith.constant 0 : i32
    %c0_i32_1 = arith.constant 0 : i32
    %c0_i32_2 = arith.constant 0 : i32
    return %arg0, %c0_i32, %c0_i32_0, %c0_i32_1 : i32, i32, i32, i32
  }
  func.func @transform_3(%arg0: i32, %arg1: i32) -> (i32, i32, i32, i32) {
    %c0_i32 = arith.constant 0 : i32
    %c0_i32_0 = arith.constant 0 : i32
    %c0_i32_1 = arith.constant 0 : i32
    %c0_i32_2 = arith.constant 0 : i32
    return %arg0, %c0_i32, %c0_i32_0, %c0_i32_1 : i32, i32, i32, i32
  }
  func.func @transform_4(%arg0: i32, %arg1: i32) -> (i32, i32) {
    %c0_i32 = arith.constant 0 : i32
    %c0_i32_0 = arith.constant 0 : i32
    %c0_i32_1 = arith.constant 0 : i32
    return %c0_i32, %c0_i32_0 : i32, i32
  }
  func.func @transform_5(%arg0: i32, %arg1: i32) -> (i32, i32) {
    %c0_i32 = arith.constant 0 : i32
    %c0_i32_0 = arith.constant 0 : i32
    %c0_i32_1 = arith.constant 0 : i32
    return %c0_i32, %c0_i32_0 : i32, i32
  }
  func.func @transform_6(%arg0: i32, %arg1: i32) -> (i32, i32, i32) {
    %c0_i32 = arith.constant 0 : i32
    %c0_i32_0 = arith.constant 0 : i32
    %c0_i32_1 = arith.constant 0 : i32
    return %arg1, %c0_i32, %c0_i32_0 : i32, i32, i32
  }
  func.func @transform_7(%arg0: i32, %arg1: i32) -> (i32, i32, i32) {
    %c0_i32 = arith.constant 0 : i32
    %c0_i32_0 = arith.constant 0 : i32
    %c0_i32_1 = arith.constant 0 : i32
    return %arg1, %c0_i32, %c0_i32_0 : i32, i32, i32
  }
  func.func @transform_8(%arg0: i32, %arg1: i32) -> (i32, i32, i32) {
    %c0_i32 = arith.constant 0 : i32
    %c0_i32_0 = arith.constant 0 : i32
    %c0_i32_1 = arith.constant 0 : i32
    return %arg1, %c0_i32, %c0_i32_0 : i32, i32, i32
  }
  func.func @transform_9(%arg0: i32, %arg1: i32) -> (i32, i32, i32) {
    %c0_i32 = arith.constant 0 : i32
    %c0_i32_0 = arith.constant 0 : i32
    %c0_i32_1 = arith.constant 0 : i32
    return %arg1, %c0_i32, %c0_i32_0 : i32, i32, i32
  }
  func.func @transform_10(%arg0: i32, %arg1: i32) -> (i32, i32, i32) {
    %c0_i32 = arith.constant 0 : i32
    %c0_i32_0 = arith.constant 0 : i32
    %c0_i32_1 = arith.constant 0 : i32
    return %arg1, %c0_i32, %c0_i32_0 : i32, i32, i32
  }
  func.func @transform_11(%arg0: i32, %arg1: i32) -> (i32, i32, i32) {
    %c0_i32 = arith.constant 0 : i32
    %c0_i32_0 = arith.constant 0 : i32
    %c0_i32_1 = arith.constant 0 : i32
    return %arg1, %c0_i32, %c0_i32_0 : i32, i32, i32
  }
  func.func @transform_12(%arg0: i32, %arg1: i32) -> (i32, i32, i32) {
    %c0_i32 = arith.constant 0 : i32
    %c0_i32_0 = arith.constant 0 : i32
    %c0_i32_1 = arith.constant 0 : i32
    return %arg1, %c0_i32, %c0_i32_0 : i32, i32, i32
  }
  func.func @transform_13(%arg0: i32, %arg1: i32) -> (i32, i32, i32) {
    %c0_i32 = arith.constant 0 : i32
    %c0_i32_0 = arith.constant 0 : i32
    %c0_i32_1 = arith.constant 0 : i32
    return %arg1, %c0_i32, %c0_i32_0 : i32, i32, i32
  }
  func.func @transform_14(%arg0: i32, %arg1: i32) -> (i32, i32, i32) {
    %c0_i32 = arith.constant 0 : i32
    %c0_i32_0 = arith.constant 0 : i32
    %c0_i32_1 = arith.constant 0 : i32
    return %arg1, %c0_i32, %c0_i32_0 : i32, i32, i32
  }
  func.func @transform_15(%arg0: i32, %arg1: i32) -> (i32, i32, i32) {
    %c0_i32 = arith.constant 0 : i32
    %c0_i32_0 = arith.constant 0 : i32
    %c0_i32_1 = arith.constant 0 : i32
    return %arg1, %c0_i32, %c0_i32_0 : i32, i32, i32
  }
  func.func @transform_16(%arg0: i32, %arg1: i32) -> (i32, i32, i32) {
    %c0_i32 = arith.constant 0 : i32
    %c0_i32_0 = arith.constant 0 : i32
    %c0_i32_1 = arith.constant 0 : i32
    return %arg1, %c0_i32, %c0_i32_0 : i32, i32, i32
  }
  func.func @transform_17(%arg0: i32, %arg1: i32) -> (i32, i32, i32) {
    %c0_i32 = arith.constant 0 : i32
    %c0_i32_0 = arith.constant 0 : i32
    %c0_i32_1 = arith.constant 0 : i32
    return %arg1, %c0_i32, %c0_i32_0 : i32, i32, i32
  }
  func.func @transform_18(%arg0: i32, %arg1: i32) -> (i32, i32, i32) {
    %c0_i32 = arith.constant 0 : i32
    %c0_i32_0 = arith.constant 0 : i32
    %c0_i32_1 = arith.constant 0 : i32
    return %arg1, %c0_i32, %c0_i32_0 : i32, i32, i32
  }
  func.func @transform_19(%arg0: i32, %arg1: i32) -> (i32, i32, i32) {
    %c0_i32 = arith.constant 0 : i32
    %c0_i32_0 = arith.constant 0 : i32
    %c0_i32_1 = arith.constant 0 : i32
    return %arg1, %c0_i32, %c0_i32_0 : i32, i32, i32
  }
  func.func @transform_20(%arg0: i32, %arg1: i32) -> (i32, i32, i32) {
    %c0_i32 = arith.constant 0 : i32
    %c0_i32_0 = arith.constant 0 : i32
    %c0_i32_1 = arith.constant 0 : i32
    return %arg1, %c0_i32, %c0_i32_0 : i32, i32, i32
  }
  func.func @transform_21(%arg0: i32, %arg1: i32) -> (i32, i32, i32) {
    %c0_i32 = arith.constant 0 : i32
    %c0_i32_0 = arith.constant 0 : i32
    %c0_i32_1 = arith.constant 0 : i32
    return %arg1, %c0_i32, %c0_i32_0 : i32, i32, i32
  }
  func.func @transform_22(%arg0: i32, %arg1: i32) -> (i32, i32, i32) {
    %c0_i32 = arith.constant 0 : i32
    %c0_i32_0 = arith.constant 0 : i32
    %c0_i32_1 = arith.constant 0 : i32
    return %arg1, %c0_i32, %c0_i32_0 : i32, i32, i32
  }
  func.func @transform_23(%arg0: i32, %arg1: i32) -> (i32, i32, i32) {
    %c0_i32 = arith.constant 0 : i32
    %c0_i32_0 = arith.constant 0 : i32
    %c0_i32_1 = arith.constant 0 : i32
    return %arg1, %c0_i32, %c0_i32_0 : i32, i32, i32
  }
  func.func @transform_24(%arg0: i32, %arg1: i32) -> (i32, i32, i32) {
    %c0_i32 = arith.constant 0 : i32
    %c0_i32_0 = arith.constant 0 : i32
    %c0_i32_1 = arith.constant 0 : i32
    return %arg1, %c0_i32, %c0_i32_0 : i32, i32, i32
  }
  func.func @transform_25(%arg0: i32, %arg1: i32) -> (i32, i32, i32) {
    %c0_i32 = arith.constant 0 : i32
    %c0_i32_0 = arith.constant 0 : i32
    %c0_i32_1 = arith.constant 0 : i32
    return %arg1, %c0_i32, %c0_i32_0 : i32, i32, i32
  }
  func.func @transform_26(%arg0: i32, %arg1: i32) -> (i32, i32) {
    %c0_i32 = arith.constant 0 : i32
    %c0_i32_0 = arith.constant 0 : i32
    %c0_i32_1 = arith.constant 0 : i32
    return %c0_i32, %c0_i32_0 : i32, i32
  }
  func.func @transform_27(%arg0: i32, %arg1: i32) -> (i32, i32) {
    %c0_i32 = arith.constant 0 : i32
    %c0_i32_0 = arith.constant 0 : i32
    %c0_i32_1 = arith.constant 0 : i32
    return %c0_i32, %c0_i32_0 : i32, i32
  }
  func.func @transform_28(%arg0: i32, %arg1: i32) -> (i32, i32, i32, i32) {
    %c0_i32 = arith.constant 0 : i32
    %c0_i32_0 = arith.constant 0 : i32
    %c0_i32_1 = arith.constant 0 : i32
    return %arg0, %arg1, %c0_i32, %c0_i32_0 : i32, i32, i32, i32
  }
  func.func @transform_29(%arg0: i32, %arg1: i32) -> (i32, i32, i32, i32) {
    %c0_i32 = arith.constant 0 : i32
    %c0_i32_0 = arith.constant 0 : i32
    %c0_i32_1 = arith.constant 0 : i32
    return %arg0, %arg1, %c0_i32, %c0_i32_0 : i32, i32, i32, i32
  }
  func.func @transform_30(%arg0: i32, %arg1: i32) -> (i32, i32, i32) {
    %c0_i32 = arith.constant 0 : i32
    %c0_i32_0 = arith.constant 0 : i32
    %c0_i32_1 = arith.constant 0 : i32
    return %arg0, %c0_i32, %c0_i32_0 : i32, i32, i32
  }
}

</mosaic_0001>

<bundles_post_ra>
// kernel: tpu_custom_call.1
= control target key start
LH: loop header
LB: loop body
LE: loop exit
PB: predicated region body
PF: predicated region fallthrough
CT: control target
= control target key end

     0   :  { %s5760_s6 = smov 1   ;;  %s5761_s10 = smov 2   ;;  %s7033_s0 = inlined_call_operand.smem [shape: u32[31], index: -1, kind: input, shape index: {}] }
   0x1   :  { %s5841_s5 = sld [smem:[%s7033_s0]]   ;;  %s5762_s14 = smov 3  }
   0x2   :  { %s5846_s9 = sld [smem:[%s7033_s0 + %s5760_s6]]   ;;  %s5763_s18 = smov 4  }
   0x3   :  { %s5851_s13 = sld [smem:[%s7033_s0 + %s5761_s10]]   ;;  %s5764_s22 = smov 5  }
   0x4   :  { %s5856_s17 = sld [smem:[%s7033_s0 + %s5762_s14]]   ;;  %s5765_s26 = smov 6  }
   0x5   :  { %s5861_s21 = sld [smem:[%s7033_s0 + %s5763_s18]]   ;;  %s5766_s30 = smov 7  }
   0x6   :  { %s5866_s25 = sld [smem:[%s7033_s0 + %s5764_s22]]   ;;  %s5767_s4 = smov 8  }
   0x7   :  { %7105 = sst [smem:[#allocation34_spill]] %s5841_s5  ;;  %s5768_s10 = smov 9  }
   0x8   :  { %7106 = sst [smem:[#allocation35_spill]] %s5846_s9  ;;  %s5769_s15 = smov 10  }
   0x9   :  { %7107 = sst [smem:[#allocation36_spill]] %s5851_s13  ;;  %s5770_s20 = smov 11  }
   0xa   :  { %7108 = sst [smem:[#allocation37_spill]] %s5856_s17  ;;  %s5772_s1 = smov 13  }
   0xb   :  { %7109 = sst [smem:[#allocation38_spill]] %s5861_s21  ;;  %s5773_s7 = smov 14  }
   0xc   :  { %7110 = sst [smem:[#allocation39_spill]] %s5866_s25  ;;  %s5775_s22 = smov 16  }
   0xd   :  { %s5871_s29 = sld [smem:[%s7033_s0 + %s5765_s26]]   ;;  %s5771_s26 = smov 12  }
   0xe   :  { %s5876_s3 = sld [smem:[%s7033_s0 + %s5766_s30]]   ;;  %s5776_s28 = smov 17  }
   0xf   :  { %s5881_s8 = sld [smem:[%s7033_s0 + %s5767_s4]]  }
  0x10   :  { %s5886_s14 = sld [smem:[%s7033_s0 + %s5768_s10]]  }
  0x11   :  { %s5891_s19 = sld [smem:[%s7033_s0 + %s5769_s15]]   ;;  %s5774_s15 = smov 15  }
  0x12   :  { %s5896_s24 = sld [smem:[%s7033_s0 + %s5770_s20]]  }
  0x13   :  { %7111 = sst [smem:[#allocation40_spill]] %s5871_s29 }
  0x14   :  { %7112 = sst [smem:[#allocation41_spill]] %s5876_s3 }
  0x15   :  { %7113 = sst [smem:[#allocation42_spill]] %s5881_s8 }
  0x16   :  { %7114 = sst [smem:[#allocation43_spill]] %s5886_s14 }
  0x17   :  { %7115 = sst [smem:[#allocation44_spill]] %s5891_s19 }
  0x18   :  { %7116 = sst [smem:[#allocation45_spill]] %s5896_s24 }
  0x19   :  { %s5901_s30 = sld [smem:[%s7033_s0 + %s5771_s26]]  }
  0x1a   :  { %s5906_s6 = sld [smem:[%s7033_s0 + %s5772_s1]]  }
  0x1b   :  { %s5911_s12 = sld [smem:[%s7033_s0 + %s5773_s7]]   ;;  %s5777_s7 = smov 18  }
  0x1c   :  { %s5916_s20 = sld [smem:[%s7033_s0 + %s5774_s15]]   ;;  %s5778_s15 = smov 19  }
  0x1d   :  { %s5921_s27 = sld [smem:[%s7033_s0 + %s5775_s22]]   ;;  %s5779_s22 = smov 20  }
  0x1e   :  { %s5926_s4 = sld [smem:[%s7033_s0 + %s5776_s28]]   ;;  %s5780_s28 = smov 21  }
  0x1f   :  { %7117 = sst [smem:[#allocation46_spill]] %s5901_s30 }
  0x20   :  { %7118 = sst [smem:[#allocation47_spill]] %s5906_s6 }
  0x21   :  { %7119 = sst [smem:[#allocation48_spill]] %s5911_s12 }
  0x22   :  { %7120 = sst [smem:[#allocation49_spill]] %s5916_s20 }
  0x23   :  { %7121 = sst [smem:[#allocation50_spill]] %s5921_s27 }
  0x24   :  { %7122 = sst [smem:[#allocation51_spill]] %s5926_s4 }
  0x25   :  { %s5931_s21 = sld [smem:[%s7033_s0 + %s5777_s7]]   ;;  %s5781_s7 = smov 22  }
  0x26   :  { %s5936_s12 = sld [smem:[%s7033_s0 + %s5778_s15]]   ;;  %s5782_s15 = smov 23  }
  0x27   :  { %s5941_s27 = sld [smem:[%s7033_s0 + %s5779_s22]]   ;;  %s5783_s22 = smov 24  }
  0x28   :  { %s5946_s6 = sld [smem:[%s7033_s0 + %s5780_s28]]   ;;  %s5784_s28 = smov 25  }
  0x29   :  { %s5951_s30 = sld [smem:[%s7033_s0 + %s5781_s7]]   ;;  %s5785_s7 = smov 26  }
  0x2a   :  { %s5956_s24 = sld [smem:[%s7033_s0 + %s5782_s15]]   ;;  %s5786_s15 = smov 27  }
  0x2b   :  { %7123 = sst [smem:[#allocation52_spill]] %s5931_s21 }
  0x2c   :  { %7124 = sst [smem:[#allocation53_spill]] %s5936_s12 }
  0x2d   :  { %7125 = sst [smem:[#allocation54_spill]] %s5941_s27 }
  0x2e   :  { %7126 = sst [smem:[#allocation55_spill]] %s5946_s6 }
  0x2f   :  { %7127 = sst [smem:[#allocation56_spill]] %s5951_s30 }
  0x30   :  { %7128 = sst [smem:[#allocation57_spill]] %s5956_s24 }
  0x31   :  { %s5961_s8 = sld [smem:[%s7033_s0 + %s5783_s22]]   ;;  %s5787_s22 = smov 28  }
  0x32   :  { %s5966_s6 = sld [smem:[%s7033_s0 + %s5784_s28]]   ;;  %s5788_s28 = smov 29  }
  0x33   :  { %s5971_s30 = sld [smem:[%s7033_s0 + %s5785_s7]]   ;;  %s5789_s7 = smov 30  }
  0x34   :  { %s5976_s24 = sld [smem:[%s7033_s0 + %s5786_s15]]  }
  0x37   :  { %7129 = sst [smem:[#allocation58_spill]] %s5961_s8 }
  0x38   :  { %7130 = sst [smem:[#allocation59_spill]] %s5966_s6 }
  0x39   :  { %7131 = sst [smem:[#allocation60_spill]] %s5971_s30 }
  0x3a   :  { %7132 = sst [smem:[#allocation61_spill]] %s5976_s24 }
  0x3b   :  { %s5981_s8 = sld [smem:[%s7033_s0 + %s5787_s22]]  }
  0x3c   :  { %s5986_s6 = sld [smem:[%s7033_s0 + %s5788_s28]]  }
  0x3d   :  { %s5991_s30 = sld [smem:[%s7033_s0 + %s5789_s7]]  }
  0x41   :  { %7133 = sst [smem:[#allocation62_spill]] %s5981_s8 }
  0x42   :  { %7134 = sst [smem:[#allocation63_spill]] %s5986_s6 }
  0x43   :  { %7135 = sst [smem:[#allocation64_spill]] %s5991_s30 }
  0x44   :  { %67 = vsyncpa [#allocation4], 0 }
  0x45   :  { %69 = vsyncpa [#allocation4 + $0x1], 0 }
  0x46   :  { %70 = vsyncpa [#allocation7], 0 }
  0x47   :  { %72 = vsyncpa [#allocation7 + $0x1], 0 }
  0x48   :  { %73 = vsyncpa [#allocation10], 0 }
  0x49   :  { %75 = vsyncpa [#allocation10 + $0x1], 0 }
  0x4a   :  { %76 = vsyncpa [#allocation13], 0 }
  0x4b   :  { %78 = vsyncpa [#allocation13 + $0x1], 0 }
  0x4c   :  { %79 = vsyncpa [#allocation16], 0 }
  0x4d   :  { %81 = vsyncpa [#allocation16 + $0x1], 0 }
  0x4e   :  { %82 = vsyncpa [#allocation19], 0 }
  0x4f   :  { %84 = vsyncpa [#allocation19 + $0x1], 0 }
  0x50   :  { %85 = vsyncpa [#allocation5], 0 }
  0x51   :  { %87 = vsyncpa [#allocation5 + $0x1], 0 }
  0x52   :  { %88 = vsyncpa [#allocation22], 0 }
  0x53   :  { %90 = vsyncpa [#allocation22 + $0x1], 0  ;;  %s5993_s15 = smov 0   ;;  %s5995_s0 = smov 0  }
  0x54   :  { %s5997_s16 = smov 0   ;;  %s5999_s18 = smov 0  }
  0x55   :  { %s6001_s22 = smov 0   ;;  %s6003_s23 = smov 0  }
  0x56   :  { %s6005_s26 = smov 0   ;;  %s6007_s28 = smov 0  }
  0x57   :  { %s6009_s1 = smov 0   ;;  %s6011_s2 = smov 0  }
  0x58   :  { %s6013_s7 = smov 0   ;;  %s6015_s10 = smov 0  }
  0x59   :  { %s6017_s11 = smov 0   ;;  %s6019_s30 = smov 0  }
  0x5a LB: > { %s7136_s17 = sld [smem:[#allocation37_spill]]  ;;  %s7137_s14 = sld [smem:[#allocation43_spill]]  ;;  %s5738_s1 = sphi %s6009_s1, %s7302_s1   ;;  %s5734_s28 = sphi %s6007_s28, %s7301_s28   ;;  %s5730_s26 = sphi %s6005_s26, %s7300_s26   ;;  %s5726_s23 = sphi %s6003_s23, %s7299_s23   ;;  %s5722_s22 = sphi %s6001_s22, %s7298_s22   ;;  %s5718_s18 = sphi %s5999_s18, %s7297_s18   ;;  %s5714_s16 = sphi %s5997_s16, %s7296_s16   ;;  %s5710_s0 = sphi %s5995_s0, %s7295_s0   ;;  %s5706_s15 = sphi %s5993_s15, %s7294_s15   ;;  %s5758_s30 = sphi %s6019_s30, %s96_s30   ;;  %s5754_s11 = sphi %s6017_s11, %s7306_s11   ;;  %s5750_s10 = sphi %s6015_s10, %s7305_s10   ;;  %s5746_s7 = sphi %s6013_s7, %s7304_s7   ;;  %s5742_s2 = sphi %s6011_s2, %s7308_s2  }
  0x5b   : > { %s7138_s13 = sld [smem:[#allocation36_spill]]  ;;  %s7139_s12 = sld [smem:[#allocation53_spill]] }
  0x5c   : > { %s7140_s4 = sld [smem:[#allocation51_spill]]  ;;  %s7141_s21 = sld [smem:[#allocation52_spill]] }
  0x5d   : > { %s7142_s20 = sld [smem:[#allocation49_spill]]  ;;  %s7144_s25 = sld [smem:[#allocation39_spill]] }
  0x5e   : > { %s7143_s3 = sld [smem:[#allocation41_spill]]  ;;  %7145 = sst [smem:[#allocation65_spill]] %s5706_s15 }
  0x5f   : > { %7146 = sst [smem:[#allocation66_spill]] %s5710_s0  ;;  %s6060_s8 = sadd.s32 4294967295, %s5758_s30  }
  0x60   : > { %7147 = sst [smem:[#allocation67_spill]] %s5714_s16  ;;  %p7039_p0 = scmp.eq.s32.totalorder %s5758_s30, 0 }
  0x61   : > { %7148 = sst [smem:[#allocation68_spill]] %s5722_s22  ;;  %p180_p1 = scmp.ne.s32.totalorder %s5734_s28, %s5730_s26 }
  0x62   : > { %7149 = sst [smem:[#allocation69_spill]] %s5726_s23  ;;  %p7040_p2 = scmp.eq.s32.totalorder %s6060_s8, 0 }
  0x63   : > { %7150 = sst [smem:[#allocation70_spill]] %s5734_s28  ;;  %p294_p3 = scmp.ne.s32.totalorder %s5726_s23, %s5722_s22 }
  0x64   : > { %7151 = sst [smem:[#allocation71_spill]] %s5738_s1  ;;  %p300_p4 = scmp.ne.s32.totalorder %s5722_s22, %s5718_s18 }
  0x65   : > { %7152 = sst [smem:[#allocation72_spill]] %s5742_s2  ;;  %p6074_p5 = por %p7040_p2, %p180_p1 }
  0x66   : > { %7153 = sst [smem:[#allocation73_spill]] %s5746_s7  ;;  %p6081_p6 = por %p294_p3, %p7039_p0 }
  0x67   : > { %7154 = sst [smem:[#allocation74_spill]] %s5750_s10  ;;  %p6087_p7 = por %p300_p4, %p7040_p2 }
  0x68   : > { %7155 = sst [smem:[#allocation75_spill]] %s5754_s11  ;;  %p835_p8 = scmp.ne.s32.totalorder %s5714_s16, %s5710_s0 }
  0x69   : > { %7156 = sst [smem:[#allocation76_spill]] %s5758_s30  ;;  %p7044_p9 = scmp.eq.s32.totalorder %s6060_s8, 3 }
  0x6a   : > { %7157 = sst [smem:[#allocation77_spill]] %s6060_s8  ;;  %p841_p10 = scmp.ne.s32.totalorder %s5710_s0, %s5706_s15 }
  0x6b   : > { %s7158_s29 = scalar_select %p6074_p5, 1, 0 }
  0x6c   : > { %s7161_s9 = scalar_select %p6087_p7, 1, 0 }
  0x6d   : > { %7159 = sst [smem:[#allocation78_spill]] %s7158_s29  ;;  %s7163_s18 = sadd.s32 4294967294, %s5758_s30  }
  0x6e   : > { %7162 = sst [smem:[#allocation79_spill]] %s7161_s9  ;;  %p842_p11 = scmp.eq.s32.totalorder %s7163_s18, 3 }
  0x6f   : > { %p6100_p12 = por %p7044_p9, %p835_p8  ;;  %p4391_p13 = scmp.ge.s32.totalorder %s5758_s30, 1 }
  0x70   : > { %p6105_p3 = por %p842_p11, %p841_p10  ;;  %p6111_p4 = por %p842_p11, %p180_p1 }
  0x71   : > { %s7164_s19 = scalar_select %p6100_p12, 1, 0 }
  0x72   : > { %s7166_s24 = scalar_select %p6105_p3, 1, 0 }
  0x73   : > { %7165 = sst [smem:[#allocation80_spill]] %s7164_s19  ;;  %p903_p0 = scmp.lt.s32.totalorder %s5758_s30, 5 }
  0x74   : > { %7167 = sst [smem:[#allocation81_spill]] %s7166_s24  ;;  %s5790_s15 = smov [#allocation8]  }
  0x75   : > { %s7168_s5 = scalar_select %p6111_p4, 1, 0 }
  0x76   : > { %p6116_p2 = pnand %p4391_p13, %p903_p0  ;;  %s919_s19 = sshll.u32 %s5790_s15, 4  ;;  %s920_s19 = int_to_ptr.vmem [resolvable:$true] %s919_s19 }
  0x77   : > { %7169 = sst [smem:[#allocation82_spill]] %s7168_s5  ;;  %p7049_p8 = scmp.lt.s32.totalorder %s5758_s30, 4 }
  0x78   : > { %s7170_s18 = scalar_select %p6116_p2, 1, 0 }
  0x79   : > { %p4933_p10 = pneg %p6116_p2  ;;  %p6127_p9 = pnand %p7049_p8, %p6081_p6 }
  0x7a   : > { %7171 = sst [smem:[#allocation83_spill]] %s7170_s18  ;;  %p7173_p1 = scmp.eq.s32.totalorder %s6060_s8, 0 }
  0x7b   : > { %s7172_s26 = scalar_select %p6127_p9, 1, 0 }
  0x7c   : > { %p6133_p11 = pnand %p4933_p10, %p7173_p1  ;;  %s6139_s2 = sand.u32 1, %s5758_s30  }
  0x7d   : > { %s5226_s15 = scalar_lea.hbm %s7144_s25, 128 }
  0x7e   : > { %p5227_p0 = scmp.ne.s32.totalorder %s7144_s25, %s5226_s15  ;;  %p5228_p13 = pneg %p6133_p11 }
  0x7f   : > { %p5233_p12 = scmp.lt.u32.totalorder %s5226_s15, %s7144_s25 }
  0x80   : > { %p5229_p4 = pnand %p5228_p13, %p5227_p0 }
  0x82   : > { %p5230_p3 = pneg %p5229_p4 }
  0x84   : > { %p5235_p6 = pnand %p5233_p12, %p5230_p3 }
  0x86   : > { %5238 = shalt.err (!%p5235_p6)
}
  0x87   : > { %s5239_s6 = scalar_lea.vmem %s920_s19, 128  ;;  %p5247_p1 = scmp.lt.s32.totalorder %s920_s19, %s920_s19 }
  0x88   : > { %p5240_p8 = scmp.ne.s32.totalorder %s920_s19, %s5239_s6  ;;  %p5248_p5 = scmp.lt.s32.totalorder %s5239_s6, %s5239_s6 }
  0x8a   : > { %p5242_p7 = pnand %p5240_p8, %p5228_p13  ;;  %p5249_p2 = por %p5248_p5, %p5247_p1 }
  0x8c   : > { %p5243_p10 = pneg %p5242_p7 }
  0x8e   : > { %p5250_p9 = pnand %p5249_p2, %p5243_p10 }
  0x90   : > { %5253 = shalt.err (!%p5250_p9)
}
  0x91   : > { %4936 = dma.hbm_to_vmem [thread:$0]  (!%p6133_p11), %s7144_s25, 128, %s920_s19, [#allocation7]  }
  0x92   : > { %s6150_s15 = sand.u32 1, %s5726_s23   ;;  %s6153_s24 = sshll.u32 %s5750_s10, 4 }
  0x93   : > { %s6157_s6 = scalar_lea.hbm %s7143_s3, %s6153_s24  ;;  %s997_s5 = scalar_lea.vmem [#allocation9], %s6150_s15 }
  0x94   : > { %s1004_s7 = sshll.u32 %s997_s5, 4  ;;  %s5254_s9 = scalar_lea.hbm %s6157_s6, 16  ;;  %s6160_s7 = int_to_ptr.vmem [resolvable:$true] %s1004_s7 }
  0x95   : > { %p5255_p2 = scmp.ne.s32.totalorder %s6157_s6, %s5254_s9  ;;  %p7175_p5 = scmp.ne.s32.totalorder %s7172_s26, 0 }
  0x96   : > { %s5259_s25 = scalar_lea.hbm %s7143_s3, 32  ;;  %p5260_p3 = scmp.lt.u32.totalorder %s6157_s6, %s7143_s3 }
  0x97   : > { %p6167_p7 = pneg %p7175_p5  ;;  %p5261_p4 = scmp.lt.u32.totalorder %s5259_s25, %s5254_s9 }
  0x98   : > { %p5263_p11 = scmp.lt.u32.totalorder %s5254_s9, %s6157_s6 }
  0x99   : > { %s7176_s19 = scalar_select %p6167_p7, 1, 0 }
  0x9a   : > { %p5257_p9 = pnand %p6167_p7, %p5255_p2  ;;  %p5262_p8 = por %p5261_p4, %p5260_p3 }
  0x9c   : > { %p5258_p12 = pneg %p5257_p9  ;;  %p5264_p0 = por %p5263_p11, %p5262_p8 }
  0x9e   : > { %p5265_p13 = pnand %p5264_p0, %p5258_p12 }
  0xa0   : > { %5268 = shalt.err (!%p5265_p13)
}
  0xa1   : > { %s5269_s5 = scalar_lea.vmem %s6160_s7, 16  ;;  %s5791_s0 = smov [#allocation9]  }
  0xa2   : > { %p5270_p6 = scmp.ne.s32.totalorder %s6160_s7, %s5269_s5  ;;  %s5274_s22 = sshll.u32 %s5791_s0, 4  ;;  %s5275_s22 = int_to_ptr.vmem [resolvable:$false] %s5274_s22 }
  0xa3   : > { %s5276_s29 = scalar_lea.vmem %s5275_s22, 32  ;;  %p5277_p2 = scmp.lt.s32.totalorder %s6160_s7, %s5275_s22 }
  0xa4   : > { %p5272_p10 = pnand %p5270_p6, %p6167_p7  ;;  %p5278_p9 = scmp.lt.s32.totalorder %s5276_s29, %s5269_s5 }
  0xa6   : > { %p5273_p1 = pneg %p5272_p10  ;;  %p5279_p3 = por %p5278_p9, %p5277_p2 }
  0xa8   : > { %p5280_p4 = pnand %p5279_p3, %p5273_p1 }
  0xaa   : > { %5283 = shalt.err (!%p5280_p4)
}
  0xab   : > { %s7177_s9 = scalar_lea.sflag [#allocation10], %s6139_s2  ;;  %s6190_s25 = scalar_lea.hbm %s7142_s20, %s6153_s24 }
  0xac   : > { %4946 = dma.hbm_to_vmem [thread:$0]  (!%p7175_p5), %s6157_s6, 16, %s6160_s7, %s7177_s9  }
  0xad   : > { %s1073_s29 = scalar_lea.vmem [#allocation12], %s6150_s15  ;;  %s7066_s22 = scalar_lea.sflag [#allocation13], %s6139_s2 }
  0xae   : > { %s1080_s0 = sshll.u32 %s1073_s29, 4  ;;  %s5284_s5 = scalar_lea.hbm %s6190_s25, 16  ;;  %s1081_s0 = int_to_ptr.vmem [resolvable:$true] %s1080_s0 }
  0xaf   : > { %p5285_p12 = scmp.ne.s32.totalorder %s6190_s25, %s5284_s5  ;;  %s5289_s3 = scalar_lea.hbm %s7142_s20, 32 }
  0xb0   : > { %p5290_p0 = scmp.lt.u32.totalorder %s6190_s25, %s7142_s20  ;;  %p5291_p13 = scmp.lt.u32.totalorder %s5289_s3, %s5284_s5 }
  0xb1   : > { %p5287_p8 = pnand %p5285_p12, %p6167_p7  ;;  %p5293_p10 = scmp.lt.u32.totalorder %s5284_s5, %s6190_s25 }
  0xb2   : > { %p5292_p6 = por %p5291_p13, %p5290_p0 }
  0xb3   : > { %p5288_p11 = pneg %p5287_p8 }
  0xb4   : > { %p5294_p1 = por %p5293_p10, %p5292_p6 }
  0xb6   : > { %p5295_p2 = pnand %p5294_p1, %p5288_p11 }
  0xb8   : > { %5298 = shalt.err (!%p5295_p2)
}
  0xb9   : > { %s5299_s7 = scalar_lea.vmem %s1081_s0, 16  ;;  %s5792_s6 = smov [#allocation12]  }
  0xba   : > { %p5300_p9 = scmp.ne.s32.totalorder %s1081_s0, %s5299_s7  ;;  %s5304_s9 = sshll.u32 %s5792_s6, 4  ;;  %s5305_s9 = int_to_ptr.vmem [resolvable:$false] %s5304_s9 }
  0xbb   : > { %s5306_s29 = scalar_lea.vmem %s5305_s9, 32  ;;  %p5307_p12 = scmp.lt.s32.totalorder %s1081_s0, %s5305_s9 }
  0xbc   : > { %p5302_p3 = pnand %p5300_p9, %p6167_p7  ;;  %p5308_p8 = scmp.lt.s32.totalorder %s5306_s29, %s5299_s7 }
  0xbe   : > { %p5303_p4 = pneg %p5302_p3  ;;  %p5309_p5 = por %p5308_p8, %p5307_p12 }
  0xc0   : > { %p5310_p0 = pnand %p5309_p5, %p5303_p4 }
  0xc2   : > { %5313 = shalt.err (!%p5310_p0)
}
  0xc3   : > { %p7178_p13 = scmp.ne.s32.totalorder %s7172_s26, 0  ;;  %s6211_s3 = scalar_lea.hbm %s7141_s21, %s6153_s24 }
  0xc4   : > { %s1115_s5 = scalar_lea.vmem [#allocation15], %s6150_s15  ;;  %s7067_s6 = scalar_lea.sflag [#allocation16], %s6139_s2 }
  0xc5   : > { %4952 = dma.hbm_to_vmem [thread:$0]  (!%p7178_p13), %s6190_s25, 16, %s1081_s0, %s7066_s22  }
  0xc6   : > { %s1122_s7 = sshll.u32 %s1115_s5, 4  ;;  %s5314_s9 = scalar_lea.hbm %s6211_s3, 16  ;;  %s1123_s7 = int_to_ptr.vmem [resolvable:$true] %s1122_s7 }
  0xc7   : > { %p5315_p5 = scmp.ne.s32.totalorder %s6211_s3, %s5314_s9  ;;  %s5319_s29 = scalar_lea.hbm %s7141_s21, 32 }
  0xc8   : > { %p5320_p10 = scmp.lt.u32.totalorder %s6211_s3, %s7141_s21  ;;  %p5321_p1 = scmp.lt.u32.totalorder %s5319_s29, %s5314_s9 }
  0xc9   : > { %p5317_p11 = pnand %p5315_p5, %p6167_p7  ;;  %p5323_p9 = scmp.lt.u32.totalorder %s5314_s9, %s6211_s3 }
  0xca   : > { %p5322_p2 = por %p5321_p1, %p5320_p10 }
  0xcb   : > { %p5318_p6 = pneg %p5317_p11 }
  0xcc   : > { %p5324_p3 = por %p5323_p9, %p5322_p2 }
  0xce   : > { %p5325_p4 = pnand %p5324_p3, %p5318_p6 }
  0xd0   : > { %5328 = shalt.err (!%p5325_p4)
}
  0xd1   : > { %s5329_s25 = scalar_lea.vmem %s1123_s7, 16  ;;  %s5793_s0 = smov [#allocation15]  }
  0xd2   : > { %p5330_p12 = scmp.ne.s32.totalorder %s1123_s7, %s5329_s25  ;;  %s5334_s5 = sshll.u32 %s5793_s0, 4  ;;  %s5335_s5 = int_to_ptr.vmem [resolvable:$false] %s5334_s5 }
  0xd3   : > { %s5336_s22 = scalar_lea.vmem %s5335_s5, 32  ;;  %p5337_p5 = scmp.lt.s32.totalorder %s1123_s7, %s5335_s5 }
  0xd4   : > { %p5332_p8 = pnand %p5330_p12, %p6167_p7  ;;  %p5338_p11 = scmp.lt.s32.totalorder %s5336_s22, %s5329_s25 }
  0xd6   : > { %p5333_p0 = pneg %p5332_p8  ;;  %p5339_p13 = por %p5338_p11, %p5337_p5 }
  0xd8   : > { %p5340_p1 = pnand %p5339_p13, %p5333_p0 }
  0xda   : > { %5343 = shalt.err (!%p5340_p1)
}
  0xdb   : > { %p7179_p10 = scmp.ne.s32.totalorder %s7172_s26, 0  ;;  %s7180_s22 = sadd.s32 1, %s5750_s10 }
  0xdc   : > { %p106_p13 = scmp.ge.s32.totalorder %s7180_s22, 2  ;;  %s108_s9 = sadd.s32 1, %s5754_s11 }
  0xdd   : > { %4958 = dma.hbm_to_vmem [thread:$0]  (!%p7179_p10), %s6211_s3, 16, %s1123_s7, %s7067_s6  }
  0xde   : > { %s167_s29 = sadd.s32 1, %s5738_s1  ;;  %p174_p6 = scmp.ne.s32.totalorder %s5738_s1, %s5734_s28 }
  0xdf   : > { %s7181_s25 = smov %s7180_s22  ;;  %s7312_s9 = smov (!%p106_p13, %s108_s9), %s5754_s11 }
  0xe0   : > { %s7310_s25 = smov (%p106_p13, %s7181_s25), 0  ;;  %p7183_p2 = scmp.eq.s32.totalorder %s5758_s30, 0 }
  0xe1   : > { %7182 = sst [smem:[#allocation84_spill]] %s7310_s25  ;;  %s284_s3 = ssub.s32 %s5750_s10, %s7310_s25 }
  0xe2   : > { %p6243_p9 = por %p7183_p2, %p174_p6  ;;  %p110_p3 = scmp.ge.s32.totalorder %s7312_s9, 2 }
  0xe3   : > { %p285_p4 = scmp.eq.s32.totalorder %s284_s3, 0  ;;  %p7185_p12 = scmp.eq.s32.totalorder %s6060_s8, 3 }
  0xe4   : > { %s6256_s5 = sand.u32 1, %s5738_s1   ;;  %s7314_s9 = smov (%p110_p3, %s7312_s9), 0 }
  0xe5   : > { %p6251_p8 = por %p7185_p12, %p174_p6  ;;  %7188 = sst [smem:[#allocation86_spill]] %s7314_s9 }
  0xe6   : > { %s7189_s22 = sadd.s32 1, %s5726_s23  ;;  %s164_s20 = ssub.s32 %s5754_s11, %s7314_s9 }
  0xe7   : > { %s7186_s7 = scalar_select %p6251_p8, 1, 0 }
  0xe8   : > { %s6263_s6 = scalar_select %p285_p4, %s5726_s23, %s7189_s22  }
  0xe9   : > { %7187 = sst [smem:[#allocation85_spill]] %s7186_s7  ;;  %p165_p0 = scmp.eq.s32.totalorder %s164_s20, 0 }
  0xea   : > { %7190 = sst [smem:[#allocation87_spill]] %s6263_s6  ;;  %s822_s21 = sor.u32 %s284_s3, %s164_s20 }
  0xeb   : > { %p823_p5 = scmp.eq.s32.totalorder %s822_s21, 0  ;;  %s4394_s25 = sshll.u32 %s6256_s5, 3 }
  0xec   : > { %s6269_s7 = scalar_select %p165_p0, %s5738_s1, %s167_s29  }
  0xed   : > { %s7192_s8 = sadd.s32 1, %s5714_s16  ;;  %s4395_s18 = sshll.u32 %s5754_s11, 7 }
  0xee   : > { %7191 = sst [smem:[#allocation88_spill]] %s6269_s7  ;;  %s6278_s27 = scalar_lea.hbm %s7138_s13, %s4395_s18 }
  0xef   : > { %s6274_s28 = scalar_select %p823_p5, %s5714_s16, %s7192_s8  }
  0xf0   : > { %s955_s22 = scalar_lea.vmem [#allocation3], %s4394_s25  ;;  %p7194_p11 = scmp.lt.s32.totalorder %s5758_s30, 4 }
  0xf1   : > { %7193 = sst [smem:[#allocation89_spill]] %s6274_s28  ;;  %s962_s9 = sshll.u32 %s955_s22, 4  ;;  %s6280_s9 = int_to_ptr.vmem [resolvable:$true] %s962_s9 }
  0xf2   : > { %p6286_p1 = pnand %p7194_p11, %p6243_p9  ;;  %s4396_s8 = sshll.u32 %s5754_s11, 4 }
  0xf3   : > { %s952_s20 = scalar_lea.sflag [#allocation4], %s6256_s5  ;;  %s5344_s18 = scalar_lea.hbm %s6278_s27, 128 }
  0xf4   : > { %p5345_p13 = scmp.ne.s32.totalorder %s6278_s27, %s5344_s18  ;;  %p5346_p6 = pneg %p6286_p1 }
  0xf5   : > { %s5349_s29 = scalar_lea.hbm %s7138_s13, 256  ;;  %p5350_p4 = scmp.lt.u32.totalorder %s6278_s27, %s7138_s13 }
  0xf6   : > { %p5347_p2 = pnand %p5346_p6, %p5345_p13  ;;  %p5351_p12 = scmp.lt.u32.totalorder %s5349_s29, %s5344_s18 }
  0xf7   : > { %p5353_p9 = scmp.lt.u32.totalorder %s5344_s18, %s6278_s27 }
  0xf8   : > { %p5348_p3 = pneg %p5347_p2  ;;  %p5352_p0 = por %p5351_p12, %p5350_p4 }
  0xfa   : > { %p5354_p5 = por %p5353_p9, %p5352_p0 }
  0xfc   : > { %p5355_p11 = pnand %p5354_p5, %p5348_p3 }
  0xfe   : > { %5358 = shalt.err (!%p5355_p11)
}
  0xff   : > { %s5359_s25 = scalar_lea.vmem %s6280_s9, 128  ;;  %s5794_s0 = smov [#allocation3]  }
 0x100   : > { %p5360_p8 = scmp.ne.s32.totalorder %s6280_s9, %s5359_s25  ;;  %s5364_s3 = sshll.u32 %s5794_s0, 4  ;;  %s5365_s3 = int_to_ptr.vmem [resolvable:$false] %s5364_s3 }
 0x101   : > { %s5366_s22 = scalar_lea.vmem %s5365_s3, 256  ;;  %p5367_p13 = scmp.lt.s32.totalorder %s6280_s9, %s5365_s3 }
 0x102   : > { %p5362_p10 = pnand %p5360_p8, %p5346_p6  ;;  %p5368_p2 = scmp.lt.s32.totalorder %s5366_s22, %s5359_s25 }
 0x104   : > { %p5363_p7 = pneg %p5362_p10  ;;  %p5369_p4 = por %p5368_p2, %p5367_p13 }
 0x106   : > { %p5370_p12 = pnand %p5369_p4, %p5363_p7 }
 0x108   : > { %5373 = shalt.err (!%p5370_p12)
}
 0x109   : > { %4940 = dma.hbm_to_vmem [thread:$0]  (!%p6286_p1), %s6278_s27, 128, %s6280_s9, %s952_s20  }
 0x10a   : > { %s6316_s18 = scalar_lea.hbm %s7136_s17, %s4396_s8  ;;  %s972_s29 = scalar_lea.vmem [#allocation6], %s6256_s5 }
 0x10b   : > { %s979_s25 = sshll.u32 %s972_s29, 4  ;;  %s970_s0 = scalar_lea.sflag [#allocation7], %s6139_s2  ;;  %s980_s25 = int_to_ptr.vmem [resolvable:$true] %s979_s25 }
 0x10c   : > { %s5374_s3 = scalar_lea.hbm %s6316_s18, 16  ;;  %s5379_s22 = scalar_lea.hbm %s7136_s17, 32 }
 0x10d   : > { %p5375_p7 = scmp.ne.s32.totalorder %s6316_s18, %s5374_s3  ;;  %p5380_p3 = scmp.lt.u32.totalorder %s6316_s18, %s7136_s17 }
 0x10e   : > { %p5381_p0 = scmp.lt.u32.totalorder %s5379_s22, %s5374_s3  ;;  %p5383_p5 = scmp.lt.u32.totalorder %s5374_s3, %s6316_s18 }
 0x10f   : > { %p5377_p10 = pnand %p5375_p7, %p5346_p6 }
 0x110   : > { %p5382_p9 = por %p5381_p0, %p5380_p3 }
 0x111   : > { %p5378_p8 = pneg %p5377_p10 }
 0x112   : > { %p5384_p11 = por %p5383_p5, %p5382_p9 }
 0x114   : > { %p5385_p13 = pnand %p5384_p11, %p5378_p8 }
 0x116   : > { %5388 = shalt.err (!%p5385_p13)
}
 0x117   : > { %s5389_s27 = scalar_lea.vmem %s980_s25, 16  ;;  %s5795_s9 = smov [#allocation6]  }
 0x118   : > { %p5390_p2 = scmp.ne.s32.totalorder %s980_s25, %s5389_s27  ;;  %s5394_s5 = sshll.u32 %s5795_s9, 4  ;;  %s5395_s5 = int_to_ptr.vmem [resolvable:$false] %s5394_s5 }
 0x119   : > { %s5396_s8 = scalar_lea.vmem %s5395_s5, 32  ;;  %p5397_p7 = scmp.lt.s32.totalorder %s980_s25, %s5395_s5 }
 0x11a   : > { %p5392_p4 = pnand %p5390_p2, %p5346_p6  ;;  %p5398_p10 = scmp.lt.s32.totalorder %s5396_s8, %s5389_s27 }
 0x11c   : > { %p5393_p12 = pneg %p5392_p4  ;;  %p5399_p0 = por %p5398_p10, %p5397_p7 }
 0x11e   : > { %p5400_p3 = pnand %p5399_p0, %p5393_p12 }
 0x120   : > { %5403 = shalt.err (!%p5400_p3)
}
 0x121   : > { %4943 = dma.hbm_to_vmem [thread:$0]  (!%p6286_p1), %s6316_s18, 16, %s980_s25, %s970_s0  }
 0x122   : > { %s6337_s20 = scalar_lea.hbm %s7137_s14, %s6153_s24  ;;  %s1022_s29 = scalar_lea.vmem [#allocation11], %s6150_s15 }
 0x123   : > { %s1029_s3 = sshll.u32 %s1022_s29, 4  ;;  %s5404_s22 = scalar_lea.hbm %s6337_s20, 16  ;;  %s1030_s3 = int_to_ptr.vmem [resolvable:$true] %s1029_s3 }
 0x124   : > { %p5405_p6 = scmp.ne.s32.totalorder %s6337_s20, %s5404_s22  ;;  %p7196_p8 = scmp.ne.s32.totalorder %s7176_s19, 0 }
 0x125   : > { %s5409_s21 = scalar_lea.hbm %s7137_s14, 32  ;;  %p5410_p11 = scmp.lt.u32.totalorder %s6337_s20, %s7137_s14 }
 0x126   : > { %p5407_p9 = pnand %p5405_p6, %p7196_p8  ;;  %p5411_p13 = scmp.lt.u32.totalorder %s5409_s21, %s5404_s22 }
 0x127   : > { %p5413_p4 = scmp.lt.u32.totalorder %s5404_s22, %s6337_s20 }
 0x128   : > { %p5408_p5 = pneg %p5407_p9  ;;  %p5412_p2 = por %p5411_p13, %p5410_p11 }
 0x12a   : > { %p5414_p1 = por %p5413_p4, %p5412_p2 }
 0x12c   : > { %p5415_p12 = pnand %p5414_p1, %p5408_p5 }
 0x12e   : > { %5418 = shalt.err (!%p5415_p12)
}
 0x12f   : > { %s5419_s18 = scalar_lea.vmem %s1030_s3, 16  ;;  %s5796_s25 = smov [#allocation11]  }
 0x130   : > { %p5420_p7 = scmp.ne.s32.totalorder %s1030_s3, %s5419_s18  ;;  %s5424_s0 = sshll.u32 %s5796_s25, 4  ;;  %s5425_s0 = int_to_ptr.vmem [resolvable:$false] %s5424_s0 }
 0x131   : > { %s5426_s27 = scalar_lea.vmem %s5425_s0, 32  ;;  %p5427_p3 = scmp.lt.s32.totalorder %s1030_s3, %s5425_s0 }
 0x132   : > { %p5422_p10 = pnand %p5420_p7, %p7196_p8  ;;  %p5428_p6 = scmp.lt.s32.totalorder %s5426_s27, %s5419_s18 }
 0x134   : > { %p5423_p0 = pneg %p5422_p10  ;;  %p5429_p9 = por %p5428_p6, %p5427_p3 }
 0x136   : > { %p5430_p11 = pnand %p5429_p9, %p5423_p0 }
 0x138   : > { %5433 = shalt.err (!%p5430_p11)
}
 0x139   : > { %p7197_p13 = scmp.ne.s32.totalorder %s7172_s26, 0  ;;  %s7198_s9 = scalar_lea.sflag [#allocation10], %s6139_s2 }
 0x13a   : > { %s6357_s5 = scalar_lea.hbm %s7140_s4, %s6153_s24  ;;  %s1098_s8 = scalar_lea.vmem [#allocation14], %s6150_s15 }
 0x13b   : > { %4949 = dma.hbm_to_vmem [thread:$0]  (!%p7197_p13), %s6337_s20, 16, %s1030_s3, %s7198_s9  }
 0x13c   : > { %s1105_s29 = sshll.u32 %s1098_s8, 4  ;;  %s5434_s22 = scalar_lea.hbm %s6357_s5, 16  ;;  %s1106_s29 = int_to_ptr.vmem [resolvable:$true] %s1105_s29 }
 0x13d   : > { %p5435_p5 = scmp.ne.s32.totalorder %s6357_s5, %s5434_s22  ;;  %s5439_s21 = scalar_lea.hbm %s7140_s4, 32 }
 0x13e   : > { %p5440_p1 = scmp.lt.u32.totalorder %s6357_s5, %s7140_s4  ;;  %p5441_p12 = scmp.lt.u32.totalorder %s5439_s21, %s5434_s22 }
 0x13f   : > { %p5437_p2 = pnand %p5435_p5, %p7196_p8  ;;  %p5443_p10 = scmp.lt.u32.totalorder %s5434_s22, %s6357_s5 }
 0x140   : > { %p5442_p7 = por %p5441_p12, %p5440_p1 }
 0x141   : > { %p5438_p4 = pneg %p5437_p2 }
 0x142   : > { %p5444_p0 = por %p5443_p10, %p5442_p7 }
 0x144   : > { %p5445_p3 = pnand %p5444_p0, %p5438_p4 }
 0x146   : > { %5448 = shalt.err (!%p5445_p3)
}
 0x147   : > { %s5449_s20 = scalar_lea.vmem %s1106_s29, 16  ;;  %s5797_s3 = smov [#allocation14]  }
 0x148   : > { %p5450_p6 = scmp.ne.s32.totalorder %s1106_s29, %s5449_s20  ;;  %s5454_s18 = sshll.u32 %s5797_s3, 4  ;;  %s5455_s18 = int_to_ptr.vmem [resolvable:$false] %s5454_s18 }
 0x149   : > { %s5456_s25 = scalar_lea.vmem %s5455_s18, 32  ;;  %p5457_p5 = scmp.lt.s32.totalorder %s1106_s29, %s5455_s18 }
 0x14a   : > { %p5452_p9 = pnand %p5450_p6, %p7196_p8  ;;  %p5458_p2 = scmp.lt.s32.totalorder %s5456_s25, %s5449_s20 }
 0x14c   : > { %p5453_p11 = pneg %p5452_p9  ;;  %p5459_p13 = por %p5458_p2, %p5457_p5 }
 0x14e   : > { %p5460_p1 = pnand %p5459_p13, %p5453_p11 }
 0x150   : > { %5463 = shalt.err (!%p5460_p1)
}
 0x151   : > { %p7199_p12 = scmp.ne.s32.totalorder %s7172_s26, 0  ;;  %s7200_s0 = scalar_lea.sflag [#allocation13], %s6139_s2 }
 0x152   : > { %s6377_s27 = scalar_lea.hbm %s7139_s12, %s6153_s24  ;;  %s1132_s9 = scalar_lea.vmem [#allocation17], %s6150_s15 }
 0x153   : > { %4955 = dma.hbm_to_vmem [thread:$0]  (!%p7199_p12), %s6357_s5, 16, %s1106_s29, %s7200_s0  }
 0x154   : > { %s1139_s8 = sshll.u32 %s1132_s9, 4  ;;  %s5464_s22 = scalar_lea.hbm %s6377_s27, 16  ;;  %s1140_s8 = int_to_ptr.vmem [resolvable:$true] %s1139_s8 }
 0x155   : > { %p5465_p13 = scmp.ne.s32.totalorder %s6377_s27, %s5464_s22  ;;  %s5469_s21 = scalar_lea.hbm %s7139_s12, 32 }
 0x156   : > { %p5470_p10 = scmp.lt.u32.totalorder %s6377_s27, %s7139_s12  ;;  %p5471_p0 = scmp.lt.u32.totalorder %s5469_s21, %s5464_s22 }
 0x157   : > { %p5467_p4 = pnand %p5465_p13, %p7196_p8  ;;  %p5473_p6 = scmp.lt.u32.totalorder %s5464_s22, %s6377_s27 }
 0x158   : > { %p5472_p3 = por %p5471_p0, %p5470_p10 }
 0x159   : > { %p5468_p7 = pneg %p5467_p4 }
 0x15a   : > { %p5474_p9 = por %p5473_p6, %p5472_p3 }
 0x15c   : > { %p5475_p11 = pnand %p5474_p9, %p5468_p7 }
 0x15e   : > { %5478 = shalt.err (!%p5475_p11)
}
 0x15f   : > { %s5479_s24 = scalar_lea.vmem %s1140_s8, 16  ;;  %s5798_s5 = smov [#allocation17]  }
 0x160   : > { %p5480_p5 = scmp.ne.s32.totalorder %s1140_s8, %s5479_s24  ;;  %s5484_s29 = sshll.u32 %s5798_s5, 4  ;;  %s5485_s29 = int_to_ptr.vmem [resolvable:$false] %s5484_s29 }
 0x161   : > { %s5486_s20 = scalar_lea.vmem %s5485_s29, 32  ;;  %p5487_p13 = scmp.lt.s32.totalorder %s1140_s8, %s5485_s29 }
 0x162   : > { %p5482_p2 = pnand %p5480_p5, %p7196_p8  ;;  %p5488_p4 = scmp.lt.s32.totalorder %s5486_s20, %s5479_s24 }
 0x164   : > { %p5483_p1 = pneg %p5482_p2  ;;  %p5489_p12 = por %p5488_p4, %p5487_p13 }
 0x166   : > { %p5490_p0 = pnand %p5489_p12, %p5483_p1 }
 0x168   : > { %5493 = shalt.err (!%p5490_p0)
}
 0x169   : > { %p7201_p10 = scmp.ne.s32.totalorder %s7172_s26, 0  ;;  %s7202_s3 = scalar_lea.sflag [#allocation16], %s6139_s2 }
 0x16a   : > { %s7203_s18 = sld [smem:[#allocation54_spill]]  ;;  %s4403_s0 = sshll.u32 %s6150_s15, 5 }
 0x16b   : > { %4961 = dma.hbm_to_vmem [thread:$0]  (!%p7201_p10), %s6377_s27, 16, %s1140_s8, %s7202_s3  }
 0x16c   : > { %s4498_s9 = sshll.u32 %s5750_s10, 9  ;;  %s1150_s21 = scalar_lea.vmem [#allocation18], %s4403_s0 }
 0x16d   : > { %s1157_s24 = sshll.u32 %s1150_s21, 4  ;;  %s1147_s2 = scalar_lea.sflag [#allocation19], %s6150_s15  ;;  %s6400_s24 = int_to_ptr.vmem [resolvable:$true] %s1157_s24 }
 0x170   : > { %s7204_s25 = smov %s7203_s18  ;;  %s6398_s22 = scalar_lea.hbm %s7203_s18, %s4498_s9 }
 0x171   : > { %s5494_s5 = scalar_lea.hbm %s6398_s22, 512  ;;  %s5499_s29 = scalar_lea.hbm %s7204_s25, 1024 }
 0x172   : > { %p5495_p12 = scmp.ne.s32.totalorder %s6398_s22, %s5494_s5  ;;  %p5500_p6 = scmp.lt.u32.totalorder %s6398_s22, %s7204_s25 }
 0x173   : > { %p5501_p9 = scmp.lt.u32.totalorder %s5499_s29, %s5494_s5  ;;  %p5503_p5 = scmp.lt.u32.totalorder %s5494_s5, %s6398_s22 }
 0x174   : > { %p5497_p7 = pnand %p5495_p12, %p7196_p8 }
 0x175   : > { %p5502_p11 = por %p5501_p9, %p5500_p6 }
 0x176   : > { %p5498_p3 = pneg %p5497_p7 }
 0x177   : > { %p5504_p2 = por %p5503_p5, %p5502_p11 }
 0x179   : > { %p5505_p1 = pnand %p5504_p2, %p5498_p3 }
 0x17b   : > { %5508 = shalt.err (!%p5505_p1)
}
 0x17c   : > { %s5509_s27 = scalar_lea.vmem %s6400_s24, 512  ;;  %s5799_s8 = smov [#allocation18]  }
 0x17d   : > { %p5510_p13 = scmp.ne.s32.totalorder %s6400_s24, %s5509_s27  ;;  %s5514_s20 = sshll.u32 %s5799_s8, 4  ;;  %s5515_s20 = int_to_ptr.vmem [resolvable:$false] %s5514_s20 }
 0x17e   : > { %s5516_s3 = scalar_lea.vmem %s5515_s20, 1024  ;;  %p5517_p12 = scmp.lt.s32.totalorder %s6400_s24, %s5515_s20 }
 0x17f   : > { %p5512_p4 = pnand %p5510_p13, %p7196_p8  ;;  %p5518_p7 = scmp.lt.s32.totalorder %s5516_s3, %s5509_s27 }
 0x181   : > { %p5513_p0 = pneg %p5512_p4  ;;  %p5519_p6 = por %p5518_p7, %p5517_p12 }
 0x183   : > { %p5520_p9 = pnand %p5519_p6, %p5513_p0 }
 0x185   : > { %5523 = shalt.err (!%p5520_p9)
}
 0x186   : > { %s5800_s18 = smov 128   ;;  %s5801_s0 = smov 8  }
 0x187   : > { %4964 = dma.hbm_to_vmem [thread:$0]  (!%p7201_p10), %s6398_s22, 512, %s6400_s24, %s1147_s2, %s5800_s18, %s5800_s18, %s5801_s0  }
 0x188   : > { %s7205_s19 = sld [smem:[#allocation83_spill]] }
 0x18e   : > { %p7206_p8 = scmp.ne.s32.totalorder %s7205_s19, 0 }
 0x190   : > { %1201 = sbr.rel (%p7206_p8) target bundleno = 6445 (0x192d), region = 132 }
 0x197   : > { %s7207_s9 = sld [smem:[#allocation70_spill]]  ;;  %s7208_s21 = sld [smem:[#allocation78_spill]] }
 0x19d   : > { %s6425_s5 = sand.u32 1, %s7207_s9   ;;  %p7210_p3 = scmp.ne.s32.totalorder %s7208_s21, 0 }
 0x19e   : > { %s7082_s29 = sshll.u32 %s6425_s5, 3  ;;  %s1204_s27 = scalar_lea.sflag [#allocation4], %s6425_s5 }
 0x19f   : > { %s6431_s8 = scalar_lea.vmem [#allocation3], %s7082_s29 }
 0x1a0   : > { %7209 = sst [smem:[#allocation90_spill]] %s6431_s8 }
 0x1a1   : > { %5665 = dma.done.wait (%p7210_p3), %s1204_s27, 128  }
 0x1a2   : > { %5667 = vsyncadd (%p7210_p3), %s1204_s27, 4294967168  ;;  %s7211_s26 = sld [smem:[#allocation77_spill]] }
 0x1a8   : > { %s6438_s15 = sand.u32 1, %s7211_s26  }
 0x1a9   : > { %7212 = sst [smem:[#allocation91_spill]] %s6438_s15  ;;  %s1213_s22 = scalar_lea.sflag [#allocation7], %s6438_s15 }
 0x1aa   : > { %5669 = dma.done.wait (%p7210_p3), %s1213_s22, 16  }
 0x1ab   : > { %5671 = vsyncadd (%p7210_p3), %s1213_s22, 4294967280  ;;  %p7213_p10 = scmp.eq.s32.totalorder %s7211_s26, 0 }
 0x1ad   : > { %5673 = dma.done.wait (%p7213_p10), [#allocation7], 128   ;;  %p7214_p11 = pmov %p7213_p10 }
 0x1ae   : > { %s7215_s2 = sld [smem:[#allocation68_spill]]  ;;  %s7216_s20 = sld [smem:[#allocation79_spill]] }
 0x1af   : > { %5675 = vsyncadd (%p7214_p11), [#allocation7], 4294967168  ;;  %s1225_s18 = scalar_lea.sflag [#allocation10], %s6438_s15 }
 0x1b4   : > { %s6451_s3 = sand.u32 1, %s7215_s2   ;;  %p7218_p5 = scmp.ne.s32.totalorder %s7216_s20, 0 }
 0x1b5   : > { %7217 = sst [smem:[#allocation92_spill]] %s6451_s3 }
 0x1b6   : > { %5677 = dma.done.wait (%p7218_p5), %s1225_s18, 32  }
 0x1b7   : > { %5679 = vsyncadd (%p7218_p5), %s1225_s18, 4294967264  ;;  %s1241_s9 = scalar_lea.sflag [#allocation13], %s6438_s15 }
 0x1b8   : > { %5681 = dma.done.wait (%p7218_p5), %s1241_s9, 32  }
 0x1b9   : > { %5683 = vsyncadd (%p7218_p5), %s1241_s9, 4294967264  ;;  %s1257_s26 = scalar_lea.sflag [#allocation16], %s6438_s15 }
 0x1ba   : > { %5685 = dma.done.wait (%p7218_p5), %s1257_s26, 32  }
 0x1bb   : > { %5687 = vsyncadd (%p7218_p5), %s1257_s26, 4294967264  ;;  %s4409_s2 = sshll.u32 %s6451_s3, 5  ;;  %s1273_s24 = scalar_lea.sflag [#allocation19], %s6451_s3 }
 0x1bc   : > { %s6476_s9 = scalar_lea.vmem [#allocation18], %s4409_s2 }
 0x1bd   : > { %7219 = sst [smem:[#allocation93_spill]] %s6476_s9 }
 0x1be   : > { %5689 = dma.done.wait (%p7218_p5), %s1273_s24, 512  }
 0x1bf   : > { %5691 = vsyncadd (%p7218_p5), %s1273_s24, 4294966784  ;;  %s7220_s22 = sld [smem:[#allocation66_spill]]  ;;  %s7221_s27 = sld [smem:[#allocation73_spill]] }
 0x1c0   : > { %s7222_s21 = sld [smem:[#allocation72_spill]]  ;;  %s7223_s26 = sld [smem:[#allocation34_spill]] }
 0x1c1   : > { %s7224_s19 = sld [smem:[#allocation35_spill]]  ;;  %s7226_s29 = sld [smem:[#allocation40_spill]] }
 0x1c2   : > { %s7227_s4 = sld [smem:[#allocation42_spill]]  ;;  %s7228_s18 = sld [smem:[#allocation45_spill]] }
 0x1c3   : > { %s7229_s12 = sld [smem:[#allocation46_spill]]  ;;  %s7230_s13 = sld [smem:[#allocation47_spill]] }
 0x1c4   : > { %s7231_s20 = sld [smem:[#allocation48_spill]]  ;;  %s7232_s24 = sld [smem:[#allocation50_spill]] }
 0x1c5   : > { %s7094_s2 = sand.u32 1, %s7220_s22   ;;  %p1456_p2 = scmp.lt.s32.totalorder %s7221_s27, 1 }
 0x1c6   : > { %s6485_s14 = sshll.u32 %s7094_s2, 3  ;;  %s7233_s17 = sld [smem:[#allocation55_spill]] }
 0x1c7   : > { %s7316_s27 = smov (!%p1456_p2, %s7221_s27), 1  ;;  %p1465_p1 = scmp.lt.s32.totalorder %s7222_s21, 1 }
 0x1c8   : > { %s4413_s25 = sshll.u32 %s7316_s27, 3  ;;  %s7234_s11 = sld [smem:[#allocation57_spill]] }
 0x1c9   : > { %s4499_s10 = sshll.u32 %s7316_s27, 4  ;;  %s7235_s7 = sld [smem:[#allocation56_spill]] }
 0x1ca   : > { %s1459_s1 = scalar_lea.vmem %s7223_s26, %s4413_s25  ;;  %s7236_s6 = sld [smem:[#allocation58_spill]] }
 0x1cb   : > { %s6492_s23 = scalar_lea.vmem %s7224_s19, %s4499_s10  ;;  %s7238_s28 = sld [smem:[#allocation59_spill]] }
 0x1cc   : > { %7237 = sst [smem:[#allocation94_spill]] %s6492_s23  ;;  %s1441_s27 = scalar_lea.vmem [#allocation20], %s6485_s14 }
 0x1cd   : > { %s6495_s16 = scalar_select %p1465_p1, %s7222_s21, 1 }
 0x1cf   : > { %s4500_s22 = sshll.u32 %s6495_s16, 5  ;;  %s1480_s19 = scalar_lea.vmem %s7228_s18, %s6495_s16 }
 0x1d0   : > { %s6501_s25 = scalar_lea.vmem %s7226_s29, %s4500_s22  ;;  %s6504_s10 = scalar_lea.vmem %s7227_s4, %s4500_s22 }
 0x1d1   : > { %7239 = sst [smem:[#allocation95_spill]] %s6501_s25  ;;  %s6509_s26 = scalar_lea.vmem %s7229_s12, %s4500_s22 }
 0x1d2   : > { %s1488_s2 = scalar_lea.vmem %s7230_s13, %s6495_s16  ;;  %s6514_s30 = scalar_lea.vmem %s7231_s20, %s4500_s22 }
 0x1d3   : > { %s6517_s15 = scalar_lea.vmem %s7232_s24, %s4500_s22  ;;  %s1501_s9 = scalar_lea.vmem %s7233_s17, %s6495_s16 }
 0x1d4   : > { %s4505_s23 = sshll.u32 %s6495_s16, 6  ;;  %s1509_s8 = scalar_lea.vmem %s7234_s11, %s6495_s16 }
 0x1d5   : > { %s6525_s3 = scalar_lea.vmem %s7235_s7, %s4505_s23  ;;  %s1512_s21 = scalar_lea.vmem %s7236_s6, %s6495_s16 }
 0x1d6   : > { %s1515_s0 = scalar_lea.vmem %s7238_s28, %s6495_s16  ;;  %s1448_s29 = scalar_lea.vmem [#allocation21], %s6485_s14 }
 0x1d7   : > { %s7240_s25 = sshll.u32 %s6425_s5, 3  ;;  %s7241_s18 = sld [smem:[#allocation72_spill]] }
 0x1d8   : > { %s6535_s4 = scalar_lea.vmem [#allocation23], %s7240_s25 }
 0x1dd   : > { %p4428_p13 = scmp.ne.s32.totalorder %s7241_s18, 0 }
 0x1de   : > { %v1520_v0 = vld [vmem:[%s1459_s1] sm:$0xff] (!%p4428_p13)  ;;  %s7242_s13 = sld [smem:[#allocation38_spill]] (!%p4428_p13)  ;;  %v5802_v3 = vmov (!%p4428_p13), 0   ;;  %v5803_v4 = vmov (!%p4428_p13), 0.0|0.0   ;;  %vm5804_vm0 = vmmov (!%p4428_p13), 0   ;;  %v5805_v9 = vmov (!%p4428_p13), 0.0  }
 0x1df   : > { %1519 = sbr.rel (%p4428_p13) target bundleno = 825 (0x339), region = 176  ;;  %5152 = vset.pattern.permute.xlu0 (!%p4428_p13), %v5802_v3  ;;  %4808 = vmatprep.subr.bf16.mxu0 (!%p4428_p13), %v5803_v4  ;;  %vm1541_vm1 = vcmask (!%p4428_p13), 1041408   ;;  %v1521_v14 = vlaneseq (!%p4428_p13)  ;;  %vm1537_vm2 = vcmask (!%p4428_p13), 408576   ;;  %v1536_v18 = vld [vmem:[#allocation8] sm:$0xff] (!%p4428_p13)  ;;  %vm1615_vm4 = vcmask (!%p4428_p13), 261120  }
 0x1e0   : > { %1524 = vperm.xlu0 (!%p4428_p13), %5152, %v1520_v0   ;;  %4613 = vmatprep.mubr.msk.f32.mxu0 (!%p4428_p13), %vm5804_vm0, %v5805_v9 }
 0x1e1   : > { %v1522_v15 = vand.u32 (!%p4428_p13), 127, %v1521_v14 }
 0x1e4   : > { %v1529_v1 = vld [vmem:[%s7242_s13] sm:$0xff] (!%p4428_p13)  ;;  %v1530_v2 = vld [vmem:[%s7242_s13 + $0x8] sm:$0xff] (!%p4428_p13)  ;;  %v1531_v6 = vld [vmem:[%s7242_s13 + $0x10] sm:$0xff] (!%p4428_p13) }
 0x1e5   : > { %v4809_v5 = vpack.c.bf16 (!%p4428_p13), %v1530_v2, %v1529_v1  ;;  %v1532_v7 = vld [vmem:[%s7242_s13 + $0x18] sm:$0xff] (!%p4428_p13)  ;;  %v1533_v10 = vld [vmem:[%s7242_s13 + $0x20] sm:$0xff] (!%p4428_p13)  ;;  %v1534_v11 = vld [vmem:[%s7242_s13 + $0x28] sm:$0xff] (!%p4428_p13) }
 0x1e6   : > { %v4812_v8 = vpack.c.bf16 %v1532_v7, %v1531_v6  ;;  %v4815_v12 = vpack.c.bf16 %v1534_v11, %v1533_v10  ;;  %v1535_v13 = vld [vmem:[%s7242_s13 + $0x30] sm:$0x3] }
 0x1e7   : > { %4810 = vmatpush3.bf16.msra.mxu0 %v4809_v5 }
 0x1e8   : > { %4811 = vmatprep.subr.bf16.mxu0 %v5803_v4 }
 0x1eb   : > { %4813 = vmatpush3.bf16.msra.mxu0 %v4812_v8 }
 0x1ec   : > { %4814 = vmatprep.subr.bf16.mxu0 %v5803_v4 }
 0x1ef   : > { %4816 = vmatpush3.bf16.msra.mxu0 %v4815_v12 }
 0x1f0   : > { %4611 = vmatprep.subr.mxu0 %v5805_v9 }
 0x1f3   : > { %4612 = vmatpush3.msk.msra.mxu0 %vm1541_vm1, %v1535_v13 }
 0x25f   : > { %v1525_v16 = vpop.permute.xlu0 %1524 }
 0x260   : > { %vm1526_vm3 = vcmp.eq.s32.totalorder %v1522_v15, %v1525_v16 }
 0x261   : > { %v4429_v17 = vsel %vm1526_vm3, 1.0, %v5805_v9 }
 0x262   : > { %4614 = vmatmul.mubr.msk.f32.vlgmr.msra.gmra.mrb[0].mxu0 %vm1537_vm2, %v4429_v17 }
 0x335   : > { %v1611_v19 = vpop.f32.mrb[0].mxu0 }
 0x336   : > { %v1612_v20 = vadd.f32 %v1611_v19, %v1536_v18  ;;  %v4615_v21 = vpop.f32.mrb[1].mxu0 }
 0x338   : > { %1616 = vst.msk [vmem:[#allocation2] sm:$0xff] %vm1615_vm4, %v1612_v20 }
 0x339 PF: > { %s7243_s17 = sld [smem:[#allocation95_spill]]  ;;  %v5806_v25 = vmov 0.0|0.0   ;;  %s7244_s12 = sld [smem:[#allocation92_spill]]  ;;  %vm5807_vm5 = vmmov 0   ;;  %v5808_v28 = vmov 0.0   ;;  %vm1633_vm6 = vcmask 261120  }
 0x33a   : > { %4817 = vmatprep.subr.bf16.mxu1 %v5806_v25  ;;  %4624 = vmatprep.mubr.msk.f32.mxu1 %vm5807_vm5, %v5808_v28  ;;  %s5809_s28 = smov 96   ;;  %s5810_s1 = smov 120   ;;  %vm1711_vm7 = vcmask 64512   ;;  %vm2387_vm9 = vcmask 130048   ;;  %vm2389_vm10 = vcmask 195584   ;;  %vm2783_vm14 = vcmask 97280  }
 0x33b   : > { %4637 = vmatprep.subr.mxu0 %v5808_v28  ;;  %4639 = vmatprep.mubr.msk.f32.mxu0 %vm5807_vm5, %v5808_v28  ;;  %s5811_s11 = smov 88   ;;  %s5812_s6 = smov 80   ;;  %vm6694_vm11 = vmpackc.low %vm1711_vm7, %vm1711_vm7  ;;  %vm2803_vm15 = vcmask 1043456   ;;  %vm5824_vm0 = vmmov 1   ;;  %vm3642_vm2 = vcmask 523264   ;;  %vm3424_vm3 = vcmask 293888  }
 0x33c   : > { %s5813_s7 = smov 112   ;;  %s5814_s20 = smov 72   ;;  %vm6740_vm1 = vmpackc.low %vm2803_vm15, %vm5824_vm0  ;;  %vm3426_vm4 = vcmask 392192  }
 0x33d   : > { %s5815_s24 = smov 104   ;;  %s7246_s22 = sld [smem:[#allocation90_spill]] }
 0x33e   : > { %s5816_s25 = smov 56   ;;  %s5817_s18 = smov 64  }
 0x33f   : > { %v1622_v22 = vld [vmem:[%s7243_s17] sm:$0xff]  ;;  %v1623_v23 = vld [vmem:[%s7243_s17 + $0x8] sm:$0xff]  ;;  %v1624_v24 = vld [vmem:[%s7243_s17 + $0x10] sm:$0xff]  ;;  %s7245_s23 = scalar_lea.vmem [#allocation9], %s7244_s12 }
 0x340   : > { %v4818_v26 = vpack.c.bf16 %v1623_v23, %v1622_v22  ;;  %v1625_v27 = vld [vmem:[%s7243_s17 + $0x18] sm:$0xff]  ;;  %v6556_v30 = vld [vmem:[#allocation2] sm:$0xff]  ;;  %v4432_v31 = vld [vmem:[%s7245_s23] ss:$0 sm:$0xff]  ;;  %s5818_s17 = smov 48   ;;  %s5819_s23 = smov 40  }
 0x341   : > { %v4821_v29 = vpack.c.bf16 %v1625_v27, %v1624_v24 }
 0x342   : > { %4819 = vmatpush3.bf16.msra.mxu1 %v4818_v26 }
 0x343   : > { %4820 = vmatprep.subr.bf16.mxu1 %v5806_v25  ;;  %v1620_v43 = vld [vmem:[%s7246_s22] sm:$0xff]  ;;  %s5820_s22 = smov 8  }
 0x344   : > { %vm1787_vm8 = vcmp.eq.s32.totalorder %v1620_v43, 0  ;;  %v2407_v43 = vld [vmem:[%s6504_s10 + $0x18] sm:$0xff] }
 0x346   : > { %4822 = vmatpush3.bf16.msra.mxu1 %v4821_v29 }
 0x347   : > { %4627 = vmatprep.subr.mxu1 %v5808_v28 }
 0x349   : > { %4625 = vmatmul.mubr.msk.f32.vlgmr.msra.gmra.mrb[0].mxu1 %vm1633_vm6, %v6556_v30 }
 0x34a   : > { %4629 = vmatprep.mubr.msk.f32.mxu1 %vm5807_vm5, %v5808_v28 }
 0x41c   : > { %v1703_v32 = vpop.f32.mrb[0].mxu1 }
 0x41d   : > { %v6565_v33 = vadd.f32 %v4432_v31, %v1703_v32  ;;  %v4626_v34 = vpop.f32.mrb[1].mxu1 }
 0x41f   : > { %1709 = vrot.lane.b32.xlu0 %v6565_v33, %s5809_s28  ;;  %v1707_v35 = vmul.f32 0.35355338, %v6565_v33 }
 0x421   : > { %1876 = vrot.lane.b32.xlu1 %v1707_v35, %s5810_s1 }
 0x423   : > { %1878 = vrot.lane.b32.xlu0 %v6565_v33, %s5811_s11 }
 0x425   : > { %2044 = vrot.lane.b32.xlu1 %v6565_v33, %s5812_s6 }
 0x427   : > { %2042 = vrot.lane.b32.xlu0 %v1707_v35, %s5813_s7 }
 0x429   : > { %2210 = vrot.lane.b32.xlu1 %v6565_v33, %s5814_s20 }
 0x42b   : > { %2208 = vrot.lane.b32.xlu0 %v1707_v35, %s5815_s24 }
 0x491   : > { %v1710_v36 = vpop.permute.xlu0 %1709 }
 0x492   : > { %4628 = vmatpush3.xpose.msk.msra.mxu1 %vm1711_vm7, %v1710_v36  ;;  %v2405_v36 = vld [vmem:[%s6504_s10 + $0x8] sm:$0xff] }
 0x493   : > { %v1877_v37 = vpop.permute.xlu1 %1876  ;;  %4632 = vmatprep.subr.mxu1 %v5808_v28 }
 0x495   : > { %v1879_v38 = vpop.permute.xlu0 %1878  ;;  %4630 = vmatmul.mubr.msk.f32.vlgmr.msra.gmra.mrb[2].mxu1 %vm1711_vm7, %v1707_v35  ;;  %v2404_v35 = vld [vmem:[%s6504_s10] sm:$0xff] }
 0x496   : > { %4638 = vmatpush3.xpose.msk.msra.mxu0 %vm1711_vm7, %v1879_v38  ;;  %4634 = vmatprep.mubr.msk.f32.mxu1 %vm5807_vm5, %v5808_v28 }
 0x497   : > { %v2045_v39 = vpop.permute.xlu1 %2044  ;;  %4647 = vmatprep.subr.mxu0 %v5808_v28 }
 0x499   : > { %4640 = vmatmul.mubr.msk.f32.vlgmr.msra.gmra.mrb[0].mxu0 %vm1711_vm7, %v1877_v37  ;;  %v2043_v40 = vpop.permute.xlu0 %2042  ;;  %v4824_v37 = vpack.c.bf16 %v2405_v36, %v2404_v35 }
 0x49a   : > { %4648 = vmatpush3.xpose.msk.msra.mxu0 %vm1711_vm7, %v2045_v39  ;;  %4649 = vmatprep.mubr.msk.f32.mxu0 %vm5807_vm5, %v5808_v28 }
 0x49b   : > { %4657 = vmatprep.subr.mxu0 %v5808_v28  ;;  %v2211_v41 = vpop.permute.xlu1 %2210 }
 0x49d   : > { %4650 = vmatmul.mubr.msk.f32.vlgmr.msra.gmra.mrb[2].mxu0 %vm1711_vm7, %v2043_v40  ;;  %v2209_v42 = vpop.permute.xlu0 %2208 }
 0x49e   : > { %4658 = vmatpush3.xpose.msk.msra.mxu0 %vm1711_vm7, %v2211_v41  ;;  %4659 = vmatprep.mubr.msk.f32.mxu0 %vm5807_vm5, %v5808_v28 }
 0x49f   : > { %4823 = vmatprep.subr.bf16.mxu0 %v5806_v25 }
 0x4a1   : > { %4660 = vmatmul.mubr.msk.f32.vlgmr.msra.gmra.mrb[4].mxu0 %vm1711_vm7, %v2209_v42  ;;  %v2406_v42 = vld [vmem:[%s6504_s10 + $0x10] sm:$0xff]  ;;  %s7247_s10 = scalar_lea.vmem [#allocation11], %s7244_s12 }
 0x4a2   : > { %4675 = vmatprep.mubr.msk.f32.mxu0 %vm5807_vm5, %v5808_v28  ;;  %4825 = vmatpush3.bf16.msra.mxu0 %v4824_v37 }
 0x4a3   : > { %4826 = vmatprep.subr.bf16.mxu0 %v5806_v25 }
 0x568   : > { %v1783_v44 = vpop.f32.mrb[2].mxu1 }
 0x569   : > { %v1788_v45 = vsel %vm1787_vm8, -10000.0, %v1783_v44  ;;  %v4631_v46 = vpop.f32.mrb[3].mxu1  ;;  %v4827_v44 = vpack.c.bf16 %v2407_v43, %v2406_v42 }
 0x56a   : > { %v1789_v47 = vsel %vm1711_vm7, %v1788_v45, -inf }
 0x56b   : > { %1790 = vmax.xlane.f32.xlu1 %v1789_v47  ;;  %4828 = vmatpush3.bf16.msra.mxu0 %v4827_v44 }
 0x56c   : > { %v1950_v48 = vpop.f32.mrb[0].mxu0 }
 0x56d   : > { %v1954_v49 = vsel %vm1787_vm8, -10000.0, %v1950_v48  ;;  %v4641_v50 = vpop.f32.mrb[1].mxu0 }
 0x56e   : > { %v1955_v51 = vsel %vm1711_vm7, %v1954_v49, -inf }
 0x56f   : > { %1956 = vmax.xlane.f32.xlu0 %v1955_v51 }
 0x570   : > { %v2116_v52 = vpop.f32.mrb[2].mxu0 }
 0x571   : > { %v2120_v53 = vsel %vm1787_vm8, -10000.0, %v2116_v52  ;;  %v4651_v54 = vpop.f32.mrb[3].mxu0 }
 0x572   : > { %v2121_v55 = vsel %vm1711_vm7, %v2120_v53, -inf }
 0x573   : > { %2122 = vmax.xlane.f32.xlu0 %v2121_v55  ;;  %v4446_v55 = vld [vmem:[%s7247_s10] ss:$0 sm:$0xff] }
 0x574   : > { %v2282_v56 = vpop.f32.mrb[4].mxu0 }
 0x575   : > { %v2286_v57 = vsel %vm1787_vm8, -10000.0, %v2282_v56  ;;  %v4661_v58 = vpop.f32.mrb[5].mxu0 }
 0x576   : > { %v2287_v59 = vsel %vm1711_vm7, %v2286_v57, -inf }
 0x577   : > { %2288 = vmax.xlane.f32.xlu1 %v2287_v59 }
 0x588   : > { %1966 = vrot.lane.b32.xlu1 %v6565_v33, %s5816_s25  ;;  %s5821_s25 = smov 16  }
 0x5f8   : > { %v1791_v60 = vpop.xlane.xlu1 %1790 }
 0x5f9   : > { %v1792_v61 = vsub.f32 %v1788_v45, %v1791_v60 }
 0x5fb   : > { %v1793_v62 = vmul.f32 1.442695, %v1792_v61 }
 0x5fc   : > { %v1957_v63 = vpop.xlane.xlu0 %1956 }
 0x5fd   : > { %5188 = vpow2.f32 %v1793_v62  ;;  %v1958_v0 = vsub.f32 %v1954_v49, %v1957_v63 }
 0x5ff   : > { %v1959_v1 = vmul.f32 1.442695, %v1958_v0 }
 0x600   : > { %v2123_v11 = vpop.xlane.xlu0 %2122 }
 0x601   : > { %5190 = vpow2.f32 %v1959_v1  ;;  %v2124_v12 = vsub.f32 %v2120_v53, %v2123_v11 }
 0x603   : > { %v2125_v13 = vmul.f32 1.442695, %v2124_v12  ;;  %v2521_v12 = vld [vmem:[%s6509_s26 + $0x10] sm:$0xff] }
 0x604   : > { %v2289_v2 = vpop.xlane.xlu1 %2288 }
 0x605   : > { %v2290_v3 = vsub.f32 %v2286_v57, %v2289_v2  ;;  %v2603_v2 = vld [vmem:[%s6514_s30] sm:$0xff] }
 0x607   : > { %v5189_v4 = vpop.eup %5188  ;;  %v2291_v5 = vmul.f32 1.442695, %v2290_v3  ;;  %v2604_v3 = vld [vmem:[%s6514_s30 + $0x8] sm:$0xff] }
 0x608   : > { %v1795_v6 = vsel %vm1711_vm7, %v5189_v4, 0.0  ;;  %v1967_v16 = vpop.permute.xlu1 %1966 }
 0x609   : > { %5192 = vpow2.f32 %v2291_v5  ;;  %1796 = vadd.xlane.f32.xlu0 %v1795_v6  ;;  %v2606_v5 = vld [vmem:[%s6514_s30 + $0x18] sm:$0xff] }
 0x60a   : > { %5194 = vpow2.f32 %v2125_v13  ;;  %v2522_v13 = vld [vmem:[%s6509_s26 + $0x18] sm:$0xff] }
 0x60b   : > { %v5191_v7 = vpop.eup %5190 }
 0x60c   : > { %v1961_v8 = vsel %vm1711_vm7, %v5191_v7, 0.0 }
 0x60d   : > { %1962 = vadd.xlane.f32.xlu1 %v1961_v8 }
 0x613   : > { %v5193_v9 = vpop.eup %5192 }
 0x614   : > { %v2293_v10 = vsel %vm1711_vm7, %v5193_v9, 0.0  ;;  %v5195_v14 = vpop.eup %5194 }
 0x615   : > { %2294 = vadd.xlane.f32.xlu1 %v2293_v10  ;;  %v2127_v15 = vsel %vm1711_vm7, %v5195_v14, 0.0  ;;  %v2520_v10 = vld [vmem:[%s6509_s26 + $0x8] sm:$0xff] }
 0x61f   : > { %1800 = vrot.lane.b32.xlu0 %v6565_v33, %s5817_s18  ;;  %s5822_s18 = smov 24  }
 0x626   : > { %2132 = vrot.lane.b32.xlu1 %v6565_v33, %s5818_s17  ;;  %s7248_s17 = sld [smem:[#allocation94_spill]] }
 0x62c   : > { %v1619_v8 = vld [vmem:[%s7248_s17 + $0x8] sm:$0xf] }
 0x63e   : > { %2128 = vadd.xlane.f32.xlu0 %v2127_v15 }
 0x654   : > { %2298 = vrot.lane.b32.xlu0 %v6565_v33, %s5819_s23  ;;  %s7249_s23 = sld [smem:[#allocation44_spill]] }
 0x696   : > { %v1797_v17 = vpop.xlane.xlu0 %1796 }
 0x697   : > { %5196 = vrcp.f32 %v1797_v17 }
 0x69a   : > { %v1801_v18 = vpop.permute.xlu0 %1800  ;;  %v1963_v19 = vpop.xlane.xlu1 %1962 }
 0x69b   : > { %5198 = vrcp.f32 %v1963_v19  ;;  %4633 = vmatpush3.msra.mxu1 %v1801_v18 }
 0x69c   : > { %4642 = vmatprep.subr.mxu1 %v5808_v28 }
 0x6a1   : > { %v5197_v20 = vpop.eup %5196 }
 0x6a2   : > { %v6617_v21 = vmul.f32 %v5197_v20, %v5189_v4  ;;  %v2295_v22 = vpop.xlane.xlu1 %2294  ;;  %v4835_v4 = vpack.c.bf16 %v2604_v3, %v2603_v2 }
 0x6a4   : > { %4635 = vmatmul.mubr.msk.f32.vlgmr.msra.gmra.mrb[4].mxu1 %vm1711_vm7, %v6617_v21  ;;  %4836 = vmatprep.subr.bf16.mxu0 %v4835_v4 }
 0x6a5   : > { %v5199_v23 = vpop.eup %5198  ;;  %4643 = vmatpush3.msra.mxu1 %v1967_v16  ;;  %4644 = vmatprep.mubr.msk.f32.mxu1 %vm5807_vm5, %v5808_v28 }
 0x6a6   : > { %v6623_v24 = vmul.f32 %v5199_v23, %v5191_v7  ;;  %v2133_v26 = vpop.permute.xlu1 %2132  ;;  %4652 = vmatprep.subr.mxu1 %v5808_v28  ;;  %v1618_v7 = vld [vmem:[%s7248_s17] sm:$0xff] }
 0x6a8   : > { %4645 = vmatmul.mubr.msk.f32.vlgmr.msra.gmra.mrb[6].mxu1 %vm1711_vm7, %v6623_v24 }
 0x6a9   : > { %4653 = vmatpush3.msra.mxu1 %v2133_v26  ;;  %4654 = vmatprep.mubr.msk.f32.mxu1 %vm5807_vm5, %v5808_v28 }
 0x6aa   : > { %4662 = vmatprep.subr.mxu1 %v5808_v28 }
 0x6cb   : > { %v2129_v27 = vpop.xlane.xlu0 %2128 }
 0x6cc   : > { %5200 = vrcp.f32 %v2129_v27 }
 0x6cd   : > { %5202 = vrcp.f32 %v2295_v22  ;;  %v4449_v22 = vld [vmem:[%s1480_s19] ss:$0 sm:$0xff] }
 0x6cf   : > { %v2299_v33 = vpop.permute.xlu0 %2298 }
 0x6d6   : > { %v5201_v29 = vpop.eup %5200 }
 0x6d7   : > { %v6631_v31 = vmul.f32 %v5201_v29, %v5195_v14  ;;  %v5203_v32 = vpop.eup %5202  ;;  %v4833_v14 = vpack.c.bf16 %v2522_v13, %v2521_v12 }
 0x6d8   : > { %v6637_v34 = vmul.f32 %v5203_v32, %v5193_v9  ;;  %v2519_v9 = vld [vmem:[%s6509_s26] sm:$0xff]  ;;  %s7253_s26 = scalar_lea.vmem [#allocation12], %s7244_s12 }
 0x6d9   : > { %4655 = vmatmul.mubr.msk.f32.vlgmr.msra.gmra.mrb[8].mxu1 %vm1711_vm7, %v6631_v31  ;;  %v4830_v11 = vpack.c.bf16 %v2520_v10, %v2519_v9  ;;  %v4452_v27 = vld [vmem:[%s7253_s26] ss:$0 sm:$0xff] }
 0x6da   : > { %4663 = vmatpush3.msra.mxu1 %v2299_v33  ;;  %4664 = vmatprep.mubr.msk.f32.mxu1 %vm5807_vm5, %v5808_v28 }
 0x6db   : > { %4829 = vmatprep.subr.bf16.mxu1 %v5806_v25 }
 0x6dd   : > { %4665 = vmatmul.mubr.msk.f32.vlgmr.msra.gmra.mrb[10].mxu1 %vm1711_vm7, %v6637_v34 }
 0x6de   : > { %4686 = vmatprep.mubr.msk.f32.mxu1 %vm5807_vm5, %v5808_v28  ;;  %4831 = vmatpush3.bf16.msra.mxu1 %v4830_v11 }
 0x6df   : > { %4832 = vmatprep.subr.bf16.mxu1 %v5806_v25 }
 0x6e2   : > { %4834 = vmatpush3.bf16.msra.mxu1 %v4833_v14 }
 0x6e3   : > { %4843 = vmatprep.subr.bf16.mxu1 %v5806_v25 }
 0x777   : > { %v1872_v38 = vpop.f32.mrb[4].mxu1 }
 0x778   : > { %v4636_v39 = vpop.f32.mrb[5].mxu1 }
 0x77b   : > { %v2038_v40 = vpop.f32.mrb[6].mxu1 }
 0x77c   : > { %2375 = vrot.lane.b32.xlu1 %v2038_v40, %s5820_s22  ;;  %v4646_v41 = vpop.f32.mrb[7].mxu1  ;;  %v4450_v40 = vld [vmem:[%s1488_s2] ss:$0 sm:$0xff]  ;;  %s7256_s2 = scalar_lea.vmem [#allocation6], %s6425_s5  ;;  %s7259_s5 = scalar_lea.vmem [#allocation14], %s7244_s12 }
 0x7ac   : > { %v2204_v45 = vpop.f32.mrb[8].mxu1 }
 0x7ad   : > { %2379 = vrot.lane.b32.xlu0 %v2204_v45, %s5821_s25  ;;  %v4656_v46 = vpop.f32.mrb[9].mxu1 }
 0x7b0   : > { %v2370_v47 = vpop.f32.mrb[10].mxu1 }
 0x7b1   : > { %2383 = vrot.lane.b32.xlu1 %v2370_v47, %s5822_s18  ;;  %v4666_v48 = vpop.f32.mrb[11].mxu1 }
 0x7ee   : > { %v2376_v49 = vpop.permute.xlu1 %2375 }
 0x7ef   : > { %v2386_v51 = vsel %vm1711_vm7, %v1872_v38, %v2376_v49  ;;  %v2777_v49 = vlaneseq }
 0x81f   : > { %v2380_v50 = vpop.permute.xlu0 %2379 }
 0x820   : > { %v2388_v52 = vsel %vm2387_vm9, %v2386_v51, %v2380_v50  ;;  %v1621_v50 = vld [vmem:[%s7256_s2] sm:$0x1]  ;;  %v2778_v51 = vshrl.u32 %v2777_v49, 7 }
 0x821   : > { %vm2775_vm12 = vcmp.eq.s32.totalorder %v1621_v50, 0 }
 0x823   : > { %v2384_v53 = vpop.permute.xlu1 %2383 }
 0x824   : > { %v2390_v54 = vsel %vm2389_vm10, %v2388_v52, %v2384_v53  ;;  %v2779_v52 = vsub.s32 0, %v2778_v51  ;;  %v5823_v53 = vmov 0  }
 0x825   : > { %4676 = vmatmul.mubr.msk.f32.vlgmr.msra.gmra.mrb[6].mxu0 %vm1633_vm6, %v2390_v54  ;;  %v2776_v54 = vsel %vm2775_vm12, 1, %v5823_v53 }
 0x826   : > { %4838 = vmatpush3.bf16.msra.mxu0 %v4835_v4  ;;  %4697 = vmatprep.mubr.msk.f32.mxu0 %vm1633_vm6, %v1618_v7 }
 0x8f8   : > { %v2484_v56 = vpop.f32.mrb[6].mxu0 }
 0x8f9   : > { %v2485_v57 = vadd.f32 %v4446_v55, %v2484_v56  ;;  %v4677_v58 = vpop.f32.mrb[7].mxu0  ;;  %v6724_v55 = vrot.slane %v2776_v54, %v2779_v52 }
 0x8fb   : > { %v2488_v59 = vadd.f32 %v2485_v57, %v6556_v30  ;;  %v2605_v30 = vld [vmem:[%s6514_s30 + $0x10] sm:$0xff]  ;;  %s7251_s30 = scalar_lea.vmem %s7249_s23, %s6495_s16  ;;  %vm2781_vm13 = vcmp.eq.s32.totalorder %v6724_v55, 1 }
 0x8fc   : > { %v4839_v6 = vpack.c.bf16 %v2606_v5, %v2605_v30  ;;  %v4448_v19 = vld [vmem:[%s7251_s30] ss:$0 sm:$0xff] }
 0x8fd   : > { %v2491_v60 = vsel %vm1633_vm6, %v2488_v59, 0.0 }
 0x8fe   : > { %2492 = vadd.xlane.f32.xlu0 %v2491_v60  ;;  %4840 = vmatprep.subr.bf16.mxu0 %v4839_v6 }
 0x8ff   : > { %4842 = vmatpush3.bf16.msra.mxu0 %v4839_v6 }
 0x900   : > { %4847 = vmatprep.subr.bf16.mxu0 %v5806_v25 }
 0x902   : > { %4698 = vmatmul.mubr.msk.f32.vlgmr.msra.gmra.mrb[8].mxu0 %vm1633_vm6, %v1619_v8 }
 0x903   : > { %4711 = vmatprep.mubr.msk.f32.mxu0 %vm5807_vm5, %v5808_v28 }
 0x98b   : > { %v2493_v61 = vpop.xlane.xlu0 %2492 }
 0x98c   : > { %v2495_v62 = vmul.f32 0.03125, %v2493_v61 }
 0x98e   : > { %v2496_v63 = vsub.f32 %v2488_v59, %v2495_v62 }
 0x990   : > { %v2497_v0 = vmul.f32 %v2496_v63, %v2496_v63 }
 0x992   : > { %v2498_v1 = vsel %vm1633_vm6, %v2497_v0, 0.0 }
 0x993   : > { %2499 = vadd.xlane.f32.xlu1 %v2498_v1 }
 0x9d5   : > { %v4699_v29 = vpop.f32.mrb[8].mxu0 }
 0x9d6   : > { %v2692_v32 = vadd.f32 %v4699_v29, %v4452_v27  ;;  %v2686_v33 = vpop.f32.mrb[9].mxu0 }
 0x9d7   : > { %v2687_v35 = vadd.f32 %v4452_v27, %v2686_v33 }
 0x9d9   : > { %v6698_v37 = vpack.i.bf16 %v2692_v32, %v2687_v35  ;;  %v4844_v38 = vpack.c.bf16 %v2692_v32, %v2687_v35 }
 0x9db   : > { %5154 = vrot.lane.b32.xlu0 %v6698_v37, %s5810_s1 }
 0xa20   : > { %v2500_v15 = vpop.xlane.xlu1 %2499 }
 0xa21   : > { %v2501_v16 = vmul.f32 0.03125, %v2500_v15 }
 0xa23   : > { %v2502_v17 = vadd.f32 1e-05, %v2501_v16 }
 0xa25   : > { %5204 = vrsqrt.f32 %v2502_v17 }
 0xa2f   : > { %v5205_v18 = vpop.eup %5204 }
 0xa30   : > { %v2504_v20 = vmul.f32 %v5205_v18, %v2496_v63 }
 0xa32   : > { %v2511_v23 = vmul.f32 %v4448_v19, %v2504_v20 }
 0xa34   : > { %v6684_v26 = vadd.f32 %v4449_v22, %v2511_v23 }
 0xa36   : > { %4687 = vmatmul.mubr.msk.f32.vlgmr.msra.gmra.mrb[12].mxu1 %vm1633_vm6, %v6684_v26 }
 0xa37   : > { %4704 = vmatprep.mubr.msk.f32.mxu1 %vm5807_vm5, %v5808_v28  ;;  %4846 = vmatpush3.bf16.xpose.msk.msra.mxu1 %vm6694_vm11, %v4844_v38 }
 0xa38   : > { %4851 = vmatprep.subr.bf16.mxu1 %v5806_v25 }
 0xa4d   : > { %v5155_v39 = vpop.permute.xlu0 %5154 }
 0xa4e   : > { %v5157_v41 = vunpack.i.h.bf16 %v5155_v39  ;;  %v5156_v42 = vunpack.i.l.bf16 %v5155_v39 }
 0xa50   : > { %v4852_v46 = vpack.c.bf16 %v5157_v41, %v5156_v42 }
 0xb09   : > { %v2599_v43 = vpop.f32.mrb[12].mxu1 }
 0xb0a   : > { %v2600_v44 = vadd.f32 %v4450_v40, %v2599_v43  ;;  %v4688_v45 = vpop.f32.mrb[13].mxu1 }
 0xb0c   : > { %v6708_v47 = vmul.f32 0.35355338, %v2600_v44 }
 0xb0e   : > { %2876 = vrot.lane.b32.xlu1 %v6708_v47, %s5810_s1  ;;  %4705 = vmatmul.mubr.msk.f32.vlgmr.msra.gmra.mrb[14].mxu1 %vm1711_vm7, %v6708_v47  ;;  %s7263_s1 = scalar_lea.vmem [#allocation17], %s7244_s12 }
 0xb0f   : > { %4854 = vmatpush3.bf16.xpose.msk.msra.mxu1 %vm6694_vm11, %v4852_v46  ;;  %4718 = vmatprep.mubr.msk.f32.mxu1 %vm5807_vm5, %v5808_v28 }
 0xb10   : > { %4863 = vmatprep.subr.bf16.mxu1 %v5806_v25 }
 0xb80   : > { %v2877_v48 = vpop.permute.xlu1 %2876 }
 0xb81   : > { %4719 = vmatmul.mubr.msk.f32.vlgmr.msra.gmra.mrb[16].mxu1 %vm1711_vm7, %v2877_v48 }
 0xb82   : > { %4739 = vmatprep.mubr.msk.f32.mxu1 %vm5807_vm5, %v5808_v28 }
 0xbe1   : > { %v2771_v56 = vpop.f32.mrb[14].mxu1 }
 0xbe2   : > { %v2782_v57 = vsel %vm2781_vm13, -10000.0, %v2771_v56  ;;  %v4706_v58 = vpop.f32.mrb[15].mxu1 }
 0xbe3   : > { %v2784_v59 = vsel %vm2783_vm14, %v2782_v57, -inf }
 0xbe4   : > { %2785 = vmax.xlane.f32.xlu0 %v2784_v59 }
 0xc54   : > { %v2954_v60 = vpop.f32.mrb[16].mxu1 }
 0xc55   : > { %v2958_v61 = vsel %vm2781_vm13, -10000.0, %v2954_v60  ;;  %v4720_v62 = vpop.f32.mrb[17].mxu1 }
 0xc56   : > { %v2959_v63 = vsel %vm2783_vm14, %v2958_v61, -inf }
 0xc57   : > { %2960 = vmax.xlane.f32.xlu1 %v2959_v63 }
 0xc68   : > { %5159 = vrot.lane.b32.xlu1 %v6698_v37, %s5809_s28  ;;  %s7262_s28 = scalar_lea.vmem [#allocation15], %s7244_s12 }
 0xc6c   : > { %5169 = vrot.lane.b32.xlu1 %v6698_v37, %s5813_s7 }
 0xc70   : > { %3050 = vrot.lane.b32.xlu1 %v6708_v47, %s5813_s7 }
 0xc71   : > { %v2786_v0 = vpop.xlane.xlu0 %2785 }
 0xc72   : > { %v2787_v1 = vsub.f32 %v2782_v57, %v2786_v0 }
 0xc74   : > { %v2788_v2 = vmul.f32 1.442695, %v2787_v1 }
 0xc76   : > { %5206 = vpow2.f32 %v2788_v2 }
 0xc80   : > { %v5207_v3 = vpop.eup %5206 }
 0xc81   : > { %v2790_v4 = vsel %vm2783_vm14, %v5207_v3, 0.0 }
 0xc82   : > { %2791 = vadd.xlane.f32.xlu0 %v2790_v4 }
 0xce4   : > { %v2961_v30 = vpop.xlane.xlu1 %2960 }
 0xce5   : > { %v2962_v5 = vsub.f32 %v2958_v61, %v2961_v30 }
 0xce7   : > { %v2963_v6 = vmul.f32 1.442695, %v2962_v5 }
 0xce8   : > { %v5160_v7 = vpop.permute.xlu1 %5159 }
 0xce9   : > { %5208 = vpow2.f32 %v2963_v6  ;;  %v5162_v8 = vunpack.i.h.bf16 %v5160_v7  ;;  %v5161_v9 = vunpack.i.l.bf16 %v5160_v7 }
 0xceb   : > { %v4848_v11 = vpack.c.bf16 %v5162_v8, %v5161_v9 }
 0xcec   : > { %v5170_v23 = vpop.permute.xlu1 %5169 }
 0xced   : > { %4850 = vmatpush3.bf16.msk.msra.mxu0 %vm6740_vm1, %v4848_v11  ;;  %v5172_v29 = vunpack.i.h.bf16 %v5170_v23  ;;  %v5171_v32 = vunpack.i.l.bf16 %v5170_v23 }
 0xcee   : > { %4855 = vmatprep.subr.bf16.mxu0 %v5806_v25 }
 0xcef   : > { %v4860_v35 = vpack.c.bf16 %v5172_v29, %v5171_v32 }
 0xcf0   : > { %v3051_v38 = vpop.permute.xlu1 %3050 }
 0xcf3   : > { %v5209_v12 = vpop.eup %5208 }
 0xcf4   : > { %v2965_v13 = vsel %vm2783_vm14, %v5209_v12, 0.0 }
 0xcf5   : > { %2966 = vadd.xlane.f32.xlu0 %v2965_v13 }
 0xd0b   : > { %5164 = vrot.lane.b32.xlu0 %v6698_v37, %s5811_s11 }
 0xd0f   : > { %v2792_v14 = vpop.xlane.xlu0 %2791 }
 0xd10   : > { %5210 = vrcp.f32 %v2792_v14 }
 0xd1a   : > { %v5211_v15 = vpop.eup %5210 }
 0xd1b   : > { %v6750_v16 = vmul.f32 %v5211_v15, %v5207_v3 }
 0xd1d   : > { %4712 = vmatmul.mubr.msk.f32.vlgmr.msra.gmra.mrb[10].mxu0 %vm2783_vm14, %v6750_v16 }
 0xd1e   : > { %4725 = vmatprep.mubr.msk.f32.mxu0 %vm5807_vm5, %v5808_v28 }
 0xd82   : > { %v2967_v17 = vpop.xlane.xlu0 %2966 }
 0xd83   : > { %5212 = vrcp.f32 %v2967_v17 }
 0xd86   : > { %v5165_v18 = vpop.permute.xlu0 %5164 }
 0xd87   : > { %v5167_v19 = vunpack.i.h.bf16 %v5165_v18  ;;  %v5166_v20 = vunpack.i.l.bf16 %v5165_v18  ;;  %v3429_v18 = vld [vmem:[%s6517_s15 + $0x8] sm:$0xff] }
 0xd89   : > { %v4856_v22 = vpack.c.bf16 %v5167_v19, %v5166_v20  ;;  %v3430_v19 = vld [vmem:[%s6517_s15 + $0x10] sm:$0xff] }
 0xd8b   : > { %4858 = vmatpush3.bf16.msk.msra.mxu0 %vm6740_vm1, %v4856_v22  ;;  %v3431_v22 = vld [vmem:[%s6517_s15 + $0x18] sm:$0xff] }
 0xd8c   : > { %4859 = vmatprep.subr.bf16.mxu0 %v5806_v25  ;;  %v4879_v10 = vpack.c.bf16 %v3431_v22, %v3430_v19 }
 0xd8d   : > { %v5213_v27 = vpop.eup %5212 }
 0xd8e   : > { %v6759_v33 = vmul.f32 %v5213_v27, %v5209_v12 }
 0xd90   : > { %4726 = vmatmul.mubr.msk.f32.vlgmr.msra.gmra.mrb[12].mxu0 %vm2783_vm14, %v6759_v33 }
 0xd91   : > { %4732 = vmatprep.mubr.msk.f32.mxu0 %vm5807_vm5, %v5808_v28 }
 0xd94   : > { %4862 = vmatpush3.bf16.xpose.msk.msra.mxu0 %vm6694_vm11, %v4860_v35 }
 0xd95   : > { %4871 = vmatprep.subr.bf16.mxu0 %v5806_v25 }
 0xd9b   : > { %4733 = vmatmul.mubr.msk.f32.vlgmr.msra.gmra.mrb[14].mxu0 %vm1711_vm7, %v3051_v38 }
 0xd9c   : > { %4753 = vmatprep.mubr.msk.f32.mxu0 %vm5807_vm5, %v5808_v28 }
 0xdf0   : > { %v6771_v39 = vpop.f32.mrb[10].mxu0 }
 0xdf1   : > { %v4713_v40 = vpop.f32.mrb[11].mxu0 }
 0xe63   : > { %v3046_v41 = vpop.f32.mrb[12].mxu0 }
 0xe64   : > { %v4727_v42 = vpop.f32.mrb[13].mxu0 }
 0xe65   : > { %v4475_v42 = vld [vmem:[%s7259_s5] ss:$0 sm:$0xff] }
 0xe6e   : > { %v3128_v43 = vpop.f32.mrb[14].mxu0 }
 0xe6f   : > { %v3132_v44 = vsel %vm2781_vm13, -10000.0, %v3128_v43  ;;  %v4734_v45 = vpop.f32.mrb[15].mxu0 }
 0xe70   : > { %v3133_v46 = vsel %vm2783_vm14, %v3132_v44, -inf }
 0xe71   : > { %3134 = vmax.xlane.f32.xlu0 %v3133_v46 }
 0xe87   : > { %5174 = vrot.lane.b32.xlu0 %v6698_v37, %s5812_s6  ;;  %s7267_s6 = sld [smem:[#allocation72_spill]] }
 0xe8b   : > { %3224 = vrot.lane.b32.xlu0 %v6708_v47, %s5815_s24 }
 0xe8d   : > { %p4485_p4 = scmp.ne.s32.totalorder %s7267_s6, 1 }
 0xe8e   : > { %s7268_s7 = sld [smem:[#allocation60_spill]] (!%p4485_p4) }
 0xefe   : > { %v3135_v48 = vpop.xlane.xlu0 %3134 }
 0xeff   : > { %v3136_v49 = vsub.f32 %v3132_v44, %v3135_v48 }
 0xf01   : > { %v3137_v50 = vmul.f32 1.442695, %v3136_v49 }
 0xf02   : > { %v5175_v51 = vpop.permute.xlu0 %5174 }
 0xf03   : > { %5214 = vpow2.f32 %v3137_v50  ;;  %v5177_v52 = vunpack.i.h.bf16 %v5175_v51  ;;  %v5176_v53 = vunpack.i.l.bf16 %v5175_v51 }
 0xf05   : > { %v4864_v54 = vpack.c.bf16 %v5177_v52, %v5176_v53 }
 0xf06   : > { %v3225_v0 = vpop.permute.xlu0 %3224 }
 0xf07   : > { %4866 = vmatpush3.bf16.msk.msra.mxu1 %vm6740_vm1, %v4864_v54 }
 0xf08   : > { %4867 = vmatprep.subr.bf16.mxu1 %v5806_v25 }
 0xf0d   : > { %v5215_v56 = vpop.eup %5214 }
 0xf0e   : > { %v3139_v57 = vsel %vm2783_vm14, %v5215_v56, 0.0 }
 0xf0f   : > { %3140 = vadd.xlane.f32.xlu1 %v3139_v57  ;;  %v3628_v57 = vld [vmem:[%s6525_s3 + $0x8] sm:$0xff] }
 0xf20   : > { %5179 = vrot.lane.b32.xlu1 %v6698_v37, %s5815_s24  ;;  %s7270_s24 = sld [smem:[#allocation61_spill]] (!%p4485_p4) }
 0xf9c   : > { %v3141_v47 = vpop.xlane.xlu1 %3140 }
 0xf9d   : > { %5216 = vrcp.f32 %v3141_v47  ;;  %v3629_v47 = vld [vmem:[%s6525_s3 + $0x10] sm:$0xff] }
 0xfa0   : > { %v5180_v58 = vpop.permute.xlu1 %5179 }
 0xfa1   : > { %v5182_v59 = vunpack.i.h.bf16 %v5180_v58  ;;  %v5181_v60 = vunpack.i.l.bf16 %v5180_v58 }
 0xfa3   : > { %v4868_v63 = vpack.c.bf16 %v5182_v59, %v5181_v60  ;;  %v3630_v59 = vld [vmem:[%s6525_s3 + $0x18] sm:$0xff] }
 0xfa4   : > { %v4891_v60 = vpack.c.bf16 %v3630_v59, %v3629_v47  ;;  %v4486_v47 = vld [vmem:[%s7270_s24] ss:$0 sm:$0xff] (!%p4485_p4) }
 0xfa7   : > { %v5217_v61 = vpop.eup %5216 }
 0xfa8   : > { %v6786_v62 = vmul.f32 %v5217_v61, %v5215_v56  ;;  %v3627_v56 = vld [vmem:[%s6525_s3] sm:$0xff] }
 0xfa9   : > { %v4888_v58 = vpack.c.bf16 %v3628_v57, %v3627_v56  ;;  %v3631_v61 = vld [vmem:[%s6525_s3 + $0x20] sm:$0xff]  ;;  %v5829_v56 = vmov (!%p4485_p4), 0.0  }
 0xfaa   : > { %4740 = vmatmul.mubr.msk.f32.vlgmr.msra.gmra.mrb[18].mxu1 %vm2783_vm14, %v6786_v62 }
 0xfab   : > { %4870 = vmatpush3.bf16.xpose.msk.msra.mxu1 %vm6694_vm11, %v4868_v63  ;;  %4746 = vmatprep.mubr.msk.f32.mxu1 %vm5807_vm5, %v5808_v28  ;;  %v3632_v63 = vld [vmem:[%s6525_s3 + $0x28] sm:$0xff] }
 0xfac   : > { %4881 = vmatprep.subr.bf16.mxu1 %v5806_v25 }
 0xfb2   : > { %4747 = vmatmul.mubr.msk.f32.vlgmr.msra.gmra.mrb[20].mxu1 %vm1711_vm7, %v3225_v0  ;;  %v4894_v0 = vpack.c.bf16 %v3632_v63, %v3631_v61 }
 0xfb3   : > { %4775 = vmatprep.mubr.msk.f32.mxu1 %vm5807_vm5, %v5808_v28 }
0x107d   : > { %v3220_v1 = vpop.f32.mrb[18].mxu1 }
0x107e   : > { %v4741_v2 = vpop.f32.mrb[19].mxu1 }
0x1085   : > { %v3302_v3 = vpop.f32.mrb[20].mxu1 }
0x1086   : > { %v3306_v4 = vsel %vm2781_vm13, -10000.0, %v3302_v3  ;;  %v4748_v30 = vpop.f32.mrb[21].mxu1 }
0x1087   : > { %v3307_v36 = vsel %vm2783_vm14, %v3306_v4, -inf  ;;  %v4477_v30 = vld [vmem:[%s7262_s28] ss:$0 sm:$0xff] }
0x1088   : > { %3308 = vmax.xlane.f32.xlu1 %v3307_v36 }
0x1099   : > { %3399 = vrot.lane.b32.xlu1 %v3046_v41, %s5820_s22 }
0x109d   : > { %3403 = vrot.lane.b32.xlu1 %v3220_v1, %s5821_s25 }
0x1115   : > { %v3309_v5 = vpop.xlane.xlu1 %3308 }
0x1116   : > { %v3310_v6 = vsub.f32 %v3306_v4, %v3309_v5  ;;  %v4478_v5 = vld [vmem:[%s7263_s1] ss:$0 sm:$0xff] }
0x1118   : > { %v3311_v7 = vmul.f32 1.442695, %v3310_v6 }
0x1119   : > { %v3400_v29 = vpop.permute.xlu1 %3399 }
0x111a   : > { %5218 = vpow2.f32 %v3311_v7  ;;  %v3410_v35 = vsel %vm1711_vm7, %v6771_v39, %v3400_v29 }
0x111d   : > { %v3404_v32 = vpop.permute.xlu1 %3403 }
0x111e   : > { %v3411_v38 = vsel %vm2387_vm9, %v3410_v35, %v3404_v32 }
0x1124   : > { %v5219_v8 = vpop.eup %5218 }
0x1125   : > { %v3313_v9 = vsel %vm2783_vm14, %v5219_v8, 0.0 }
0x1126   : > { %3314 = vadd.xlane.f32.xlu0 %v3313_v9 }
0x113c   : > { %5184 = vrot.lane.b32.xlu0 %v6698_v37, %s5814_s20  ;;  %v3428_v37 = vld [vmem:[%s6517_s15] sm:$0xff]  ;;  %s7260_s15 = sld [smem:[#allocation93_spill]]  ;;  %s7269_s20 = smov (!%p4485_p4), %s7268_s7 }
0x113d   : > { %v4876_v20 = vpack.c.bf16 %v3429_v18, %v3428_v37 }
0x1142   : > { %v3542_v51 = vld [vmem:[%s7260_s15] sm:$0xff]  ;;  %v3543_v52 = vld [vmem:[%s7260_s15 + $0x8] sm:$0xff] }
0x1143   : > { %v4882_v53 = vpack.c.bf16 %v3543_v52, %v3542_v51  ;;  %v3752_v52 = vld [vmem:[%s7269_s20 + $0x8] sm:$0xff] (!%p4485_p4) }
0x1145   : > { %4883 = vmatpush3.bf16.msra.mxu1 %v4882_v53  ;;  %v3753_v53 = vld [vmem:[%s7269_s20 + $0x10] sm:$0xff] (!%p4485_p4) }
0x1146   : > { %4884 = vmatprep.subr.bf16.mxu1 %v5806_v25 }
0x11b3   : > { %v3315_v55 = vpop.xlane.xlu0 %3314 }
0x11b4   : > { %5220 = vrcp.f32 %v3315_v55  ;;  %v4479_v55 = vld [vmem:[%s1501_s9] ss:$0 sm:$0xff]  ;;  %s5826_s9 = smov 36  }
0x11b7   : > { %v5185_v11 = vpop.permute.xlu0 %5184 }
0x11b8   : > { %v5187_v12 = vunpack.i.h.bf16 %v5185_v11  ;;  %v5186_v13 = vunpack.i.l.bf16 %v5185_v11 }
0x11ba   : > { %v4872_v14 = vpack.c.bf16 %v5187_v12, %v5186_v13 }
0x11bc   : > { %4874 = vmatpush3.bf16.msk.msra.mxu0 %vm6740_vm1, %v4872_v14 }
0x11bd   : > { %4875 = vmatprep.subr.bf16.mxu0 %v5806_v25 }
0x11be   : > { %v5221_v15 = vpop.eup %5220 }
0x11bf   : > { %v6809_v17 = vmul.f32 %v5221_v15, %v5219_v8  ;;  %v3633_v8 = vld [vmem:[%s6525_s3 + $0x30] sm:$0xff]  ;;  %v4481_v15 = vld [vmem:[%s1509_s8] ss:$0 sm:$0xff] }
0x11c1   : > { %4754 = vmatmul.mubr.msk.f32.vlgmr.msra.gmra.mrb[16].mxu0 %vm2783_vm14, %v6809_v17 }
0x11c2   : > { %4764 = vmatprep.mubr.msk.f32.mxu0 %vm5807_vm5, %v5808_v28  ;;  %4877 = vmatpush3.bf16.msra.mxu0 %v4876_v20 }
0x11c3   : > { %4878 = vmatprep.subr.bf16.mxu0 %v5806_v25 }
0x11c6   : > { %4880 = vmatpush3.bf16.msra.mxu0 %v4879_v10 }
0x11c7   : > { %4887 = vmatprep.subr.bf16.mxu0 %v5806_v25 }
0x1294   : > { %v3394_v23 = vpop.f32.mrb[16].mxu0 }
0x1295   : > { %3407 = vrot.lane.b32.xlu0 %v3394_v23, %s5822_s18  ;;  %v4755_v27 = vpop.f32.mrb[17].mxu0 }
0x1307   : > { %v3408_v40 = vpop.permute.xlu0 %3407 }
0x1308   : > { %v3412_v41 = vsel %vm2389_vm10, %v3411_v38, %v3408_v40 }
0x1309   : > { %4765 = vmatmul.mubr.msk.f32.vlgmr.msra.gmra.mrb[18].mxu0 %vm1633_vm6, %v3412_v41 }
0x130a   : > { %4794 = vmatprep.mubr.msk.f32.mxu0 %vm5807_vm5, %v5808_v28  ;;  %4889 = vmatpush3.bf16.msra.mxu0 %v4888_v58  ;;  %vm5828_vm5 = vmmov (!%p4485_p4), 0  }
0x130b   : > { %4890 = vmatprep.subr.bf16.mxu0 %v5806_v25 }
0x130e   : > { %4892 = vmatpush3.bf16.msra.mxu0 %v4891_v60 }
0x130f   : > { %4893 = vmatprep.subr.bf16.mxu0 %v5806_v25 }
0x1312   : > { %4895 = vmatpush3.bf16.msra.mxu0 %v4894_v0 }
0x1313   : > { %4896 = vmatprep.subr.bf16.mxu0 %v5806_v25  ;;  %v3634_v25 = vld [vmem:[%s6525_s3 + $0x38] sm:$0xff]  ;;  %s5825_s3 = smov 12  }
0x1314   : > { %v4897_v9 = vpack.c.bf16 %v3634_v25, %v3633_v8 }
0x1316   : > { %4898 = vmatpush3.bf16.msra.mxu0 %v4897_v9 }
0x13dc   : > { %v3508_v43 = vpop.f32.mrb[18].mxu0 }
0x13dd   : > { %v3509_v44 = vadd.f32 %v4475_v42, %v3508_v43  ;;  %v4766_v45 = vpop.f32.mrb[19].mxu0 }
0x13df   : > { %v3512_v46 = vadd.f32 %v3509_v44, %v6684_v26 }
0x13e1   : > { %v3515_v39 = vsel %vm1633_vm6, %v3512_v46, 0.0 }
0x13e2   : > { %3516 = vadd.xlane.f32.xlu1 %v3515_v39 }
0x13f3   : > { %2394 = vrot.lane.b32.xlu1 %v6631_v31, %s5821_s25  ;;  %v3544_v31 = vld [vmem:[%s7260_s15 + $0x10] sm:$0xff] }
0x13f7   : > { %2397 = vrot.lane.b32.xlu1 %v6637_v34, %s5822_s18  ;;  %v3545_v34 = vld [vmem:[%s7260_s15 + $0x18] sm:$0xff] }
0x13f8   : > { %v4885_v54 = vpack.c.bf16 %v3545_v34, %v3544_v31  ;;  %v5827_v31 = vmov (!%p4485_p4), 0.0|0.0  }
0x13f9   : > { %4899 = vmatprep.subr.bf16.mxu0 (!%p4485_p4), %v5827_v31 }
0x13fa   : > { %4886 = vmatpush3.bf16.msra.mxu1 %v4885_v54  ;;  %v3754_v54 = vld [vmem:[%s7269_s20 + $0x18] sm:$0xff] (!%p4485_p4) }
0x13fb   : > { %v4903_v57 = vpack.c.bf16 (!%p4485_p4), %v3754_v54, %v3753_v53 }
0x146f   : > { %v3517_v28 = vpop.xlane.xlu1 %3516 }
0x1470   : > { %v3518_v48 = vmul.f32 0.03125, %v3517_v28 }
0x1472   : > { %v3519_v49 = vsub.f32 %v3512_v46, %v3518_v48  ;;  %v4483_v48 = vld [vmem:[%s1512_s21] ss:$0 sm:$0xff] }
0x1473   : > { %v2395_v10 = vpop.permute.xlu1 %2394 }
0x1474   : > { %v3520_v50 = vmul.f32 %v3519_v49, %v3519_v49 }
0x1476   : > { %v3521_v26 = vsel %vm1633_vm6, %v3520_v50, 0.0  ;;  %v4484_v50 = vld [vmem:[%s1515_s0] ss:$0 sm:$0xff] }
0x1477   : > { %3522 = vadd.xlane.f32.xlu0 %v3521_v26  ;;  %v2398_v40 = vpop.permute.xlu1 %2397 }
0x1504   : > { %v3523_v1 = vpop.xlane.xlu0 %3522 }
0x1505   : > { %v3524_v2 = vmul.f32 0.03125, %v3523_v1 }
0x1507   : > { %v3525_v3 = vadd.f32 1e-05, %v3524_v2 }
0x1509   : > { %5222 = vrsqrt.f32 %v3525_v3 }
0x1513   : > { %v5223_v4 = vpop.eup %5222 }
0x1514   : > { %v3527_v36 = vmul.f32 %v5223_v4, %v3519_v49 }
0x1516   : > { %v3534_v6 = vmul.f32 %v4477_v30, %v3527_v36 }
0x1518   : > { %v3541_v7 = vadd.f32 %v4478_v5, %v3534_v6 }
0x151a   : > { %4776 = vmatmul.mubr.msk.f32.vlgmr.msra.gmra.mrb[22].mxu1 %vm1633_vm6, %v3541_v7 }
0x15ed   : > { %v3622_v11 = vpop.f32.mrb[22].mxu1 }
0x15ee   : > { %v3623_v12 = vadd.f32 %v4479_v55, %v3622_v11  ;;  %v4777_v13 = vpop.f32.mrb[23].mxu1 }
0x15f0   : > { %v3626_v14 = vmax.f32 %v3623_v12, 0.0 }
0x15f2   : > { %4795 = vmatmul.mubr.msk.f32.vlgmr.msra.gmra.mrb[20].mxu0 %vm3642_vm2, %v3626_v14 }
0x15f3   : > { %4805 = vmatprep.mubr.msk.f32.mxu0 (!%p4485_p4), %vm5828_vm5, %v5829_v56 }
0x16c5   : > { %v3712_v37 = vpop.f32.mrb[20].mxu0 }
0x16c6   : > { %v3713_v18 = vadd.f32 %v4481_v15, %v3712_v37  ;;  %v4796_v19 = vpop.f32.mrb[21].mxu0 }
0x16c8   : > { %v3716_v20 = vadd.f32 %v3713_v18, %v3541_v7 }
0x16ca   : > { %v3719_v22 = vsel %vm1633_vm6, %v3716_v20, 0.0 }
0x16cb   : > { %3720 = vadd.xlane.f32.xlu0 %v3719_v22 }
0x16e1   : > { %2391 = vrot.lane.b32.xlu0 %v6623_v24, %s5820_s22 }
0x16e5   : > { %3413 = vrot.lane.b32.xlu0 %v6759_v33, %s5825_s3 }
0x16e9   : > { %3419 = vrot.lane.b32.xlu0 %v6809_v17, %s5826_s9 }
0x1758   : > { %v3721_v23 = vpop.xlane.xlu0 %3720 }
0x1759   : > { %v3722_v27 = vmul.f32 0.03125, %v3721_v23 }
0x175b   : > { %v3723_v29 = vsub.f32 %v3716_v20, %v3722_v27 }
0x175c   : > { %v2392_v32 = vpop.permute.xlu0 %2391 }
0x175d   : > { %v2400_v35 = vsel %vm1711_vm7, %v6617_v21, %v2392_v32  ;;  %v3724_v38 = vmul.f32 %v3723_v29, %v3723_v29  ;;  %vm3835_vm7 = vcmask (!%p4485_p4), 408576  }
0x175e   : > { %v2401_v41 = vsel %vm2387_vm9, %v2400_v35, %v2395_v10 }
0x175f   : > { %v2402_v24 = vsel %vm2389_vm10, %v2401_v41, %v2398_v40  ;;  %v3725_v42 = vsel %vm1633_vm6, %v3724_v38, 0.0 }
0x1760   : > { %2403 = vst.msk [vmem:[%s1441_s27] sm:$0xff] %vm1633_vm6, %v2402_v24  ;;  %3726 = vadd.xlane.f32.xlu1 %v3725_v42  ;;  %v3414_v33 = vpop.permute.xlu0 %3413 }
0x1761   : > { %v3422_v44 = vsel %vm2783_vm14, %v6750_v16, %v3414_v33  ;;  %v3751_v16 = vld [vmem:[%s7268_s7] sm:$0xff] (!%p4485_p4) }
0x1762   : > { %v4900_v34 = vpack.c.bf16 (!%p4485_p4), %v3752_v52, %v3751_v16 }
0x1764   : > { %v3420_v46 = vpop.permute.xlu0 %3419  ;;  %4901 = vmatpush3.bf16.msra.mxu0 (!%p4485_p4), %v4900_v34 }
0x1765   : > { %4902 = vmatprep.subr.bf16.mxu0 (!%p4485_p4), %v5827_v31 }
0x1768   : > { %4904 = vmatpush3.bf16.msra.mxu0 (!%p4485_p4), %v4903_v57 }
0x1771   : > { %3416 = vrot.lane.b32.xlu1 %v6786_v62, %s5822_s18 }
0x17ed   : > { %v3727_v21 = vpop.xlane.xlu1 %3726 }
0x17ee   : > { %v3728_v17 = vmul.f32 0.03125, %v3727_v21 }
0x17f0   : > { %v3729_v43 = vadd.f32 1e-05, %v3728_v17 }
0x17f1   : > { %v3417_v45 = vpop.permute.xlu1 %3416 }
0x17f2   : > { %5224 = vrsqrt.f32 %v3729_v43  ;;  %v3423_v39 = vsel %vm2389_vm10, %v3422_v44, %v3417_v45 }
0x17f3   : > { %v3425_v28 = vsel %vm3424_vm3, %v3423_v39, %v3420_v46 }
0x17f4   : > { %3427 = vst.msk [vmem:[%s1448_s29] sm:$0xff] %vm3426_vm4, %v3425_v28 }
0x17fc   : > { %v5225_v62 = vpop.eup %5224 }
0x17fd   : > { %v3731_v49 = vmul.f32 %v5225_v62, %v3723_v29  ;;  %3750 = sbr.rel (%p4485_p4) target bundleno = 6362 (0x18da), region = 180 }
0x17ff   : > { %v3738_v26 = vmul.f32 %v4483_v48, %v3731_v49 }
0x1801   : > { %v3745_v51 = vadd.f32 %v4484_v50, %v3738_v26 }
0x1803   : > { %3746 = vst.msk [vmem:[#allocation2] sm:$0xff] %vm1633_vm6, %v3745_v51  ;;  %4806 = vmatmul.mubr.msk.f32.vlgmr.msra.gmra.mrb[0].mxu0 (!%p4485_p4), %vm1633_vm6, %v3745_v51 }
0x18d6   : > { %v3831_v58 = vpop.f32.mrb[0].mxu0 }
0x18d7   : > { %v3832_v59 = vadd.f32 %v4486_v47, %v3831_v58  ;;  %v4807_v60 = vpop.f32.mrb[1].mxu0 }
0x18d9   : > { %3836 = vst.msk [vmem:[%s6535_s4] sm:$0xff] %vm3835_vm7, %v3832_v59 }
0x18da PF: > { %s7271_s16 = sld [smem:[#allocation73_spill]]  ;;  %s7272_s21 = sld [smem:[#allocation72_spill]] }
0x18db   : > { %s7273_s0 = sld [smem:[#allocation63_spill]]  ;;  %s7275_s22 = sld [smem:[#allocation91_spill]] }
0x18dc   : > { %s7276_s18 = sld [smem:[#allocation80_spill]]  ;;  %s3878_s30 = sshll.u32 %s1448_s29, 4  ;;  %s6907_s30 = int_to_ptr.vmem [resolvable:$true] %s3878_s30 }
0x18dd   : > { %s5524_s5 = scalar_lea.vmem %s6907_s30, 128  ;;  %s5830_s15 = smov [#allocation21]  }
0x18de   : > { %p5525_p0 = scmp.ne.s32.totalorder %s6907_s30, %s5524_s5  ;;  %s5528_s19 = sshll.u32 %s5830_s15, 4  ;;  %s5529_s19 = int_to_ptr.vmem [resolvable:$false] %s5528_s19 }
0x18df   : > { %s5530_s28 = scalar_lea.vmem %s5529_s19, 256  ;;  %p5531_p9 = scmp.lt.s32.totalorder %s6907_s30, %s5529_s19 }
0x18e0   : > { %s4491_s23 = sshll.u32 %s7271_s16, 1  ;;  %p5532_p8 = scmp.lt.s32.totalorder %s5530_s28, %s5524_s5 }
0x18e1   : > { %s7274_s25 = smov %s7273_s0  ;;  %s6902_s10 = sadd.s32 %s7272_s21, %s4491_s23 }
0x18e2   : > { %s4492_s17 = sshll.u32 %s6902_s10, 7  ;;  %s3843_s2 = scalar_lea.sflag [#allocation22], %s7275_s22 }
0x18e3   : > { %s3876_s26 = scalar_lea.hbm %s7273_s0, %s4492_s17  ;;  %p7277_p12 = scmp.ne.s32.totalorder %s7276_s18, 0 }
0x18e4   : > { %p5533_p3 = por %p5532_p8, %p5531_p9 }
0x18e5   : > { %p5526_p7 = pnand %p5525_p0, %p7277_p12 }
0x18e7   : > { %p5527_p6 = pneg %p5526_p7 }
0x18e9   : > { %p5534_p10 = pnand %p5533_p3, %p5527_p6 }
0x18eb   : > { %5537 = shalt.err (!%p5534_p10)
}
0x18ec   : > { %s5538_s29 = scalar_lea.hbm %s3876_s26, 128  ;;  %s5542_s1 = scalar_lea.hbm %s7274_s25, 512 }
0x18ed   : > { %p5539_p11 = scmp.ne.s32.totalorder %s3876_s26, %s5538_s29  ;;  %p5543_p1 = scmp.lt.u32.totalorder %s3876_s26, %s7274_s25 }
0x18ee   : > { %p5544_p13 = scmp.lt.u32.totalorder %s5542_s1, %s5538_s29  ;;  %p5546_p0 = scmp.lt.u32.totalorder %s5538_s29, %s3876_s26 }
0x18ef   : > { %p5540_p5 = pnand %p5539_p11, %p7277_p12 }
0x18f0   : > { %p5545_p4 = por %p5544_p13, %p5543_p1 }
0x18f1   : > { %p5541_p2 = pneg %p5540_p5 }
0x18f2   : > { %p5547_p7 = por %p5546_p0, %p5545_p4 }
0x18f4   : > { %p5548_p8 = pnand %p5547_p7, %p5541_p2 }
0x18f6   : > { %5551 = shalt.err (!%p5548_p8)
}
0x18f7   : > { %s7278_s11 = sld [smem:[#allocation62_spill]]  ;;  %s7280_s9 = sld [smem:[#allocation66_spill]] }
0x18f8   : > { %4928 = dma.vmem_to_hbm [thread:$0]  (%p7277_p12), %s6907_s30, 128, %s3876_s26, %s3843_s2  }
0x18f9   : > { %s3863_s12 = sshll.u32 %s1441_s27, 4  ;;  %s4495_s6 = sshll.u32 %s7271_s16, 7  ;;  %s6934_s12 = int_to_ptr.vmem [resolvable:$true] %s3863_s12 }
0x18fa   : > { %s5552_s21 = scalar_lea.vmem %s6934_s12, 128  ;;  %s5831_s0 = smov [#allocation20]  }
0x18fb   : > { %p5553_p6 = scmp.ne.s32.totalorder %s6934_s12, %s5552_s21  ;;  %s5556_s23 = sshll.u32 %s5831_s0, 4  ;;  %s5557_s23 = int_to_ptr.vmem [resolvable:$false] %s5556_s23 }
0x18fc   : > { %s5558_s10 = scalar_lea.vmem %s5557_s23, 256  ;;  %p5559_p10 = scmp.lt.s32.totalorder %s6934_s12, %s5557_s23 }
0x18fd   : > { %s7279_s3 = smov %s7278_s11  ;;  %s6930_s8 = scalar_lea.hbm %s7278_s11, %s4492_s17 }
0x18fe   : > { %s7281_s7 = sand.u32 1, %s7280_s9   ;;  %p5554_p9 = pnand %p5553_p6, %p7277_p12 }
0x18ff   : > { %s3838_s24 = scalar_lea.sflag [#allocation5], %s7281_s7  ;;  %p5560_p11 = scmp.lt.s32.totalorder %s5558_s10, %s5552_s21 }
0x1900   : > { %p5555_p3 = pneg %p5554_p9 }
0x1901   : > { %p5561_p5 = por %p5560_p11, %p5559_p10 }
0x1903   : > { %p5562_p2 = pnand %p5561_p5, %p5555_p3 }
0x1905   : > { %5565 = shalt.err (!%p5562_p2)
}
0x1906   : > { %s5566_s14 = scalar_lea.hbm %s6930_s8, 128  ;;  %s5570_s27 = scalar_lea.hbm %s7279_s3, 512 }
0x1907   : > { %p5567_p1 = scmp.ne.s32.totalorder %s6930_s8, %s5566_s14  ;;  %p5571_p0 = scmp.lt.u32.totalorder %s6930_s8, %s7279_s3 }
0x1908   : > { %p5572_p7 = scmp.lt.u32.totalorder %s5570_s27, %s5566_s14  ;;  %p5574_p6 = scmp.lt.u32.totalorder %s5566_s14, %s6930_s8 }
0x1909   : > { %p5568_p13 = pnand %p5567_p1, %p7277_p12 }
0x190a   : > { %p5573_p8 = por %p5572_p7, %p5571_p0 }
0x190b   : > { %p5569_p4 = pneg %p5568_p13 }
0x190c   : > { %p5575_p9 = por %p5574_p6, %p5573_p8 }
0x190e   : > { %p5576_p3 = pnand %p5575_p9, %p5569_p4 }
0x1910   : > { %5579 = shalt.err (!%p5576_p3)
}
0x1911   : > { %s7282_s30 = sld [smem:[#allocation64_spill]]  ;;  %s7284_s26 = sld [smem:[#allocation85_spill]] }
0x1912   : > { %4927 = dma.vmem_to_hbm [thread:$0]  (%p7277_p12), %s6934_s12, 128, %s6930_s8, %s3838_s24  }
0x1913   : > { %s3891_s15 = sshll.u32 %s6535_s4, 4  ;;  %s5832_s28 = smov [#allocation23]   ;;  %s3892_s15 = int_to_ptr.vmem [resolvable:$true] %s3891_s15 }
0x1914   : > { %s5580_s19 = scalar_lea.vmem %s3892_s15, 128  ;;  %s5584_s29 = sshll.u32 %s5832_s28, 4  ;;  %s5585_s29 = int_to_ptr.vmem [resolvable:$false] %s5584_s29 }
0x1915   : > { %p5581_p10 = scmp.ne.s32.totalorder %s3892_s15, %s5580_s19  ;;  %s5586_s18 = scalar_lea.vmem %s5585_s29, 256 }
0x1916   : > { %p5587_p1 = scmp.lt.s32.totalorder %s3892_s15, %s5585_s29  ;;  %p5588_p13 = scmp.lt.s32.totalorder %s5586_s18, %s5580_s19 }
0x1917   : > { %s7283_s17 = smov %s7282_s30  ;;  %s6959_s5 = scalar_lea.hbm %s7282_s30, %s4495_s6 }
0x1918   : > { %p7285_p11 = scmp.ne.s32.totalorder %s7284_s26, 0  ;;  %p5589_p4 = por %p5588_p13, %p5587_p1 }
0x191a   : > { %p5582_p5 = pnand %p5581_p10, %p7285_p11 }
0x191c   : > { %p5583_p2 = pneg %p5582_p5 }
0x191e   : > { %p5590_p0 = pnand %p5589_p4, %p5583_p2 }
0x1920   : > { %5593 = shalt.err (!%p5590_p0)
}
0x1921   : > { %s5594_s4 = scalar_lea.hbm %s6959_s5, 128  ;;  %s5598_s16 = scalar_lea.hbm %s7283_s17, 256 }
0x1922   : > { %p5595_p12 = scmp.ne.s32.totalorder %s6959_s5, %s5594_s4  ;;  %p5599_p6 = scmp.lt.u32.totalorder %s6959_s5, %s7283_s17 }
0x1923   : > { %p5600_p9 = scmp.lt.u32.totalorder %s5598_s16, %s5594_s4  ;;  %p5602_p10 = scmp.lt.u32.totalorder %s5594_s4, %s6959_s5 }
0x1924   : > { %p5596_p7 = pnand %p5595_p12, %p7285_p11 }
0x1925   : > { %p5601_p3 = por %p5600_p9, %p5599_p6 }
0x1926   : > { %p5597_p8 = pneg %p5596_p7 }
0x1927   : > { %p5603_p5 = por %p5602_p10, %p5601_p3 }
0x1929   : > { %p5604_p2 = pnand %p5603_p5, %p5597_p8 }
0x192b   : > { %5607 = shalt.err (!%p5604_p2)
}
0x192c   : > { %4929 = dma.vmem_to_hbm [thread:$0]  (%p7285_p11), %s3892_s15, 128, %s6959_s5, %s3843_s2  }
0x192d PF: > { %s7286_s1 = sld [smem:[#allocation76_spill]]  ;;  %s7287_s11 = sld [smem:[#allocation65_spill]] }
0x192e   : > { %s7288_s9 = sld [smem:[#allocation81_spill]] }
0x1933   : > { %p4978_p1 = scmp.ge.s32.totalorder %s7286_s1, 2  ;;  %s3903_s8 = sand.u32 1, %s7287_s11  }
0x1934   : > { %p7289_p13 = scmp.ne.s32.totalorder %s7288_s9, 0  ;;  %s3904_s12 = scalar_lea.sflag [#allocation5], %s3903_s8 }
0x1936   : > { %p4966_p4 = pnand %p4978_p1, %p7289_p13 }
0x1938   : > { %5693 = dma.done.wait (!%p4966_p4), %s3904_s12, 128  }
0x1939   : > { %5695 = vsyncadd (!%p4966_p4), %s3904_s12, 4294967168  ;;  %s7290_s6 = sadd.s32 4294967294, %s7286_s1  }
0x193a   : > { %s3912_s7 = sand.u32 1, %s7290_s6  }
0x193b   : > { %s3913_s24 = scalar_lea.sflag [#allocation22], %s3912_s7 }
0x193c   : > { %5697 = dma.done.wait (!%p4966_p4), %s3913_s24, 128  }
0x193d   : > { %5699 = vsyncadd (!%p4966_p4), %s3913_s24, 4294967168  ;;  %s7291_s22 = sld [smem:[#allocation82_spill]] }
0x1943   : > { %p7292_p0 = scmp.ne.s32.totalorder %s7291_s22, 0 }
0x1945   : > { %p4972_p11 = pnand %p4978_p1, %p7292_p0 }
0x1947   : > { %5701 = dma.done.wait (!%p4972_p11), %s3913_s24, 128  }
0x1948   : > { %5703 = vsyncadd (!%p4972_p11), %s3913_s24, 4294967168  ;;  %s96_s30 = sadd.s32 1, %s7286_s1   ;;  %s7294_s15 = sld [smem:[#allocation66_spill]] }
0x1949   : > { %p6986_p12 = scmp.ge.s32.totalorder %s96_s30, 6   ;;  %s7295_s0 = sld [smem:[#allocation67_spill]] }
0x194a   : > { %s7296_s16 = sld [smem:[#allocation89_spill]]  ;;  %s7297_s18 = sld [smem:[#allocation68_spill]] }
0x194b   : > { %s7298_s22 = sld [smem:[#allocation69_spill]]  ;;  %s7299_s23 = sld [smem:[#allocation87_spill]] }
0x194c   : > { %s7300_s26 = sld [smem:[#allocation70_spill]]  ;;  %s7301_s28 = sld [smem:[#allocation71_spill]] }
0x194d   : > { %s7302_s1 = sld [smem:[#allocation88_spill]]  ;;  %s7303_s21 = sld [smem:[#allocation74_spill]] }
0x194e   : > { %s7304_s7 = sld [smem:[#allocation75_spill]]  ;;  %s7305_s10 = sld [smem:[#allocation84_spill]] }
0x194f   : > { %s7306_s11 = sld [smem:[#allocation86_spill]]  ;;  %95 = sbr.rel (!%p6986_p12) target bundleno = 90 (0x5a), region = 394 }
0x1953   : > { %s7308_s2 = smov %s7303_s21 }
0x1956   :  { %3927 = vsyncpa [#allocation4], 1 }
0x1957   :  { %3929 = vsyncpa [#allocation4 + $0x1], 1 }
0x1958   :  { %3930 = vsyncpa [#allocation7], 1 }
0x1959   :  { %3932 = vsyncpa [#allocation7 + $0x1], 1 }
0x195a   :  { %3933 = vsyncpa [#allocation10], 1 }
0x195b   :  { %3935 = vsyncpa [#allocation10 + $0x1], 1 }
0x195c   :  { %3936 = vsyncpa [#allocation13], 1 }
0x195d   :  { %3938 = vsyncpa [#allocation13 + $0x1], 1 }
0x195e   :  { %3939 = vsyncpa [#allocation16], 1 }
0x195f   :  { %3941 = vsyncpa [#allocation16 + $0x1], 1 }
0x1960   :  { %3942 = vsyncpa [#allocation19], 1 }
0x1961   :  { %3944 = vsyncpa [#allocation19 + $0x1], 1 }
0x1962   :  { %3945 = vsyncpa [#allocation5], 1 }
0x1963   :  { %3947 = vsyncpa [#allocation5 + $0x1], 1 }
0x1964   :  { %3948 = vsyncpa [#allocation22], 1 }
0x1965   :  { %3950 = vsyncpa [#allocation22 + $0x1], 1 }

</bundles_post_ra>
